<compile_context>
chip_gen: v5e
topology: v5e:2x2
jax: 0.10.0
libtpu: 0.0.40
codegen_flags: <defaults>
</compile_context>

<pallas_src>
import functools

import jax
import jax.numpy as jnp
from jax.experimental import pallas as pl
from jax.experimental.pallas import tpu as pltpu


def tagger_head_kernel(pooled_ref, w_ref, b_ref, out_ref):
    """Fused linear + sigmoid on one S-tile.

    pooled_ref: (B, C)       bf16  pooled backbone features (resident across grid)
    w_ref:      (C, TILE_S)  bf16  linear-weight column tile
    b_ref:      (1, TILE_S)  f32   bias tile
    out_ref:    (B, TILE_S)  f32   tag probabilities tile
    """
    # nn.Dropout(0.15) is identity at inference.
    logits = jnp.dot(pooled_ref[...], w_ref[...],
                     preferred_element_type=jnp.float32) + b_ref[...]
    out_ref[...] = jax.nn.sigmoid(logits).astype(out_ref.dtype)


@functools.partial(jax.jit, static_argnames=("tile_s",))
def encoder_tagger_forward(features_nchw, weight, bias, *, tile_s=512):
    """features_nchw: (B, 2048, Hf, Wf); weight: (2048, S); bias: (S,)."""
    B, C, H, W = features_nchw.shape
    S = weight.shape[1]
    assert tile_s % 128 == 0

    # AdaptiveAvgPool2d((1, 1)) + .view(B, -1): a plain global mean, done in
    # XLA on the NCHW layout (no wrapper transpose / extra HBM pass).
    pooled = jnp.mean(features_nchw.astype(jnp.float32), axis=(2, 3))      # (B, C)

    # Pad S to a multiple of tile_s so every weight/output tile is lane-dense
    # and every MXU N-tile is full; padded columns are sliced off below.
    s_pad = pl.cdiv(S, tile_s) * tile_s
    w_p = jnp.pad(weight, ((0, 0), (0, s_pad - S))).astype(jnp.bfloat16)   # (C, s_pad)
    b_p = jnp.pad(bias, (0, s_pad - S)).reshape(1, s_pad).astype(jnp.float32)
    pooled_bf16 = pooled.astype(jnp.bfloat16)                              # (B, C)

    bytes_accessed = (B * C * 2          # pooled (bf16)
                      + C * s_pad * 2    # weight (bf16)
                      + s_pad * 4        # bias (f32)
                      + B * s_pad * 4)   # output (f32)

    out = pl.pallas_call(
        tagger_head_kernel,
        out_shape=jax.ShapeDtypeStruct((B, s_pad), jnp.float32),
        grid=(s_pad // tile_s,),
        in_specs=[
            pl.BlockSpec((B, C), lambda j: (0, 0)),        # resident across grid
            pl.BlockSpec((C, tile_s), lambda j: (0, j)),   # stream weight columns
            pl.BlockSpec((1, tile_s), lambda j: (0, j)),
        ],
        out_specs=pl.BlockSpec((B, tile_s), lambda j: (0, j)),
        compiler_params=pltpu.CompilerParams(
            dimension_semantics=("parallel",),   # lets v7x shard S over its 2 TCs
            vmem_limit_bytes=32 << 20,           # safe on v7x's 64 MiB VMEM
        ),
        cost_estimate=pl.CostEstimate(
            flops=2 * B * C * s_pad,
            transcendentals=B * s_pad,
            bytes_accessed=bytes_accessed,
        ),
    )(pooled_bf16, w_p, b_p)
    return out[:, :S]


def _reference(features_nchw, weight, bias):
    pooled = jnp.mean(features_nchw.astype(jnp.float32), axis=(2, 3))  # (B, C)
    return jax.nn.sigmoid(pooled @ weight + bias[None, :])


if __name__ == "__main__":
    B = 2
    C = 2048            # fixed by nn.Linear(2048, semantic_size)
    Hf = Wf = 4         # small pre-avgpool spatial extent
    semantic_size = 1000

    key = jax.random.PRNGKey(0)
    k_feat, k_w, k_b = jax.random.split(key, 3)

    # Deterministic synthetic pre-avgpool backbone features (NCHW).
    features = jax.random.normal(k_feat, (B, C, Hf, Wf), dtype=jnp.float32)

    # Deterministic Linear(2048, semantic_size) params, PyTorch-style
    # uniform(-1/sqrt(fan_in), 1/sqrt(fan_in)) init. Stored as (C, S), i.e. the
    # transpose of torch's (S, C) weight, so the kernel computes x @ W.
    bound = 1.0 / jnp.sqrt(jnp.float32(C))
    weight = jax.random.uniform(k_w, (C, semantic_size), jnp.float32,
                                minval=-bound, maxval=bound)
    bias = jax.random.uniform(k_b, (semantic_size,), jnp.float32,
                              minval=-bound, maxval=bound)

    out = encoder_tagger_forward(features, weight, bias)
    out = jax.block_until_ready(out)

    ref = _reference(features, weight, bias)
    assert out.shape == (B, semantic_size), out.shape
    # bf16 weight/activation streaming -> relaxed tolerance vs fp32 reference.
    max_err = float(jnp.max(jnp.abs(out - ref)))
    assert jnp.allclose(out, ref, atol=2e-2, rtol=2e-2), f"mismatch, max_err={max_err}"

    print("KERNEL_OK")
</pallas_src>

<mosaic_0001>
module attributes {stable_mosaic.version = 11 : i64} {
  func.func @tagger_head_kernel(%arg0: i32, %arg1: memref<2x2048xbf16, #tpu.memory_space<vmem>>, %arg2: memref<2048x512xbf16, #tpu.memory_space<vmem>>, %arg3: memref<1x512xf32, #tpu.memory_space<vmem>>, %arg4: memref<2x512xf32, #tpu.memory_space<vmem>>) attributes {dimension_semantics = [#tpu.dimension_semantics<parallel>], iteration_bounds = array<i64: 2>, scalar_prefetch = 0 : i64, scratch_operands = 0 : i64, tpu.core_type = #tpu.core_type<tc>, window_params = [{pipeline_mode = #tpu.pipeline_mode<synchronous>, transform_indices = @transform_0, window_bounds = array<i64: 2, 2048>}, {transform_indices = @transform_1, window_bounds = array<i64: 2048, 512>}, {transform_indices = @transform_2, window_bounds = array<i64: 1, 512>}, {transform_indices = @transform_3, window_bounds = array<i64: 2, 512>}]} {
    %c0 = arith.constant 0 : index
    %c0_0 = arith.constant 0 : index
    %0 = vector.load %arg1[%c0, %c0_0] : memref<2x2048xbf16, #tpu.memory_space<vmem>>, vector<2x2048xbf16>
    %c0_1 = arith.constant 0 : index
    %c0_2 = arith.constant 0 : index
    %1 = vector.load %arg2[%c0_1, %c0_2] : memref<2048x512xbf16, #tpu.memory_space<vmem>>, vector<2048x512xbf16>
    %cst = arith.constant dense<0.000000e+00> : vector<2x512xf32>
    %2 = tpu.matmul %0, %1, %cst {dimension_numbers = #tpu.dot_dimension_numbers<[1], [0], [0], [1], [0, 0, 1, 1], [], []>} : vector<2x2048xbf16>, vector<2048x512xbf16>, vector<2x512xf32> -> vector<2x512xf32>
    %c0_3 = arith.constant 0 : index
    %c0_4 = arith.constant 0 : index
    %3 = vector.load %arg3[%c0_3, %c0_4] : memref<1x512xf32, #tpu.memory_space<vmem>>, vector<1x512xf32>
    %4 = vector.broadcast %3 : vector<1x512xf32> to vector<2x512xf32>
    %5 = arith.addf %2, %4 : vector<2x512xf32>
    %6 = arith.negf %5 : vector<2x512xf32>
    %7 = math.exp %6 : vector<2x512xf32>
    %cst_5 = arith.constant 1.000000e+00 : f32
    %8 = vector.broadcast %cst_5 : f32 to vector<2x512xf32>
    %9 = arith.addf %8, %7 : vector<2x512xf32>
    %10 = arith.divf %8, %9 : vector<2x512xf32>
    %c0_6 = arith.constant 0 : index
    %c0_7 = arith.constant 0 : index
    %11 = vector.load %arg4[%c0_6, %c0_7] : memref<2x512xf32, #tpu.memory_space<vmem>>, vector<2x512xf32>
    tpu.vector_store %arg4[%c0_6, %c0_7], %10 {strides = array<i32>} : memref<2x512xf32, #tpu.memory_space<vmem>>, vector<2x512xf32>,
    return
  }
  func.func @transform_0(%arg0: i32) -> (i32, i32) {
    %c0_i32 = arith.constant 0 : i32
    %c0_i32_0 = arith.constant 0 : i32
    %c0_i32_1 = arith.constant 0 : i32
    return %c0_i32, %c0_i32_0 : i32, i32
  }
  func.func @transform_1(%arg0: i32) -> (i32, i32) {
    %c0_i32 = arith.constant 0 : i32
    %c0_i32_0 = arith.constant 0 : i32
    return %c0_i32, %arg0 : i32, i32
  }
  func.func @transform_2(%arg0: i32) -> (i32, i32) {
    %c0_i32 = arith.constant 0 : i32
    %c0_i32_0 = arith.constant 0 : i32
    return %c0_i32, %arg0 : i32, i32
  }
  func.func @transform_3(%arg0: i32) -> (i32, i32) {
    %c0_i32 = arith.constant 0 : i32
    %c0_i32_0 = arith.constant 0 : i32
    return %c0_i32, %arg0 : i32, i32
  }
}

</mosaic_0001>

<bundles_post_ra>
// kernel: encoder_tagger_forward.1
= control target key start
LH: loop header
LB: loop body
LE: loop exit
PB: predicated region body
PF: predicated region fallthrough
CT: control target
= control target key end

     0   :  { %8 = vsyncpa [#allocation4], 0  ;;  %s10573_s0 = inlined_call_operand.vmem [shape: bf16[2,2048], index: 0, kind: input, shape index: {}]   ;;  %s10574_s1 = inlined_call_operand.vmem [shape: bf16[2048,1024], index: 1, kind: input, shape index: {}]   ;;  %s10575_s2 = inlined_call_operand.vmem [shape: f32[1,1024], index: 2, kind: input, shape index: {}]   ;;  %s10576_s3 = inlined_call_operand.hbm [shape: f32[2,1024], index: 3, kind: output, shape index: {}]  }
   0x1   :  { %10 = vsyncpa [#allocation4 + $0x1], 0  ;;  %s8744_s12 = smov 0   ;;  %s8746_s13 = smov 0  }
   0x2   :  { %s8748_s14 = smov 0   ;;  %s8750_s15 = smov 0  }
   0x3 LB: > { %s8765_s16 = sadd.s32 4294967295, %s8706_s15   ;;  %s5932_s17 = sadd.s32 4294967294, %s8706_s15   ;;  %s8706_s15 = sphi %s8750_s15, %s10590_s15   ;;  %s8702_s14 = sphi %s8748_s14, %s10589_s14   ;;  %s8698_s13 = sphi %s8746_s13, %s10588_s13   ;;  %s8694_s12 = sphi %s8744_s12, %s10587_s12  }
   0x4   : > { %s8769_s18 = sadd.s32 1, %s8706_s15   ;;  %s44_s19 = sadd.s32 1, %s8702_s14 }
   0x5   : > { %s41_s20 = ssub.s32 %s8706_s15, %s8769_s18  ;;  %p51_p0 = scmp.ne.s32.totalorder %s8702_s14, %s8698_s13 }
   0x6   : > { %p42_p1 = scmp.eq.s32.totalorder %s41_s20, 0  ;;  %p52_p2 = scmp.eq.s32.totalorder %s8706_s15, 0 }
   0x7   : > { %p107_p3 = scmp.eq.s32.totalorder %s8765_s16, 1  ;;  %p112_p4 = scmp.ne.s32.totalorder %s8698_s13, %s8694_s12 }
   0x8   : > { %s8781_s21 = scalar_select %p42_p1, %s8702_s14, %s44_s19  }
   0x9   : > { %p53_p5 = por %p52_p2, %p51_p0  ;;  %p8783_p6 = por %p107_p3, %p51_p0 }
   0xa   : > { %p113_p7 = scmp.eq.s32.totalorder %s5932_s17, 1  ;;  %p5934_p9 = scmp.ge.s32.totalorder %s8706_s15, 2 }
   0xc   : > { %p8787_p8 = por %p113_p7, %p112_p4  ;;  %132 = sbr.rel (%p5934_p9) target bundleno = 279 (0x117), region = 20 }
  0x11   : > { %135 = sbr.rel (!%p53_p5) target bundleno = 279 (0x117), region = 24  ;;  %s137_s24 = sand.u32 (%p53_p5), 1, %s8702_s14  }
  0x12   : > { %s8001_s25 = sshll.u32 (%p53_p5), %s8706_s15, 4  ;;  %s8796_s26 = sshll.u32 (%p53_p5), %s137_s24, 12 }
  0x13   : > { %s8801_s29 = scalar_lea.vmem (%p53_p5), %s10574_s1, %s8001_s25   ;;  %s139_s30 = scalar_lea.vmem (%p53_p5), [#allocation2], %s8796_s26  }
  0x14   : > { %s10579_s4 = smov (%p53_p5), %s139_s30  ;;  %s10580_s5 = smov (%p53_p5), %s8801_s29 }
  0x15   : > { %s8811_s6 = smov (%p53_p5), 0   ;;  %s8813_s7 = smov (%p53_p5), 0  }
  0x16 LB: >> { %v156_v0 = vld [vmem:[%s8714_s5] sm:$0xff]  ;;  %s668_s8 = sadd.s32 1, %s8718_s6  ;;  %s152_s7 = sadd.s32 1, %s8722_s7   ;;  %s8722_s7 = sphi %s8813_s7, %s152_s7   ;;  %s8718_s6 = sphi %s8811_s6, %s10583_s6   ;;  %s8714_s5 = sphi %s10580_s5, %s10582_s5   ;;  %s8710_s4 = sphi %s10579_s4, %s10581_s4  }
  0x17   : >> { %v158_v1 = vld [vmem:[%s8714_s5 + $0x20] sm:$0xff]  ;;  %157 = vst [vmem:[%s8710_s4] sm:$0xff] %v156_v0  ;;  %p669_p10 = scmp.ge.s32.totalorder %s668_s8, 2  ;;  %p149_p11 = scmp.ge.s32.totalorder %s152_s7, 2  }
  0x18   : >> { %v160_v2 = vld [vmem:[%s8714_s5 + $0x40] sm:$0xff]  ;;  %159 = vst [vmem:[%s8710_s4 + $0x10] sm:$0xff] %v158_v1 }
  0x19   : >> { %v162_v3 = vld [vmem:[%s8714_s5 + $0x60] sm:$0xff]  ;;  %161 = vst [vmem:[%s8710_s4 + $0x20] sm:$0xff] %v160_v2  ;;  %s10592_s8 = smov (%p669_p10, %s668_s8), 0 }
  0x1a   : >> { %v164_v4 = vld [vmem:[%s8714_s5 + $0x80] sm:$0xff]  ;;  %163 = vst [vmem:[%s8710_s4 + $0x30] sm:$0xff] %v162_v3  ;;  %s5938_s9 = sshll.u32 %s10592_s8, 3  ;;  %s10583_s6 = smov %s10592_s8 }
  0x1b   : >> { %v166_v5 = vld [vmem:[%s8714_s5 + $0xa0] sm:$0xff]  ;;  %165 = vst [vmem:[%s8710_s4 + $0x40] sm:$0xff] %v164_v4  ;;  %s9091_s10 = scalar_lea.vmem %s8801_s29, %s5938_s9   ;;  %s9095_s11 = scalar_lea.vmem %s139_s30, %s5938_s9 [#allocation2]  }
  0x1c   : >> { %v168_v6 = vld [vmem:[%s8714_s5 + $0xc0] sm:$0xff]  ;;  %167 = vst [vmem:[%s8710_s4 + $0x50] sm:$0xff] %v166_v5 }
  0x1d   : >> { %v170_v7 = vld [vmem:[%s8714_s5 + $0xe0] sm:$0xff]  ;;  %169 = vst [vmem:[%s8710_s4 + $0x60] sm:$0xff] %v168_v6 }
  0x1e   : >> { %v172_v8 = vld [vmem:[%s8714_s5 + $0x100] sm:$0xff]  ;;  %171 = vst [vmem:[%s8710_s4 + $0x70] sm:$0xff] %v170_v7 }
  0x1f   : >> { %v174_v9 = vld [vmem:[%s8714_s5 + $0x120] sm:$0xff]  ;;  %173 = vst [vmem:[%s8710_s4 + $0x80] sm:$0xff] %v172_v8 }
  0x20   : >> { %v176_v10 = vld [vmem:[%s8714_s5 + $0x140] sm:$0xff]  ;;  %175 = vst [vmem:[%s8710_s4 + $0x90] sm:$0xff] %v174_v9 }
  0x21   : >> { %v178_v11 = vld [vmem:[%s8714_s5 + $0x160] sm:$0xff]  ;;  %177 = vst [vmem:[%s8710_s4 + $0xa0] sm:$0xff] %v176_v10 }
  0x22   : >> { %v180_v12 = vld [vmem:[%s8714_s5 + $0x180] sm:$0xff]  ;;  %179 = vst [vmem:[%s8710_s4 + $0xb0] sm:$0xff] %v178_v11 }
  0x23   : >> { %v182_v13 = vld [vmem:[%s8714_s5 + $0x1a0] sm:$0xff]  ;;  %181 = vst [vmem:[%s8710_s4 + $0xc0] sm:$0xff] %v180_v12 }
  0x24   : >> { %v184_v14 = vld [vmem:[%s8714_s5 + $0x1c0] sm:$0xff]  ;;  %183 = vst [vmem:[%s8710_s4 + $0xd0] sm:$0xff] %v182_v13 }
  0x25   : >> { %v186_v15 = vld [vmem:[%s8714_s5 + $0x1e0] sm:$0xff]  ;;  %185 = vst [vmem:[%s8710_s4 + $0xe0] sm:$0xff] %v184_v14 }
  0x26   : >> { %v188_v16 = vld [vmem:[%s8714_s5 + $0x200] sm:$0xff]  ;;  %187 = vst [vmem:[%s8710_s4 + $0xf0] sm:$0xff] %v186_v15 }
  0x27   : >> { %v190_v17 = vld [vmem:[%s8714_s5 + $0x220] sm:$0xff]  ;;  %189 = vst [vmem:[%s8710_s4 + $0x100] sm:$0xff] %v188_v16 }
  0x28   : >> { %v192_v18 = vld [vmem:[%s8714_s5 + $0x240] sm:$0xff]  ;;  %191 = vst [vmem:[%s8710_s4 + $0x110] sm:$0xff] %v190_v17 }
  0x29   : >> { %v194_v19 = vld [vmem:[%s8714_s5 + $0x260] sm:$0xff]  ;;  %193 = vst [vmem:[%s8710_s4 + $0x120] sm:$0xff] %v192_v18 }
  0x2a   : >> { %v196_v20 = vld [vmem:[%s8714_s5 + $0x280] sm:$0xff]  ;;  %195 = vst [vmem:[%s8710_s4 + $0x130] sm:$0xff] %v194_v19 }
  0x2b   : >> { %v198_v21 = vld [vmem:[%s8714_s5 + $0x2a0] sm:$0xff]  ;;  %197 = vst [vmem:[%s8710_s4 + $0x140] sm:$0xff] %v196_v20 }
  0x2c   : >> { %v200_v22 = vld [vmem:[%s8714_s5 + $0x2c0] sm:$0xff]  ;;  %199 = vst [vmem:[%s8710_s4 + $0x150] sm:$0xff] %v198_v21 }
  0x2d   : >> { %v202_v23 = vld [vmem:[%s8714_s5 + $0x2e0] sm:$0xff]  ;;  %201 = vst [vmem:[%s8710_s4 + $0x160] sm:$0xff] %v200_v22 }
  0x2e   : >> { %v204_v24 = vld [vmem:[%s8714_s5 + $0x300] sm:$0xff]  ;;  %203 = vst [vmem:[%s8710_s4 + $0x170] sm:$0xff] %v202_v23 }
  0x2f   : >> { %v206_v25 = vld [vmem:[%s8714_s5 + $0x320] sm:$0xff]  ;;  %205 = vst [vmem:[%s8710_s4 + $0x180] sm:$0xff] %v204_v24 }
  0x30   : >> { %v208_v26 = vld [vmem:[%s8714_s5 + $0x340] sm:$0xff]  ;;  %207 = vst [vmem:[%s8710_s4 + $0x190] sm:$0xff] %v206_v25 }
  0x31   : >> { %v210_v27 = vld [vmem:[%s8714_s5 + $0x360] sm:$0xff]  ;;  %209 = vst [vmem:[%s8710_s4 + $0x1a0] sm:$0xff] %v208_v26 }
  0x32   : >> { %v212_v28 = vld [vmem:[%s8714_s5 + $0x380] sm:$0xff]  ;;  %211 = vst [vmem:[%s8710_s4 + $0x1b0] sm:$0xff] %v210_v27 }
  0x33   : >> { %v214_v29 = vld [vmem:[%s8714_s5 + $0x3a0] sm:$0xff]  ;;  %213 = vst [vmem:[%s8710_s4 + $0x1c0] sm:$0xff] %v212_v28 }
  0x34   : >> { %v216_v30 = vld [vmem:[%s8714_s5 + $0x3c0] sm:$0xff]  ;;  %215 = vst [vmem:[%s8710_s4 + $0x1d0] sm:$0xff] %v214_v29 }
  0x35   : >> { %v218_v31 = vld [vmem:[%s8714_s5 + $0x3e0] sm:$0xff]  ;;  %217 = vst [vmem:[%s8710_s4 + $0x1e0] sm:$0xff] %v216_v30 }
  0x36   : >> { %v220_v32 = vld [vmem:[%s8714_s5 + $0x400] sm:$0xff]  ;;  %219 = vst [vmem:[%s8710_s4 + $0x1f0] sm:$0xff] %v218_v31 }
  0x37   : >> { %v222_v33 = vld [vmem:[%s8714_s5 + $0x420] sm:$0xff]  ;;  %221 = vst [vmem:[%s8710_s4 + $0x200] sm:$0xff] %v220_v32 }
  0x38   : >> { %v224_v34 = vld [vmem:[%s8714_s5 + $0x440] sm:$0xff]  ;;  %223 = vst [vmem:[%s8710_s4 + $0x210] sm:$0xff] %v222_v33 }
  0x39   : >> { %v226_v35 = vld [vmem:[%s8714_s5 + $0x460] sm:$0xff]  ;;  %225 = vst [vmem:[%s8710_s4 + $0x220] sm:$0xff] %v224_v34 }
  0x3a   : >> { %v228_v36 = vld [vmem:[%s8714_s5 + $0x480] sm:$0xff]  ;;  %227 = vst [vmem:[%s8710_s4 + $0x230] sm:$0xff] %v226_v35 }
  0x3b   : >> { %v230_v37 = vld [vmem:[%s8714_s5 + $0x4a0] sm:$0xff]  ;;  %229 = vst [vmem:[%s8710_s4 + $0x240] sm:$0xff] %v228_v36 }
  0x3c   : >> { %v232_v38 = vld [vmem:[%s8714_s5 + $0x4c0] sm:$0xff]  ;;  %231 = vst [vmem:[%s8710_s4 + $0x250] sm:$0xff] %v230_v37 }
  0x3d   : >> { %v234_v39 = vld [vmem:[%s8714_s5 + $0x4e0] sm:$0xff]  ;;  %233 = vst [vmem:[%s8710_s4 + $0x260] sm:$0xff] %v232_v38 }
  0x3e   : >> { %v236_v40 = vld [vmem:[%s8714_s5 + $0x500] sm:$0xff]  ;;  %235 = vst [vmem:[%s8710_s4 + $0x270] sm:$0xff] %v234_v39 }
  0x3f   : >> { %v238_v41 = vld [vmem:[%s8714_s5 + $0x520] sm:$0xff]  ;;  %237 = vst [vmem:[%s8710_s4 + $0x280] sm:$0xff] %v236_v40 }
  0x40   : >> { %v240_v42 = vld [vmem:[%s8714_s5 + $0x540] sm:$0xff]  ;;  %239 = vst [vmem:[%s8710_s4 + $0x290] sm:$0xff] %v238_v41 }
  0x41   : >> { %v242_v43 = vld [vmem:[%s8714_s5 + $0x560] sm:$0xff]  ;;  %241 = vst [vmem:[%s8710_s4 + $0x2a0] sm:$0xff] %v240_v42 }
  0x42   : >> { %v244_v44 = vld [vmem:[%s8714_s5 + $0x580] sm:$0xff]  ;;  %243 = vst [vmem:[%s8710_s4 + $0x2b0] sm:$0xff] %v242_v43 }
  0x43   : >> { %v246_v45 = vld [vmem:[%s8714_s5 + $0x5a0] sm:$0xff]  ;;  %245 = vst [vmem:[%s8710_s4 + $0x2c0] sm:$0xff] %v244_v44 }
  0x44   : >> { %v248_v46 = vld [vmem:[%s8714_s5 + $0x5c0] sm:$0xff]  ;;  %247 = vst [vmem:[%s8710_s4 + $0x2d0] sm:$0xff] %v246_v45 }
  0x45   : >> { %v250_v47 = vld [vmem:[%s8714_s5 + $0x5e0] sm:$0xff]  ;;  %249 = vst [vmem:[%s8710_s4 + $0x2e0] sm:$0xff] %v248_v46 }
  0x46   : >> { %v252_v48 = vld [vmem:[%s8714_s5 + $0x600] sm:$0xff]  ;;  %251 = vst [vmem:[%s8710_s4 + $0x2f0] sm:$0xff] %v250_v47 }
  0x47   : >> { %v254_v49 = vld [vmem:[%s8714_s5 + $0x620] sm:$0xff]  ;;  %253 = vst [vmem:[%s8710_s4 + $0x300] sm:$0xff] %v252_v48 }
  0x48   : >> { %v256_v50 = vld [vmem:[%s8714_s5 + $0x640] sm:$0xff]  ;;  %255 = vst [vmem:[%s8710_s4 + $0x310] sm:$0xff] %v254_v49 }
  0x49   : >> { %v258_v51 = vld [vmem:[%s8714_s5 + $0x660] sm:$0xff]  ;;  %257 = vst [vmem:[%s8710_s4 + $0x320] sm:$0xff] %v256_v50 }
  0x4a   : >> { %v260_v52 = vld [vmem:[%s8714_s5 + $0x680] sm:$0xff]  ;;  %259 = vst [vmem:[%s8710_s4 + $0x330] sm:$0xff] %v258_v51 }
  0x4b   : >> { %v262_v53 = vld [vmem:[%s8714_s5 + $0x6a0] sm:$0xff]  ;;  %261 = vst [vmem:[%s8710_s4 + $0x340] sm:$0xff] %v260_v52 }
  0x4c   : >> { %v264_v54 = vld [vmem:[%s8714_s5 + $0x6c0] sm:$0xff]  ;;  %263 = vst [vmem:[%s8710_s4 + $0x350] sm:$0xff] %v262_v53 }
  0x4d   : >> { %v266_v55 = vld [vmem:[%s8714_s5 + $0x6e0] sm:$0xff]  ;;  %265 = vst [vmem:[%s8710_s4 + $0x360] sm:$0xff] %v264_v54 }
  0x4e   : >> { %v268_v56 = vld [vmem:[%s8714_s5 + $0x700] sm:$0xff]  ;;  %267 = vst [vmem:[%s8710_s4 + $0x370] sm:$0xff] %v266_v55 }
  0x4f   : >> { %v270_v57 = vld [vmem:[%s8714_s5 + $0x720] sm:$0xff]  ;;  %269 = vst [vmem:[%s8710_s4 + $0x380] sm:$0xff] %v268_v56 }
  0x50   : >> { %v272_v58 = vld [vmem:[%s8714_s5 + $0x740] sm:$0xff]  ;;  %271 = vst [vmem:[%s8710_s4 + $0x390] sm:$0xff] %v270_v57 }
  0x51   : >> { %v274_v59 = vld [vmem:[%s8714_s5 + $0x760] sm:$0xff]  ;;  %273 = vst [vmem:[%s8710_s4 + $0x3a0] sm:$0xff] %v272_v58 }
  0x52   : >> { %v276_v60 = vld [vmem:[%s8714_s5 + $0x780] sm:$0xff]  ;;  %275 = vst [vmem:[%s8710_s4 + $0x3b0] sm:$0xff] %v274_v59 }
  0x53   : >> { %v278_v61 = vld [vmem:[%s8714_s5 + $0x7a0] sm:$0xff]  ;;  %277 = vst [vmem:[%s8710_s4 + $0x3c0] sm:$0xff] %v276_v60 }
  0x54   : >> { %v280_v62 = vld [vmem:[%s8714_s5 + $0x7c0] sm:$0xff]  ;;  %279 = vst [vmem:[%s8710_s4 + $0x3d0] sm:$0xff] %v278_v61 }
  0x55   : >> { %v282_v63 = vld [vmem:[%s8714_s5 + $0x7e0] sm:$0xff]  ;;  %281 = vst [vmem:[%s8710_s4 + $0x3e0] sm:$0xff] %v280_v62 }
  0x56   : >> { %v284_v0 = vld [vmem:[%s8714_s5 + $0x800] sm:$0xff]  ;;  %283 = vst [vmem:[%s8710_s4 + $0x3f0] sm:$0xff] %v282_v63 }
  0x57   : >> { %v286_v1 = vld [vmem:[%s8714_s5 + $0x820] sm:$0xff]  ;;  %285 = vst [vmem:[%s8710_s4 + $0x400] sm:$0xff] %v284_v0 }
  0x58   : >> { %v288_v2 = vld [vmem:[%s8714_s5 + $0x840] sm:$0xff]  ;;  %287 = vst [vmem:[%s8710_s4 + $0x410] sm:$0xff] %v286_v1 }
  0x59   : >> { %v290_v3 = vld [vmem:[%s8714_s5 + $0x860] sm:$0xff]  ;;  %289 = vst [vmem:[%s8710_s4 + $0x420] sm:$0xff] %v288_v2 }
  0x5a   : >> { %v292_v4 = vld [vmem:[%s8714_s5 + $0x880] sm:$0xff]  ;;  %291 = vst [vmem:[%s8710_s4 + $0x430] sm:$0xff] %v290_v3 }
  0x5b   : >> { %v294_v5 = vld [vmem:[%s8714_s5 + $0x8a0] sm:$0xff]  ;;  %293 = vst [vmem:[%s8710_s4 + $0x440] sm:$0xff] %v292_v4 }
  0x5c   : >> { %v296_v6 = vld [vmem:[%s8714_s5 + $0x8c0] sm:$0xff]  ;;  %295 = vst [vmem:[%s8710_s4 + $0x450] sm:$0xff] %v294_v5 }
  0x5d   : >> { %v298_v7 = vld [vmem:[%s8714_s5 + $0x8e0] sm:$0xff]  ;;  %297 = vst [vmem:[%s8710_s4 + $0x460] sm:$0xff] %v296_v6 }
  0x5e   : >> { %v300_v8 = vld [vmem:[%s8714_s5 + $0x900] sm:$0xff]  ;;  %299 = vst [vmem:[%s8710_s4 + $0x470] sm:$0xff] %v298_v7 }
  0x5f   : >> { %v302_v9 = vld [vmem:[%s8714_s5 + $0x920] sm:$0xff]  ;;  %301 = vst [vmem:[%s8710_s4 + $0x480] sm:$0xff] %v300_v8 }
  0x60   : >> { %v304_v10 = vld [vmem:[%s8714_s5 + $0x940] sm:$0xff]  ;;  %303 = vst [vmem:[%s8710_s4 + $0x490] sm:$0xff] %v302_v9 }
  0x61   : >> { %v306_v11 = vld [vmem:[%s8714_s5 + $0x960] sm:$0xff]  ;;  %305 = vst [vmem:[%s8710_s4 + $0x4a0] sm:$0xff] %v304_v10 }
  0x62   : >> { %v308_v12 = vld [vmem:[%s8714_s5 + $0x980] sm:$0xff]  ;;  %307 = vst [vmem:[%s8710_s4 + $0x4b0] sm:$0xff] %v306_v11 }
  0x63   : >> { %v310_v13 = vld [vmem:[%s8714_s5 + $0x9a0] sm:$0xff]  ;;  %309 = vst [vmem:[%s8710_s4 + $0x4c0] sm:$0xff] %v308_v12 }
  0x64   : >> { %v312_v14 = vld [vmem:[%s8714_s5 + $0x9c0] sm:$0xff]  ;;  %311 = vst [vmem:[%s8710_s4 + $0x4d0] sm:$0xff] %v310_v13 }
  0x65   : >> { %v314_v15 = vld [vmem:[%s8714_s5 + $0x9e0] sm:$0xff]  ;;  %313 = vst [vmem:[%s8710_s4 + $0x4e0] sm:$0xff] %v312_v14 }
  0x66   : >> { %v316_v16 = vld [vmem:[%s8714_s5 + $0xa00] sm:$0xff]  ;;  %315 = vst [vmem:[%s8710_s4 + $0x4f0] sm:$0xff] %v314_v15 }
  0x67   : >> { %v318_v17 = vld [vmem:[%s8714_s5 + $0xa20] sm:$0xff]  ;;  %317 = vst [vmem:[%s8710_s4 + $0x500] sm:$0xff] %v316_v16 }
  0x68   : >> { %v320_v18 = vld [vmem:[%s8714_s5 + $0xa40] sm:$0xff]  ;;  %319 = vst [vmem:[%s8710_s4 + $0x510] sm:$0xff] %v318_v17 }
  0x69   : >> { %v322_v19 = vld [vmem:[%s8714_s5 + $0xa60] sm:$0xff]  ;;  %321 = vst [vmem:[%s8710_s4 + $0x520] sm:$0xff] %v320_v18 }
  0x6a   : >> { %v324_v20 = vld [vmem:[%s8714_s5 + $0xa80] sm:$0xff]  ;;  %323 = vst [vmem:[%s8710_s4 + $0x530] sm:$0xff] %v322_v19 }
  0x6b   : >> { %v326_v21 = vld [vmem:[%s8714_s5 + $0xaa0] sm:$0xff]  ;;  %325 = vst [vmem:[%s8710_s4 + $0x540] sm:$0xff] %v324_v20 }
  0x6c   : >> { %v328_v22 = vld [vmem:[%s8714_s5 + $0xac0] sm:$0xff]  ;;  %327 = vst [vmem:[%s8710_s4 + $0x550] sm:$0xff] %v326_v21 }
  0x6d   : >> { %v330_v23 = vld [vmem:[%s8714_s5 + $0xae0] sm:$0xff]  ;;  %329 = vst [vmem:[%s8710_s4 + $0x560] sm:$0xff] %v328_v22 }
  0x6e   : >> { %v332_v24 = vld [vmem:[%s8714_s5 + $0xb00] sm:$0xff]  ;;  %331 = vst [vmem:[%s8710_s4 + $0x570] sm:$0xff] %v330_v23 }
  0x6f   : >> { %v334_v25 = vld [vmem:[%s8714_s5 + $0xb20] sm:$0xff]  ;;  %333 = vst [vmem:[%s8710_s4 + $0x580] sm:$0xff] %v332_v24 }
  0x70   : >> { %v336_v26 = vld [vmem:[%s8714_s5 + $0xb40] sm:$0xff]  ;;  %335 = vst [vmem:[%s8710_s4 + $0x590] sm:$0xff] %v334_v25 }
  0x71   : >> { %v338_v27 = vld [vmem:[%s8714_s5 + $0xb60] sm:$0xff]  ;;  %337 = vst [vmem:[%s8710_s4 + $0x5a0] sm:$0xff] %v336_v26 }
  0x72   : >> { %v340_v28 = vld [vmem:[%s8714_s5 + $0xb80] sm:$0xff]  ;;  %339 = vst [vmem:[%s8710_s4 + $0x5b0] sm:$0xff] %v338_v27 }
  0x73   : >> { %v342_v29 = vld [vmem:[%s8714_s5 + $0xba0] sm:$0xff]  ;;  %341 = vst [vmem:[%s8710_s4 + $0x5c0] sm:$0xff] %v340_v28 }
  0x74   : >> { %v344_v30 = vld [vmem:[%s8714_s5 + $0xbc0] sm:$0xff]  ;;  %343 = vst [vmem:[%s8710_s4 + $0x5d0] sm:$0xff] %v342_v29 }
  0x75   : >> { %v346_v31 = vld [vmem:[%s8714_s5 + $0xbe0] sm:$0xff]  ;;  %345 = vst [vmem:[%s8710_s4 + $0x5e0] sm:$0xff] %v344_v30 }
  0x76   : >> { %v348_v32 = vld [vmem:[%s8714_s5 + $0xc00] sm:$0xff]  ;;  %347 = vst [vmem:[%s8710_s4 + $0x5f0] sm:$0xff] %v346_v31 }
  0x77   : >> { %v350_v33 = vld [vmem:[%s8714_s5 + $0xc20] sm:$0xff]  ;;  %349 = vst [vmem:[%s8710_s4 + $0x600] sm:$0xff] %v348_v32 }
  0x78   : >> { %v352_v34 = vld [vmem:[%s8714_s5 + $0xc40] sm:$0xff]  ;;  %351 = vst [vmem:[%s8710_s4 + $0x610] sm:$0xff] %v350_v33 }
  0x79   : >> { %v354_v35 = vld [vmem:[%s8714_s5 + $0xc60] sm:$0xff]  ;;  %353 = vst [vmem:[%s8710_s4 + $0x620] sm:$0xff] %v352_v34 }
  0x7a   : >> { %v356_v36 = vld [vmem:[%s8714_s5 + $0xc80] sm:$0xff]  ;;  %355 = vst [vmem:[%s8710_s4 + $0x630] sm:$0xff] %v354_v35 }
  0x7b   : >> { %v358_v37 = vld [vmem:[%s8714_s5 + $0xca0] sm:$0xff]  ;;  %357 = vst [vmem:[%s8710_s4 + $0x640] sm:$0xff] %v356_v36 }
  0x7c   : >> { %v360_v38 = vld [vmem:[%s8714_s5 + $0xcc0] sm:$0xff]  ;;  %359 = vst [vmem:[%s8710_s4 + $0x650] sm:$0xff] %v358_v37 }
  0x7d   : >> { %v362_v39 = vld [vmem:[%s8714_s5 + $0xce0] sm:$0xff]  ;;  %361 = vst [vmem:[%s8710_s4 + $0x660] sm:$0xff] %v360_v38 }
  0x7e   : >> { %v364_v40 = vld [vmem:[%s8714_s5 + $0xd00] sm:$0xff]  ;;  %363 = vst [vmem:[%s8710_s4 + $0x670] sm:$0xff] %v362_v39 }
  0x7f   : >> { %v366_v41 = vld [vmem:[%s8714_s5 + $0xd20] sm:$0xff]  ;;  %365 = vst [vmem:[%s8710_s4 + $0x680] sm:$0xff] %v364_v40 }
  0x80   : >> { %v368_v42 = vld [vmem:[%s8714_s5 + $0xd40] sm:$0xff]  ;;  %367 = vst [vmem:[%s8710_s4 + $0x690] sm:$0xff] %v366_v41 }
  0x81   : >> { %v370_v43 = vld [vmem:[%s8714_s5 + $0xd60] sm:$0xff]  ;;  %369 = vst [vmem:[%s8710_s4 + $0x6a0] sm:$0xff] %v368_v42 }
  0x82   : >> { %v372_v44 = vld [vmem:[%s8714_s5 + $0xd80] sm:$0xff]  ;;  %371 = vst [vmem:[%s8710_s4 + $0x6b0] sm:$0xff] %v370_v43 }
  0x83   : >> { %v374_v45 = vld [vmem:[%s8714_s5 + $0xda0] sm:$0xff]  ;;  %373 = vst [vmem:[%s8710_s4 + $0x6c0] sm:$0xff] %v372_v44 }
  0x84   : >> { %v376_v46 = vld [vmem:[%s8714_s5 + $0xdc0] sm:$0xff]  ;;  %375 = vst [vmem:[%s8710_s4 + $0x6d0] sm:$0xff] %v374_v45 }
  0x85   : >> { %v378_v47 = vld [vmem:[%s8714_s5 + $0xde0] sm:$0xff]  ;;  %377 = vst [vmem:[%s8710_s4 + $0x6e0] sm:$0xff] %v376_v46 }
  0x86   : >> { %v380_v48 = vld [vmem:[%s8714_s5 + $0xe00] sm:$0xff]  ;;  %379 = vst [vmem:[%s8710_s4 + $0x6f0] sm:$0xff] %v378_v47 }
  0x87   : >> { %v382_v49 = vld [vmem:[%s8714_s5 + $0xe20] sm:$0xff]  ;;  %381 = vst [vmem:[%s8710_s4 + $0x700] sm:$0xff] %v380_v48 }
  0x88   : >> { %v384_v50 = vld [vmem:[%s8714_s5 + $0xe40] sm:$0xff]  ;;  %383 = vst [vmem:[%s8710_s4 + $0x710] sm:$0xff] %v382_v49 }
  0x89   : >> { %v386_v51 = vld [vmem:[%s8714_s5 + $0xe60] sm:$0xff]  ;;  %385 = vst [vmem:[%s8710_s4 + $0x720] sm:$0xff] %v384_v50 }
  0x8a   : >> { %v388_v52 = vld [vmem:[%s8714_s5 + $0xe80] sm:$0xff]  ;;  %387 = vst [vmem:[%s8710_s4 + $0x730] sm:$0xff] %v386_v51 }
  0x8b   : >> { %v390_v53 = vld [vmem:[%s8714_s5 + $0xea0] sm:$0xff]  ;;  %389 = vst [vmem:[%s8710_s4 + $0x740] sm:$0xff] %v388_v52 }
  0x8c   : >> { %v392_v54 = vld [vmem:[%s8714_s5 + $0xec0] sm:$0xff]  ;;  %391 = vst [vmem:[%s8710_s4 + $0x750] sm:$0xff] %v390_v53 }
  0x8d   : >> { %v394_v55 = vld [vmem:[%s8714_s5 + $0xee0] sm:$0xff]  ;;  %393 = vst [vmem:[%s8710_s4 + $0x760] sm:$0xff] %v392_v54 }
  0x8e   : >> { %v396_v56 = vld [vmem:[%s8714_s5 + $0xf00] sm:$0xff]  ;;  %395 = vst [vmem:[%s8710_s4 + $0x770] sm:$0xff] %v394_v55 }
  0x8f   : >> { %v398_v57 = vld [vmem:[%s8714_s5 + $0xf20] sm:$0xff]  ;;  %397 = vst [vmem:[%s8710_s4 + $0x780] sm:$0xff] %v396_v56 }
  0x90   : >> { %v400_v58 = vld [vmem:[%s8714_s5 + $0xf40] sm:$0xff]  ;;  %399 = vst [vmem:[%s8710_s4 + $0x790] sm:$0xff] %v398_v57 }
  0x91   : >> { %v402_v59 = vld [vmem:[%s8714_s5 + $0xf60] sm:$0xff]  ;;  %401 = vst [vmem:[%s8710_s4 + $0x7a0] sm:$0xff] %v400_v58 }
  0x92   : >> { %v404_v60 = vld [vmem:[%s8714_s5 + $0xf80] sm:$0xff]  ;;  %403 = vst [vmem:[%s8710_s4 + $0x7b0] sm:$0xff] %v402_v59 }
  0x93   : >> { %v406_v61 = vld [vmem:[%s8714_s5 + $0xfa0] sm:$0xff]  ;;  %405 = vst [vmem:[%s8710_s4 + $0x7c0] sm:$0xff] %v404_v60 }
  0x94   : >> { %v408_v62 = vld [vmem:[%s8714_s5 + $0xfc0] sm:$0xff]  ;;  %407 = vst [vmem:[%s8710_s4 + $0x7d0] sm:$0xff] %v406_v61 }
  0x95   : >> { %v410_v63 = vld [vmem:[%s8714_s5 + $0xfe0] sm:$0xff]  ;;  %409 = vst [vmem:[%s8710_s4 + $0x7e0] sm:$0xff] %v408_v62 }
  0x96   : >> { %v412_v0 = vld [vmem:[%s8714_s5 + $0x1000] sm:$0xff]  ;;  %411 = vst [vmem:[%s8710_s4 + $0x7f0] sm:$0xff] %v410_v63 }
  0x97   : >> { %v414_v1 = vld [vmem:[%s8714_s5 + $0x1020] sm:$0xff]  ;;  %413 = vst [vmem:[%s8710_s4 + $0x800] sm:$0xff] %v412_v0 }
  0x98   : >> { %v416_v2 = vld [vmem:[%s8714_s5 + $0x1040] sm:$0xff]  ;;  %415 = vst [vmem:[%s8710_s4 + $0x810] sm:$0xff] %v414_v1 }
  0x99   : >> { %v418_v3 = vld [vmem:[%s8714_s5 + $0x1060] sm:$0xff]  ;;  %417 = vst [vmem:[%s8710_s4 + $0x820] sm:$0xff] %v416_v2 }
  0x9a   : >> { %v420_v4 = vld [vmem:[%s8714_s5 + $0x1080] sm:$0xff]  ;;  %419 = vst [vmem:[%s8710_s4 + $0x830] sm:$0xff] %v418_v3 }
  0x9b   : >> { %v422_v5 = vld [vmem:[%s8714_s5 + $0x10a0] sm:$0xff]  ;;  %421 = vst [vmem:[%s8710_s4 + $0x840] sm:$0xff] %v420_v4 }
  0x9c   : >> { %v424_v6 = vld [vmem:[%s8714_s5 + $0x10c0] sm:$0xff]  ;;  %423 = vst [vmem:[%s8710_s4 + $0x850] sm:$0xff] %v422_v5 }
  0x9d   : >> { %v426_v7 = vld [vmem:[%s8714_s5 + $0x10e0] sm:$0xff]  ;;  %425 = vst [vmem:[%s8710_s4 + $0x860] sm:$0xff] %v424_v6 }
  0x9e   : >> { %v428_v8 = vld [vmem:[%s8714_s5 + $0x1100] sm:$0xff]  ;;  %427 = vst [vmem:[%s8710_s4 + $0x870] sm:$0xff] %v426_v7 }
  0x9f   : >> { %v430_v9 = vld [vmem:[%s8714_s5 + $0x1120] sm:$0xff]  ;;  %429 = vst [vmem:[%s8710_s4 + $0x880] sm:$0xff] %v428_v8 }
  0xa0   : >> { %v432_v10 = vld [vmem:[%s8714_s5 + $0x1140] sm:$0xff]  ;;  %431 = vst [vmem:[%s8710_s4 + $0x890] sm:$0xff] %v430_v9 }
  0xa1   : >> { %v434_v11 = vld [vmem:[%s8714_s5 + $0x1160] sm:$0xff]  ;;  %433 = vst [vmem:[%s8710_s4 + $0x8a0] sm:$0xff] %v432_v10 }
  0xa2   : >> { %v436_v12 = vld [vmem:[%s8714_s5 + $0x1180] sm:$0xff]  ;;  %435 = vst [vmem:[%s8710_s4 + $0x8b0] sm:$0xff] %v434_v11 }
  0xa3   : >> { %v438_v13 = vld [vmem:[%s8714_s5 + $0x11a0] sm:$0xff]  ;;  %437 = vst [vmem:[%s8710_s4 + $0x8c0] sm:$0xff] %v436_v12 }
  0xa4   : >> { %v440_v14 = vld [vmem:[%s8714_s5 + $0x11c0] sm:$0xff]  ;;  %439 = vst [vmem:[%s8710_s4 + $0x8d0] sm:$0xff] %v438_v13 }
  0xa5   : >> { %v442_v15 = vld [vmem:[%s8714_s5 + $0x11e0] sm:$0xff]  ;;  %441 = vst [vmem:[%s8710_s4 + $0x8e0] sm:$0xff] %v440_v14 }
  0xa6   : >> { %v444_v16 = vld [vmem:[%s8714_s5 + $0x1200] sm:$0xff]  ;;  %443 = vst [vmem:[%s8710_s4 + $0x8f0] sm:$0xff] %v442_v15 }
  0xa7   : >> { %v446_v17 = vld [vmem:[%s8714_s5 + $0x1220] sm:$0xff]  ;;  %445 = vst [vmem:[%s8710_s4 + $0x900] sm:$0xff] %v444_v16 }
  0xa8   : >> { %v448_v18 = vld [vmem:[%s8714_s5 + $0x1240] sm:$0xff]  ;;  %447 = vst [vmem:[%s8710_s4 + $0x910] sm:$0xff] %v446_v17 }
  0xa9   : >> { %v450_v19 = vld [vmem:[%s8714_s5 + $0x1260] sm:$0xff]  ;;  %449 = vst [vmem:[%s8710_s4 + $0x920] sm:$0xff] %v448_v18 }
  0xaa   : >> { %v452_v20 = vld [vmem:[%s8714_s5 + $0x1280] sm:$0xff]  ;;  %451 = vst [vmem:[%s8710_s4 + $0x930] sm:$0xff] %v450_v19 }
  0xab   : >> { %v454_v21 = vld [vmem:[%s8714_s5 + $0x12a0] sm:$0xff]  ;;  %453 = vst [vmem:[%s8710_s4 + $0x940] sm:$0xff] %v452_v20 }
  0xac   : >> { %v456_v22 = vld [vmem:[%s8714_s5 + $0x12c0] sm:$0xff]  ;;  %455 = vst [vmem:[%s8710_s4 + $0x950] sm:$0xff] %v454_v21 }
  0xad   : >> { %v458_v23 = vld [vmem:[%s8714_s5 + $0x12e0] sm:$0xff]  ;;  %457 = vst [vmem:[%s8710_s4 + $0x960] sm:$0xff] %v456_v22 }
  0xae   : >> { %v460_v24 = vld [vmem:[%s8714_s5 + $0x1300] sm:$0xff]  ;;  %459 = vst [vmem:[%s8710_s4 + $0x970] sm:$0xff] %v458_v23 }
  0xaf   : >> { %v462_v25 = vld [vmem:[%s8714_s5 + $0x1320] sm:$0xff]  ;;  %461 = vst [vmem:[%s8710_s4 + $0x980] sm:$0xff] %v460_v24 }
  0xb0   : >> { %v464_v26 = vld [vmem:[%s8714_s5 + $0x1340] sm:$0xff]  ;;  %463 = vst [vmem:[%s8710_s4 + $0x990] sm:$0xff] %v462_v25 }
  0xb1   : >> { %v466_v27 = vld [vmem:[%s8714_s5 + $0x1360] sm:$0xff]  ;;  %465 = vst [vmem:[%s8710_s4 + $0x9a0] sm:$0xff] %v464_v26 }
  0xb2   : >> { %v468_v28 = vld [vmem:[%s8714_s5 + $0x1380] sm:$0xff]  ;;  %467 = vst [vmem:[%s8710_s4 + $0x9b0] sm:$0xff] %v466_v27 }
  0xb3   : >> { %v470_v29 = vld [vmem:[%s8714_s5 + $0x13a0] sm:$0xff]  ;;  %469 = vst [vmem:[%s8710_s4 + $0x9c0] sm:$0xff] %v468_v28 }
  0xb4   : >> { %v472_v30 = vld [vmem:[%s8714_s5 + $0x13c0] sm:$0xff]  ;;  %471 = vst [vmem:[%s8710_s4 + $0x9d0] sm:$0xff] %v470_v29 }
  0xb5   : >> { %v474_v31 = vld [vmem:[%s8714_s5 + $0x13e0] sm:$0xff]  ;;  %473 = vst [vmem:[%s8710_s4 + $0x9e0] sm:$0xff] %v472_v30 }
  0xb6   : >> { %v476_v32 = vld [vmem:[%s8714_s5 + $0x1400] sm:$0xff]  ;;  %475 = vst [vmem:[%s8710_s4 + $0x9f0] sm:$0xff] %v474_v31 }
  0xb7   : >> { %v478_v33 = vld [vmem:[%s8714_s5 + $0x1420] sm:$0xff]  ;;  %477 = vst [vmem:[%s8710_s4 + $0xa00] sm:$0xff] %v476_v32 }
  0xb8   : >> { %v480_v34 = vld [vmem:[%s8714_s5 + $0x1440] sm:$0xff]  ;;  %479 = vst [vmem:[%s8710_s4 + $0xa10] sm:$0xff] %v478_v33 }
  0xb9   : >> { %v482_v35 = vld [vmem:[%s8714_s5 + $0x1460] sm:$0xff]  ;;  %481 = vst [vmem:[%s8710_s4 + $0xa20] sm:$0xff] %v480_v34 }
  0xba   : >> { %v484_v36 = vld [vmem:[%s8714_s5 + $0x1480] sm:$0xff]  ;;  %483 = vst [vmem:[%s8710_s4 + $0xa30] sm:$0xff] %v482_v35 }
  0xbb   : >> { %v486_v37 = vld [vmem:[%s8714_s5 + $0x14a0] sm:$0xff]  ;;  %485 = vst [vmem:[%s8710_s4 + $0xa40] sm:$0xff] %v484_v36 }
  0xbc   : >> { %v488_v38 = vld [vmem:[%s8714_s5 + $0x14c0] sm:$0xff]  ;;  %487 = vst [vmem:[%s8710_s4 + $0xa50] sm:$0xff] %v486_v37 }
  0xbd   : >> { %v490_v39 = vld [vmem:[%s8714_s5 + $0x14e0] sm:$0xff]  ;;  %489 = vst [vmem:[%s8710_s4 + $0xa60] sm:$0xff] %v488_v38 }
  0xbe   : >> { %v492_v40 = vld [vmem:[%s8714_s5 + $0x1500] sm:$0xff]  ;;  %491 = vst [vmem:[%s8710_s4 + $0xa70] sm:$0xff] %v490_v39 }
  0xbf   : >> { %v494_v41 = vld [vmem:[%s8714_s5 + $0x1520] sm:$0xff]  ;;  %493 = vst [vmem:[%s8710_s4 + $0xa80] sm:$0xff] %v492_v40 }
  0xc0   : >> { %v496_v42 = vld [vmem:[%s8714_s5 + $0x1540] sm:$0xff]  ;;  %495 = vst [vmem:[%s8710_s4 + $0xa90] sm:$0xff] %v494_v41 }
  0xc1   : >> { %v498_v43 = vld [vmem:[%s8714_s5 + $0x1560] sm:$0xff]  ;;  %497 = vst [vmem:[%s8710_s4 + $0xaa0] sm:$0xff] %v496_v42 }
  0xc2   : >> { %v500_v44 = vld [vmem:[%s8714_s5 + $0x1580] sm:$0xff]  ;;  %499 = vst [vmem:[%s8710_s4 + $0xab0] sm:$0xff] %v498_v43 }
  0xc3   : >> { %v502_v45 = vld [vmem:[%s8714_s5 + $0x15a0] sm:$0xff]  ;;  %501 = vst [vmem:[%s8710_s4 + $0xac0] sm:$0xff] %v500_v44 }
  0xc4   : >> { %v504_v46 = vld [vmem:[%s8714_s5 + $0x15c0] sm:$0xff]  ;;  %503 = vst [vmem:[%s8710_s4 + $0xad0] sm:$0xff] %v502_v45 }
  0xc5   : >> { %v506_v47 = vld [vmem:[%s8714_s5 + $0x15e0] sm:$0xff]  ;;  %505 = vst [vmem:[%s8710_s4 + $0xae0] sm:$0xff] %v504_v46 }
  0xc6   : >> { %v508_v48 = vld [vmem:[%s8714_s5 + $0x1600] sm:$0xff]  ;;  %507 = vst [vmem:[%s8710_s4 + $0xaf0] sm:$0xff] %v506_v47 }
  0xc7   : >> { %v510_v49 = vld [vmem:[%s8714_s5 + $0x1620] sm:$0xff]  ;;  %509 = vst [vmem:[%s8710_s4 + $0xb00] sm:$0xff] %v508_v48 }
  0xc8   : >> { %v512_v50 = vld [vmem:[%s8714_s5 + $0x1640] sm:$0xff]  ;;  %511 = vst [vmem:[%s8710_s4 + $0xb10] sm:$0xff] %v510_v49 }
  0xc9   : >> { %v514_v51 = vld [vmem:[%s8714_s5 + $0x1660] sm:$0xff]  ;;  %513 = vst [vmem:[%s8710_s4 + $0xb20] sm:$0xff] %v512_v50 }
  0xca   : >> { %v516_v52 = vld [vmem:[%s8714_s5 + $0x1680] sm:$0xff]  ;;  %515 = vst [vmem:[%s8710_s4 + $0xb30] sm:$0xff] %v514_v51 }
  0xcb   : >> { %v518_v53 = vld [vmem:[%s8714_s5 + $0x16a0] sm:$0xff]  ;;  %517 = vst [vmem:[%s8710_s4 + $0xb40] sm:$0xff] %v516_v52 }
  0xcc   : >> { %v520_v54 = vld [vmem:[%s8714_s5 + $0x16c0] sm:$0xff]  ;;  %519 = vst [vmem:[%s8710_s4 + $0xb50] sm:$0xff] %v518_v53 }
  0xcd   : >> { %v522_v55 = vld [vmem:[%s8714_s5 + $0x16e0] sm:$0xff]  ;;  %521 = vst [vmem:[%s8710_s4 + $0xb60] sm:$0xff] %v520_v54 }
  0xce   : >> { %v524_v56 = vld [vmem:[%s8714_s5 + $0x1700] sm:$0xff]  ;;  %523 = vst [vmem:[%s8710_s4 + $0xb70] sm:$0xff] %v522_v55 }
  0xcf   : >> { %v526_v57 = vld [vmem:[%s8714_s5 + $0x1720] sm:$0xff]  ;;  %525 = vst [vmem:[%s8710_s4 + $0xb80] sm:$0xff] %v524_v56 }
  0xd0   : >> { %v528_v58 = vld [vmem:[%s8714_s5 + $0x1740] sm:$0xff]  ;;  %527 = vst [vmem:[%s8710_s4 + $0xb90] sm:$0xff] %v526_v57 }
  0xd1   : >> { %v530_v59 = vld [vmem:[%s8714_s5 + $0x1760] sm:$0xff]  ;;  %529 = vst [vmem:[%s8710_s4 + $0xba0] sm:$0xff] %v528_v58 }
  0xd2   : >> { %v532_v60 = vld [vmem:[%s8714_s5 + $0x1780] sm:$0xff]  ;;  %531 = vst [vmem:[%s8710_s4 + $0xbb0] sm:$0xff] %v530_v59 }
  0xd3   : >> { %v534_v61 = vld [vmem:[%s8714_s5 + $0x17a0] sm:$0xff]  ;;  %533 = vst [vmem:[%s8710_s4 + $0xbc0] sm:$0xff] %v532_v60 }
  0xd4   : >> { %v536_v62 = vld [vmem:[%s8714_s5 + $0x17c0] sm:$0xff]  ;;  %535 = vst [vmem:[%s8710_s4 + $0xbd0] sm:$0xff] %v534_v61 }
  0xd5   : >> { %v538_v63 = vld [vmem:[%s8714_s5 + $0x17e0] sm:$0xff]  ;;  %537 = vst [vmem:[%s8710_s4 + $0xbe0] sm:$0xff] %v536_v62 }
  0xd6   : >> { %v540_v0 = vld [vmem:[%s8714_s5 + $0x1800] sm:$0xff]  ;;  %539 = vst [vmem:[%s8710_s4 + $0xbf0] sm:$0xff] %v538_v63 }
  0xd7   : >> { %v542_v1 = vld [vmem:[%s8714_s5 + $0x1820] sm:$0xff]  ;;  %541 = vst [vmem:[%s8710_s4 + $0xc00] sm:$0xff] %v540_v0 }
  0xd8   : >> { %v544_v2 = vld [vmem:[%s8714_s5 + $0x1840] sm:$0xff]  ;;  %543 = vst [vmem:[%s8710_s4 + $0xc10] sm:$0xff] %v542_v1 }
  0xd9   : >> { %v546_v3 = vld [vmem:[%s8714_s5 + $0x1860] sm:$0xff]  ;;  %545 = vst [vmem:[%s8710_s4 + $0xc20] sm:$0xff] %v544_v2 }
  0xda   : >> { %v548_v4 = vld [vmem:[%s8714_s5 + $0x1880] sm:$0xff]  ;;  %547 = vst [vmem:[%s8710_s4 + $0xc30] sm:$0xff] %v546_v3 }
  0xdb   : >> { %v550_v5 = vld [vmem:[%s8714_s5 + $0x18a0] sm:$0xff]  ;;  %549 = vst [vmem:[%s8710_s4 + $0xc40] sm:$0xff] %v548_v4 }
  0xdc   : >> { %v552_v6 = vld [vmem:[%s8714_s5 + $0x18c0] sm:$0xff]  ;;  %551 = vst [vmem:[%s8710_s4 + $0xc50] sm:$0xff] %v550_v5 }
  0xdd   : >> { %v554_v7 = vld [vmem:[%s8714_s5 + $0x18e0] sm:$0xff]  ;;  %553 = vst [vmem:[%s8710_s4 + $0xc60] sm:$0xff] %v552_v6 }
  0xde   : >> { %v556_v8 = vld [vmem:[%s8714_s5 + $0x1900] sm:$0xff]  ;;  %555 = vst [vmem:[%s8710_s4 + $0xc70] sm:$0xff] %v554_v7 }
  0xdf   : >> { %v558_v9 = vld [vmem:[%s8714_s5 + $0x1920] sm:$0xff]  ;;  %557 = vst [vmem:[%s8710_s4 + $0xc80] sm:$0xff] %v556_v8 }
  0xe0   : >> { %v560_v10 = vld [vmem:[%s8714_s5 + $0x1940] sm:$0xff]  ;;  %559 = vst [vmem:[%s8710_s4 + $0xc90] sm:$0xff] %v558_v9 }
  0xe1   : >> { %v562_v11 = vld [vmem:[%s8714_s5 + $0x1960] sm:$0xff]  ;;  %561 = vst [vmem:[%s8710_s4 + $0xca0] sm:$0xff] %v560_v10 }
  0xe2   : >> { %v564_v12 = vld [vmem:[%s8714_s5 + $0x1980] sm:$0xff]  ;;  %563 = vst [vmem:[%s8710_s4 + $0xcb0] sm:$0xff] %v562_v11 }
  0xe3   : >> { %v566_v13 = vld [vmem:[%s8714_s5 + $0x19a0] sm:$0xff]  ;;  %565 = vst [vmem:[%s8710_s4 + $0xcc0] sm:$0xff] %v564_v12 }
  0xe4   : >> { %v568_v14 = vld [vmem:[%s8714_s5 + $0x19c0] sm:$0xff]  ;;  %567 = vst [vmem:[%s8710_s4 + $0xcd0] sm:$0xff] %v566_v13 }
  0xe5   : >> { %v570_v15 = vld [vmem:[%s8714_s5 + $0x19e0] sm:$0xff]  ;;  %569 = vst [vmem:[%s8710_s4 + $0xce0] sm:$0xff] %v568_v14 }
  0xe6   : >> { %v572_v16 = vld [vmem:[%s8714_s5 + $0x1a00] sm:$0xff]  ;;  %571 = vst [vmem:[%s8710_s4 + $0xcf0] sm:$0xff] %v570_v15 }
  0xe7   : >> { %v574_v17 = vld [vmem:[%s8714_s5 + $0x1a20] sm:$0xff]  ;;  %573 = vst [vmem:[%s8710_s4 + $0xd00] sm:$0xff] %v572_v16 }
  0xe8   : >> { %v576_v18 = vld [vmem:[%s8714_s5 + $0x1a40] sm:$0xff]  ;;  %575 = vst [vmem:[%s8710_s4 + $0xd10] sm:$0xff] %v574_v17 }
  0xe9   : >> { %v578_v19 = vld [vmem:[%s8714_s5 + $0x1a60] sm:$0xff]  ;;  %577 = vst [vmem:[%s8710_s4 + $0xd20] sm:$0xff] %v576_v18 }
  0xea   : >> { %v580_v20 = vld [vmem:[%s8714_s5 + $0x1a80] sm:$0xff]  ;;  %579 = vst [vmem:[%s8710_s4 + $0xd30] sm:$0xff] %v578_v19 }
  0xeb   : >> { %v582_v21 = vld [vmem:[%s8714_s5 + $0x1aa0] sm:$0xff]  ;;  %581 = vst [vmem:[%s8710_s4 + $0xd40] sm:$0xff] %v580_v20 }
  0xec   : >> { %v584_v22 = vld [vmem:[%s8714_s5 + $0x1ac0] sm:$0xff]  ;;  %583 = vst [vmem:[%s8710_s4 + $0xd50] sm:$0xff] %v582_v21 }
  0xed   : >> { %v586_v23 = vld [vmem:[%s8714_s5 + $0x1ae0] sm:$0xff]  ;;  %585 = vst [vmem:[%s8710_s4 + $0xd60] sm:$0xff] %v584_v22 }
  0xee   : >> { %v588_v24 = vld [vmem:[%s8714_s5 + $0x1b00] sm:$0xff]  ;;  %587 = vst [vmem:[%s8710_s4 + $0xd70] sm:$0xff] %v586_v23 }
  0xef   : >> { %v590_v25 = vld [vmem:[%s8714_s5 + $0x1b20] sm:$0xff]  ;;  %589 = vst [vmem:[%s8710_s4 + $0xd80] sm:$0xff] %v588_v24 }
  0xf0   : >> { %v592_v26 = vld [vmem:[%s8714_s5 + $0x1b40] sm:$0xff]  ;;  %591 = vst [vmem:[%s8710_s4 + $0xd90] sm:$0xff] %v590_v25 }
  0xf1   : >> { %v594_v27 = vld [vmem:[%s8714_s5 + $0x1b60] sm:$0xff]  ;;  %593 = vst [vmem:[%s8710_s4 + $0xda0] sm:$0xff] %v592_v26 }
  0xf2   : >> { %v596_v28 = vld [vmem:[%s8714_s5 + $0x1b80] sm:$0xff]  ;;  %595 = vst [vmem:[%s8710_s4 + $0xdb0] sm:$0xff] %v594_v27 }
  0xf3   : >> { %v598_v29 = vld [vmem:[%s8714_s5 + $0x1ba0] sm:$0xff]  ;;  %597 = vst [vmem:[%s8710_s4 + $0xdc0] sm:$0xff] %v596_v28 }
  0xf4   : >> { %v600_v30 = vld [vmem:[%s8714_s5 + $0x1bc0] sm:$0xff]  ;;  %599 = vst [vmem:[%s8710_s4 + $0xdd0] sm:$0xff] %v598_v29 }
  0xf5   : >> { %v602_v31 = vld [vmem:[%s8714_s5 + $0x1be0] sm:$0xff]  ;;  %601 = vst [vmem:[%s8710_s4 + $0xde0] sm:$0xff] %v600_v30 }
  0xf6   : >> { %v604_v32 = vld [vmem:[%s8714_s5 + $0x1c00] sm:$0xff]  ;;  %603 = vst [vmem:[%s8710_s4 + $0xdf0] sm:$0xff] %v602_v31 }
  0xf7   : >> { %v606_v33 = vld [vmem:[%s8714_s5 + $0x1c20] sm:$0xff]  ;;  %605 = vst [vmem:[%s8710_s4 + $0xe00] sm:$0xff] %v604_v32 }
  0xf8   : >> { %v608_v34 = vld [vmem:[%s8714_s5 + $0x1c40] sm:$0xff]  ;;  %607 = vst [vmem:[%s8710_s4 + $0xe10] sm:$0xff] %v606_v33 }
  0xf9   : >> { %v610_v35 = vld [vmem:[%s8714_s5 + $0x1c60] sm:$0xff]  ;;  %609 = vst [vmem:[%s8710_s4 + $0xe20] sm:$0xff] %v608_v34 }
  0xfa   : >> { %v612_v36 = vld [vmem:[%s8714_s5 + $0x1c80] sm:$0xff]  ;;  %611 = vst [vmem:[%s8710_s4 + $0xe30] sm:$0xff] %v610_v35 }
  0xfb   : >> { %v614_v37 = vld [vmem:[%s8714_s5 + $0x1ca0] sm:$0xff]  ;;  %613 = vst [vmem:[%s8710_s4 + $0xe40] sm:$0xff] %v612_v36 }
  0xfc   : >> { %v616_v38 = vld [vmem:[%s8714_s5 + $0x1cc0] sm:$0xff]  ;;  %615 = vst [vmem:[%s8710_s4 + $0xe50] sm:$0xff] %v614_v37 }
  0xfd   : >> { %v618_v39 = vld [vmem:[%s8714_s5 + $0x1ce0] sm:$0xff]  ;;  %617 = vst [vmem:[%s8710_s4 + $0xe60] sm:$0xff] %v616_v38 }
  0xfe   : >> { %v620_v40 = vld [vmem:[%s8714_s5 + $0x1d00] sm:$0xff]  ;;  %619 = vst [vmem:[%s8710_s4 + $0xe70] sm:$0xff] %v618_v39 }
  0xff   : >> { %v622_v41 = vld [vmem:[%s8714_s5 + $0x1d20] sm:$0xff]  ;;  %621 = vst [vmem:[%s8710_s4 + $0xe80] sm:$0xff] %v620_v40 }
 0x100   : >> { %v624_v42 = vld [vmem:[%s8714_s5 + $0x1d40] sm:$0xff]  ;;  %623 = vst [vmem:[%s8710_s4 + $0xe90] sm:$0xff] %v622_v41 }
 0x101   : >> { %v626_v43 = vld [vmem:[%s8714_s5 + $0x1d60] sm:$0xff]  ;;  %625 = vst [vmem:[%s8710_s4 + $0xea0] sm:$0xff] %v624_v42 }
 0x102   : >> { %v628_v44 = vld [vmem:[%s8714_s5 + $0x1d80] sm:$0xff]  ;;  %627 = vst [vmem:[%s8710_s4 + $0xeb0] sm:$0xff] %v626_v43 }
 0x103   : >> { %v630_v45 = vld [vmem:[%s8714_s5 + $0x1da0] sm:$0xff]  ;;  %629 = vst [vmem:[%s8710_s4 + $0xec0] sm:$0xff] %v628_v44 }
 0x104   : >> { %v632_v46 = vld [vmem:[%s8714_s5 + $0x1dc0] sm:$0xff]  ;;  %631 = vst [vmem:[%s8710_s4 + $0xed0] sm:$0xff] %v630_v45 }
 0x105   : >> { %v634_v47 = vld [vmem:[%s8714_s5 + $0x1de0] sm:$0xff]  ;;  %633 = vst [vmem:[%s8710_s4 + $0xee0] sm:$0xff] %v632_v46 }
 0x106   : >> { %v636_v48 = vld [vmem:[%s8714_s5 + $0x1e00] sm:$0xff]  ;;  %635 = vst [vmem:[%s8710_s4 + $0xef0] sm:$0xff] %v634_v47 }
 0x107   : >> { %v638_v49 = vld [vmem:[%s8714_s5 + $0x1e20] sm:$0xff]  ;;  %637 = vst [vmem:[%s8710_s4 + $0xf00] sm:$0xff] %v636_v48 }
 0x108   : >> { %v640_v50 = vld [vmem:[%s8714_s5 + $0x1e40] sm:$0xff]  ;;  %639 = vst [vmem:[%s8710_s4 + $0xf10] sm:$0xff] %v638_v49 }
 0x109   : >> { %v642_v51 = vld [vmem:[%s8714_s5 + $0x1e60] sm:$0xff]  ;;  %641 = vst [vmem:[%s8710_s4 + $0xf20] sm:$0xff] %v640_v50 }
 0x10a   : >> { %v644_v52 = vld [vmem:[%s8714_s5 + $0x1e80] sm:$0xff]  ;;  %643 = vst [vmem:[%s8710_s4 + $0xf30] sm:$0xff] %v642_v51 }
 0x10b   : >> { %v646_v53 = vld [vmem:[%s8714_s5 + $0x1ea0] sm:$0xff]  ;;  %645 = vst [vmem:[%s8710_s4 + $0xf40] sm:$0xff] %v644_v52 }
 0x10c   : >> { %v648_v54 = vld [vmem:[%s8714_s5 + $0x1ec0] sm:$0xff]  ;;  %647 = vst [vmem:[%s8710_s4 + $0xf50] sm:$0xff] %v646_v53 }
 0x10d   : >> { %v650_v55 = vld [vmem:[%s8714_s5 + $0x1ee0] sm:$0xff]  ;;  %649 = vst [vmem:[%s8710_s4 + $0xf60] sm:$0xff] %v648_v54 }
 0x10e   : >> { %v652_v56 = vld [vmem:[%s8714_s5 + $0x1f00] sm:$0xff]  ;;  %651 = vst [vmem:[%s8710_s4 + $0xf70] sm:$0xff] %v650_v55 }
 0x10f   : >> { %v654_v57 = vld [vmem:[%s8714_s5 + $0x1f20] sm:$0xff]  ;;  %653 = vst [vmem:[%s8710_s4 + $0xf80] sm:$0xff] %v652_v56 }
 0x110   : >> { %v656_v58 = vld [vmem:[%s8714_s5 + $0x1f40] sm:$0xff]  ;;  %655 = vst [vmem:[%s8710_s4 + $0xf90] sm:$0xff] %v654_v57 }
 0x111   : >> { %v658_v59 = vld [vmem:[%s8714_s5 + $0x1f60] sm:$0xff]  ;;  %657 = vst [vmem:[%s8710_s4 + $0xfa0] sm:$0xff] %v656_v58 }
 0x112   : >> { %v660_v60 = vld [vmem:[%s8714_s5 + $0x1f80] sm:$0xff]  ;;  %659 = vst [vmem:[%s8710_s4 + $0xfb0] sm:$0xff] %v658_v59  ;;  %151 = sbr.rel (!%p149_p11) target bundleno = 22 (0x16), region = 114 }
 0x113   : >> { %v662_v61 = vld [vmem:[%s8714_s5 + $0x1fa0] sm:$0xff]  ;;  %661 = vst [vmem:[%s8710_s4 + $0xfc0] sm:$0xff] %v660_v60 }
 0x114   : >> { %v664_v62 = vld [vmem:[%s8714_s5 + $0x1fc0] sm:$0xff]  ;;  %663 = vst [vmem:[%s8710_s4 + $0xfd0] sm:$0xff] %v662_v61 }
 0x115   : >> { %v666_v63 = vld [vmem:[%s8714_s5 + $0x1fe0] sm:$0xff]  ;;  %665 = vst [vmem:[%s8710_s4 + $0xfe0] sm:$0xff] %v664_v62  ;;  %s10582_s5 = smov %s9091_s10 }
 0x116   : >> { %667 = vst [vmem:[%s8710_s4 + $0xff0] sm:$0xff] %v666_v63  ;;  %s10581_s4 = smov %s9095_s11 }
 0x117 PF: > { %p5940_p12 = scmp.ge.s32.totalorder %s8706_s15, 1  ;;  %p1739_p13 = scmp.lt.s32.totalorder %s8706_s15, 3 }
 0x119   : > { %p1740_p0 = pnand %p5940_p12, %p1739_p13 }
 0x11a   : > { %s9365_s17 = sand.u32 (!%p1740_p0), 1, %s8698_s13   ;;  %s5943_s28 = sshll.u32 (!%p1740_p0), %s8765_s16, 2 }
 0x11b   : > { %1743 = sbr.rel (%p1740_p0) target bundleno = 979 (0x3d3), region = 65  ;;  %s5941_s19 = sshll.u32 (!%p1740_p0), %s9365_s17, 12 }
 0x11c   : > { %s9368_s20 = scalar_lea.vmem (!%p1740_p0), [#allocation2], %s5941_s19  ;;  %p9750_p1 = scmp.lt.s32.totalorder (!%p1740_p0), %s5943_s28, 7 }
 0x11d   : > { %s5942_s6 = sshll.u32 (!%p1740_p0), %s9365_s17, 3  ;;  %s8514_s7 = sshll.u32 (!%p1740_p0), %s8765_s16, 3 }
 0x11e   : > { %s5835_s10 = scalar_lea.hbm (!%p1740_p0), %s10576_s3, %s8514_s7  ;;  %s1772_s16 = scalar_lea.vmem (!%p1740_p0), [#allocation3], %s5942_s6 }
 0x11f   : > { %s5837_s11 = sshll.u32 (!%p1740_p0), %s1772_s16, 4  ;;  %s5839_s19 = sshll.u32 (!%p1740_p0), %s5835_s10, 4  ;;  %s5838_s11 = int_to_ptr.vmem [resolvable:$true] %s5837_s11  ;;  %s5840_s19 = int_to_ptr.hbm [resolvable:$true] %s5839_s19 }
 0x120   : > { %v6058_v0 = vld [vmem:[%s9368_s20 + $0xe0] sm:$0xf]  ;;  %v8032_v1 = vld [vmem:[%s9368_s20 + $0xec] sm:$0xf0]  ;;  %s10594_s28 = smov (!%p9750_p1, %s5943_s28), 7  ;;  %vm5815_vm7 = vcmask 1041408  }
 0x121   : > { %v6186_v2 = vld [vmem:[%s9368_s20 + $0x1e0] sm:$0xf]  ;;  %v6059_v3 = vor.u32 %v8032_v1, %v6058_v0  ;;  %v8064_v4 = vld [vmem:[%s9368_s20 + $0x1ec] sm:$0xf0]  ;;  %s9778_s5 = scalar_lea.vmem %s10575_s2, %s10594_s28  ;;  %s8642_s24 = sshra.s32 %s5840_s19, 4  ;;  %s8643_s24 = int_to_ptr.hbm [resolvable:$true] %s8642_s24 }
 0x122   : > { %v6314_v5 = vld [vmem:[%s9368_s20 + $0x2e0] sm:$0xf]  ;;  %v8096_v6 = vld [vmem:[%s9368_s20 + $0x2ec] sm:$0xf0]  ;;  %v6187_v7 = vor.u32 %v8064_v4, %v6186_v2  ;;  %s8644_s25 = scalar_lea.hbm %s8643_s24, 8  ;;  %s8648_s28 = scalar_lea.hbm %s10576_s3, 16 }
 0x123   : > { %v6315_v8 = vor.u32 %v8096_v6, %v6314_v5  ;;  %v6442_v9 = vld [vmem:[%s9368_s20 + $0x3e0] sm:$0xf]  ;;  %v8128_v10 = vld [vmem:[%s9368_s20 + $0x3ec] sm:$0xf0]  ;;  %4900 = vmatpush.bf16.msra.mxu0 %v6059_v3  ;;  %p8645_p2 = scmp.ne.s32.totalorder %s8643_s24, %s8644_s25  ;;  %p8649_p5 = scmp.lt.s32.totalorder %s8643_s24, %s10576_s3 }
 0x124   : > { %v6042_v11 = vld [vmem:[%s9368_s20 + $0xc0] sm:$0xf]  ;;  %v6443_v12 = vor.u32 %v8128_v10, %v6442_v9  ;;  %v8028_v13 = vld [vmem:[%s9368_s20 + $0xcc] sm:$0xf0]  ;;  %4913 = vmatpush.bf16.msra.mxu1 %v6187_v7  ;;  %p8650_p7 = scmp.lt.s32.totalorder %s8648_s28, %s8644_s25 }
 0x125   : > { %v6170_v14 = vld [vmem:[%s9368_s20 + $0x1c0] sm:$0xf]  ;;  %v8060_v15 = vld [vmem:[%s9368_s20 + $0x1cc] sm:$0xf0]  ;;  %4926 = vmatpush.bf16.msra.mxu2 %v6315_v8  ;;  %v6043_v16 = vor.u32 %v8028_v13, %v6042_v11  ;;  %p8646_p3 = pnand %p8645_p2, %p8783_p6 }
 0x126   : > { %v6171_v17 = vor.u32 %v8060_v15, %v6170_v14  ;;  %v6298_v18 = vld [vmem:[%s9368_s20 + $0x2c0] sm:$0xf]  ;;  %v8092_v19 = vld [vmem:[%s9368_s20 + $0x2cc] sm:$0xf0]  ;;  %4939 = vmatpush.bf16.msra.mxu3 %v6443_v12  ;;  %p8651_p10 = por %p8650_p7, %p8649_p5 }
 0x127   : > { %v6426_v20 = vld [vmem:[%s9368_s20 + $0x3c0] sm:$0xf]  ;;  %v6299_v21 = vor.u32 %v8092_v19, %v6298_v18  ;;  %v8124_v22 = vld [vmem:[%s9368_s20 + $0x3cc] sm:$0xf0]  ;;  %4901 = vmatpush.bf16.msra.mxu0 %v6043_v16  ;;  %p8647_p4 = pneg %p8646_p3 }
 0x128   : > { %v6026_v23 = vld [vmem:[%s9368_s20 + $0xa0] sm:$0xf]  ;;  %v8024_v24 = vld [vmem:[%s9368_s20 + $0xac] sm:$0xf0]  ;;  %v6427_v25 = vor.u32 %v8124_v22, %v6426_v20  ;;  %4914 = vmatpush.bf16.msra.mxu1 %v6171_v17 }
 0x129   : > { %v6154_v26 = vld [vmem:[%s9368_s20 + $0x1a0] sm:$0xf]  ;;  %v8056_v27 = vld [vmem:[%s9368_s20 + $0x1ac] sm:$0xf0]  ;;  %v6027_v29 = vor.u32 %v8024_v24, %v6026_v23  ;;  %4927 = vmatpush.bf16.msra.mxu2 %v6299_v21  ;;  %p8652_p11 = pnand %p8651_p10, %p8647_p4 }
 0x12a   : > { %v6282_v28 = vld [vmem:[%s9368_s20 + $0x2a0] sm:$0xf]  ;;  %v8088_v30 = vld [vmem:[%s9368_s20 + $0x2ac] sm:$0xf0]  ;;  %v6155_v33 = vor.u32 %v8056_v27, %v6154_v26  ;;  %4940 = vmatpush.bf16.msra.mxu3 %v6427_v25 }
 0x12b   : > { %v6410_v31 = vld [vmem:[%s9368_s20 + $0x3a0] sm:$0xf]  ;;  %v8120_v32 = vld [vmem:[%s9368_s20 + $0x3ac] sm:$0xf0]  ;;  %v6283_v34 = vor.u32 %v8088_v30, %v6282_v28  ;;  %4902 = vmatpush.bf16.msra.mxu0 %v6027_v29 }
 0x12c   : > { %v6010_v35 = vld [vmem:[%s9368_s20 + $0x80] sm:$0xf]  ;;  %v8020_v36 = vld [vmem:[%s9368_s20 + $0x8c] sm:$0xf0]  ;;  %v6411_v38 = vor.u32 %v8120_v32, %v6410_v31  ;;  %4915 = vmatpush.bf16.msra.mxu1 %v6155_v33 }
 0x12d   : > { %v6138_v37 = vld [vmem:[%s9368_s20 + $0x180] sm:$0xf]  ;;  %v8052_v39 = vld [vmem:[%s9368_s20 + $0x18c] sm:$0xf0]  ;;  %v6011_v44 = vor.u32 %v8020_v36, %v6010_v35  ;;  %4928 = vmatpush.bf16.msra.mxu2 %v6283_v34 }
 0x12e   : > { %v6266_v40 = vld [vmem:[%s9368_s20 + $0x280] sm:$0xf]  ;;  %v8084_v41 = vld [vmem:[%s9368_s20 + $0x28c] sm:$0xf0]  ;;  %v6139_v45 = vor.u32 %v8052_v39, %v6138_v37  ;;  %4941 = vmatpush.bf16.msra.mxu3 %v6411_v38 }
 0x12f   : > { %v6394_v42 = vld [vmem:[%s9368_s20 + $0x380] sm:$0xf]  ;;  %v8116_v43 = vld [vmem:[%s9368_s20 + $0x38c] sm:$0xf0]  ;;  %v6267_v46 = vor.u32 %v8084_v41, %v6266_v40  ;;  %4903 = vmatpush.bf16.msra.mxu0 %v6011_v44 }
 0x130   : > { %v5994_v47 = vld [vmem:[%s9368_s20 + $0x60] sm:$0xf]  ;;  %v8016_v48 = vld [vmem:[%s9368_s20 + $0x6c] sm:$0xf0]  ;;  %v6395_v50 = vor.u32 %v8116_v43, %v6394_v42  ;;  %4916 = vmatpush.bf16.msra.mxu1 %v6139_v45 }
 0x131   : > { %v6122_v49 = vld [vmem:[%s9368_s20 + $0x160] sm:$0xf]  ;;  %v8048_v51 = vld [vmem:[%s9368_s20 + $0x16c] sm:$0xf0]  ;;  %v5995_v56 = vor.u32 %v8016_v48, %v5994_v47  ;;  %4929 = vmatpush.bf16.msra.mxu2 %v6267_v46 }
 0x132   : > { %v6250_v52 = vld [vmem:[%s9368_s20 + $0x260] sm:$0xf]  ;;  %v8080_v53 = vld [vmem:[%s9368_s20 + $0x26c] sm:$0xf0]  ;;  %v6123_v57 = vor.u32 %v8048_v51, %v6122_v49  ;;  %4942 = vmatpush.bf16.msra.mxu3 %v6395_v50 }
 0x133   : > { %v6378_v54 = vld [vmem:[%s9368_s20 + $0x360] sm:$0xf]  ;;  %v8112_v55 = vld [vmem:[%s9368_s20 + $0x36c] sm:$0xf0]  ;;  %v6251_v58 = vor.u32 %v8080_v53, %v6250_v52  ;;  %4904 = vmatpush.bf16.msra.mxu0 %v5995_v56 }
 0x134   : > { %v5978_v59 = vld [vmem:[%s9368_s20 + $0x40] sm:$0xf]  ;;  %v8012_v60 = vld [vmem:[%s9368_s20 + $0x4c] sm:$0xf0]  ;;  %v6379_v62 = vor.u32 %v8112_v55, %v6378_v54  ;;  %4917 = vmatpush.bf16.msra.mxu1 %v6123_v57 }
 0x135   : > { %v6106_v61 = vld [vmem:[%s9368_s20 + $0x140] sm:$0xf]  ;;  %v8044_v63 = vld [vmem:[%s9368_s20 + $0x14c] sm:$0xf0]  ;;  %v5979_v4 = vor.u32 %v8012_v60, %v5978_v59  ;;  %4930 = vmatpush.bf16.msra.mxu2 %v6251_v58 }
 0x136   : > { %v6234_v0 = vld [vmem:[%s9368_s20 + $0x240] sm:$0xf]  ;;  %v8076_v1 = vld [vmem:[%s9368_s20 + $0x24c] sm:$0xf0]  ;;  %v6107_v5 = vor.u32 %v8044_v63, %v6106_v61  ;;  %4943 = vmatpush.bf16.msra.mxu3 %v6379_v62 }
 0x137   : > { %v6362_v2 = vld [vmem:[%s9368_s20 + $0x340] sm:$0xf]  ;;  %v8108_v3 = vld [vmem:[%s9368_s20 + $0x34c] sm:$0xf0]  ;;  %v6235_v6 = vor.u32 %v8076_v1, %v6234_v0  ;;  %4905 = vmatpush.bf16.msra.mxu0 %v5979_v4 }
 0x138   : > { %v5962_v7 = vld [vmem:[%s9368_s20 + $0x20] sm:$0xf]  ;;  %v8008_v8 = vld [vmem:[%s9368_s20 + $0x2c] sm:$0xf0]  ;;  %v6363_v10 = vor.u32 %v8108_v3, %v6362_v2  ;;  %4918 = vmatpush.bf16.msra.mxu1 %v6107_v5  ;;  %v1780_v2 = vld [vmem:[%s10573_s0] sm:$0xff] }
 0x139   : > { %v6090_v9 = vld [vmem:[%s9368_s20 + $0x120] sm:$0xf]  ;;  %v8040_v11 = vld [vmem:[%s9368_s20 + $0x12c] sm:$0xf0]  ;;  %v5963_v16 = vor.u32 %v8008_v8, %v5962_v7  ;;  %4931 = vmatpush.bf16.msra.mxu2 %v6235_v6  ;;  %2305 = vst [vmem:[#allocation1] ss:$9 sm:$0xff] %v1780_v2 }
 0x13a   : > { %v6218_v12 = vld [vmem:[%s9368_s20 + $0x220] sm:$0xf]  ;;  %v8072_v13 = vld [vmem:[%s9368_s20 + $0x22c] sm:$0xf0]  ;;  %v6091_v19 = vor.u32 %v8040_v11, %v6090_v9  ;;  %4944 = vmatpush.bf16.msra.mxu3 %v6363_v10 }
 0x13b   : > { %v6346_v14 = vld [vmem:[%s9368_s20 + $0x320] sm:$0xf]  ;;  %v8104_v15 = vld [vmem:[%s9368_s20 + $0x32c] sm:$0xf0]  ;;  %v6219_v20 = vor.u32 %v8072_v13, %v6218_v12  ;;  %4906 = vmatpush.bf16.msra.mxu0 %v5963_v16 }
 0x13c   : > { %v5946_v17 = vld [vmem:[%s9368_s20] sm:$0xf]  ;;  %v8004_v18 = vld [vmem:[%s9368_s20 + $0xc] sm:$0xf0]  ;;  %v6347_v24 = vor.u32 %v8104_v15, %v6346_v14  ;;  %4919 = vmatpush.bf16.msra.mxu1 %v6091_v19 }
 0x13d   : > { %v6074_v21 = vld [vmem:[%s9368_s20 + $0x100] sm:$0xf]  ;;  %v8036_v22 = vld [vmem:[%s9368_s20 + $0x10c] sm:$0xf0]  ;;  %v5947_v31 = vor.u32 %v8004_v18, %v5946_v17  ;;  %4932 = vmatpush.bf16.msra.mxu2 %v6219_v20 }
 0x13e   : > { %v6202_v23 = vld [vmem:[%s9368_s20 + $0x200] sm:$0xf]  ;;  %v8068_v25 = vld [vmem:[%s9368_s20 + $0x20c] sm:$0xf0]  ;;  %v6075_v35 = vor.u32 %v8036_v22, %v6074_v21  ;;  %4945 = vmatpush.bf16.msra.mxu3 %v6347_v24 }
 0x13f   : > { %v6330_v26 = vld [vmem:[%s9368_s20 + $0x300] sm:$0xf]  ;;  %v8100_v27 = vld [vmem:[%s9368_s20 + $0x30c] sm:$0xf0]  ;;  %v6203_v36 = vor.u32 %v8068_v25, %v6202_v23  ;;  %4907 = vmatpush.bf16.msra.mxu0 %v5947_v31 }
 0x140   : > { %v6570_v28 = vld [vmem:[%s9368_s20 + $0x4e0] sm:$0xf]  ;;  %v8160_v29 = vld [vmem:[%s9368_s20 + $0x4ec] sm:$0xf0]  ;;  %v6331_v39 = vor.u32 %v8100_v27, %v6330_v26  ;;  %4920 = vmatpush.bf16.msra.mxu1 %v6075_v35  ;;  %v9520_v2 = vld [vmem:[#allocation1 + $0x2d] sm:$0xff] }
 0x141   : > { %v6698_v30 = vld [vmem:[%s9368_s20 + $0x5e0] sm:$0xf]  ;;  %v8192_v32 = vld [vmem:[%s9368_s20 + $0x5ec] sm:$0xf0]  ;;  %v6571_v40 = vor.u32 %v8160_v29, %v6570_v28  ;;  %4933 = vmatpush.bf16.msra.mxu2 %v6203_v36  ;;  %v9480_v28 = vld [vmem:[#allocation1] sm:$0xff] }
 0x142   : > { %v6826_v33 = vld [vmem:[%s9368_s20 + $0x6e0] sm:$0xf]  ;;  %v8224_v34 = vld [vmem:[%s9368_s20 + $0x6ec] sm:$0xf0]  ;;  %v6699_v41 = vor.u32 %v8192_v32, %v6698_v30  ;;  %4946 = vmatpush.bf16.msra.mxu3 %v6331_v39  ;;  %4908 = vmatmul.bf16.vlgmr.msra.gmra.mxu0 %v9480_v28 }
 0x143   : > { %v6954_v37 = vld [vmem:[%s9368_s20 + $0x7e0] sm:$0xf]  ;;  %v8256_v38 = vld [vmem:[%s9368_s20 + $0x7ec] sm:$0xf0]  ;;  %v6827_v42 = vor.u32 %v8224_v34, %v6826_v33  ;;  %4952 = vmatpush.bf16.msrb.mxu0 %v6571_v40 }
 0x144   : > { %v6554_v43 = vld [vmem:[%s9368_s20 + $0x4c0] sm:$0xf]  ;;  %v8156_v44 = vld [vmem:[%s9368_s20 + $0x4cc] sm:$0xf0]  ;;  %v6955_v46 = vor.u32 %v8256_v38, %v6954_v37  ;;  %4965 = vmatpush.bf16.msrb.mxu1 %v6699_v41 }
 0x145   : > { %v6682_v45 = vld [vmem:[%s9368_s20 + $0x5c0] sm:$0xf]  ;;  %v8188_v47 = vld [vmem:[%s9368_s20 + $0x5cc] sm:$0xf0]  ;;  %v6555_v52 = vor.u32 %v8156_v44, %v6554_v43  ;;  %4978 = vmatpush.bf16.msrb.mxu2 %v6827_v42 }
 0x146   : > { %v6810_v48 = vld [vmem:[%s9368_s20 + $0x6c0] sm:$0xf]  ;;  %v8220_v49 = vld [vmem:[%s9368_s20 + $0x6cc] sm:$0xf0]  ;;  %v6683_v53 = vor.u32 %v8188_v47, %v6682_v45  ;;  %4991 = vmatpush.bf16.msrb.mxu3 %v6955_v46 }
 0x147   : > { %v6938_v50 = vld [vmem:[%s9368_s20 + $0x7c0] sm:$0xf]  ;;  %v8252_v51 = vld [vmem:[%s9368_s20 + $0x7cc] sm:$0xf0]  ;;  %v6811_v54 = vor.u32 %v8220_v49, %v6810_v48  ;;  %4953 = vmatpush.bf16.msrb.mxu0 %v6555_v52 }
 0x148   : > { %v6538_v55 = vld [vmem:[%s9368_s20 + $0x4a0] sm:$0xf]  ;;  %v8152_v56 = vld [vmem:[%s9368_s20 + $0x4ac] sm:$0xf0]  ;;  %v6939_v58 = vor.u32 %v8252_v51, %v6938_v50  ;;  %4966 = vmatpush.bf16.msrb.mxu1 %v6683_v53 }
 0x149   : > { %v6666_v57 = vld [vmem:[%s9368_s20 + $0x5a0] sm:$0xf]  ;;  %v8184_v59 = vld [vmem:[%s9368_s20 + $0x5ac] sm:$0xf0]  ;;  %v6539_v0 = vor.u32 %v8152_v56, %v6538_v55  ;;  %4979 = vmatpush.bf16.msrb.mxu2 %v6811_v54 }
 0x14a   : > { %v6794_v60 = vld [vmem:[%s9368_s20 + $0x6a0] sm:$0xf]  ;;  %v8216_v61 = vld [vmem:[%s9368_s20 + $0x6ac] sm:$0xf0]  ;;  %v6667_v3 = vor.u32 %v8184_v59, %v6666_v57  ;;  %4992 = vmatpush.bf16.msrb.mxu3 %v6939_v58 }
 0x14b   : > { %v6922_v62 = vld [vmem:[%s9368_s20 + $0x7a0] sm:$0xf]  ;;  %v8248_v63 = vld [vmem:[%s9368_s20 + $0x7ac] sm:$0xf0]  ;;  %v6795_v4 = vor.u32 %v8216_v61, %v6794_v60  ;;  %4954 = vmatpush.bf16.msrb.mxu0 %v6539_v0 }
 0x14c   : > { %v6522_v1 = vld [vmem:[%s9368_s20 + $0x480] sm:$0xf]  ;;  %v8148_v5 = vld [vmem:[%s9368_s20 + $0x48c] sm:$0xf0]  ;;  %v6923_v7 = vor.u32 %v8248_v63, %v6922_v62  ;;  %4967 = vmatpush.bf16.msrb.mxu1 %v6667_v3 }
 0x14d   : > { %v6650_v6 = vld [vmem:[%s9368_s20 + $0x580] sm:$0xf]  ;;  %v8180_v8 = vld [vmem:[%s9368_s20 + $0x58c] sm:$0xf0]  ;;  %v6523_v13 = vor.u32 %v8148_v5, %v6522_v1  ;;  %4980 = vmatpush.bf16.msrb.mxu2 %v6795_v4  ;;  %v9518_v1 = vld [vmem:[#allocation1 + $0x3f] sm:$0xff] }
 0x14e   : > { %v6778_v9 = vld [vmem:[%s9368_s20 + $0x680] sm:$0xf]  ;;  %v8212_v10 = vld [vmem:[%s9368_s20 + $0x68c] sm:$0xf0]  ;;  %v6651_v14 = vor.u32 %v8180_v8, %v6650_v6  ;;  %4993 = vmatpush.bf16.msrb.mxu3 %v6923_v7 }
 0x14f   : > { %v6906_v11 = vld [vmem:[%s9368_s20 + $0x780] sm:$0xf]  ;;  %v8244_v12 = vld [vmem:[%s9368_s20 + $0x78c] sm:$0xf0]  ;;  %v6779_v15 = vor.u32 %v8212_v10, %v6778_v9  ;;  %4955 = vmatpush.bf16.msrb.mxu0 %v6523_v13 }
 0x150   : > { %v6506_v16 = vld [vmem:[%s9368_s20 + $0x460] sm:$0xf]  ;;  %v8144_v17 = vld [vmem:[%s9368_s20 + $0x46c] sm:$0xf0]  ;;  %v6907_v19 = vor.u32 %v8244_v12, %v6906_v11  ;;  %4968 = vmatpush.bf16.msrb.mxu1 %v6651_v14 }
 0x151   : > { %v6634_v18 = vld [vmem:[%s9368_s20 + $0x560] sm:$0xf]  ;;  %v8176_v20 = vld [vmem:[%s9368_s20 + $0x56c] sm:$0xf0]  ;;  %v6507_v26 = vor.u32 %v8144_v17, %v6506_v16  ;;  %4981 = vmatpush.bf16.msrb.mxu2 %v6779_v15 }
 0x152   : > { %v6762_v21 = vld [vmem:[%s9368_s20 + $0x660] sm:$0xf]  ;;  %v8208_v22 = vld [vmem:[%s9368_s20 + $0x66c] sm:$0xf0]  ;;  %v6635_v30 = vor.u32 %v8176_v20, %v6634_v18  ;;  %4994 = vmatpush.bf16.msrb.mxu3 %v6907_v19 }
 0x153   : > { %v6890_v23 = vld [vmem:[%s9368_s20 + $0x760] sm:$0xf]  ;;  %v8240_v24 = vld [vmem:[%s9368_s20 + $0x76c] sm:$0xf0]  ;;  %v6763_v31 = vor.u32 %v8208_v22, %v6762_v21  ;;  %4956 = vmatpush.bf16.msrb.mxu0 %v6507_v26 }
 0x154   : > { %v6490_v25 = vld [vmem:[%s9368_s20 + $0x440] sm:$0xf]  ;;  %v9478_v27 = vld [vmem:[#allocation1 + $0x12] sm:$0xff]  ;;  %v9482_v29 = vld [vmem:[#allocation1 + $0x1b] sm:$0xff]  ;;  %v6891_v35 = vor.u32 %v8240_v24, %v6890_v23  ;;  %4969 = vmatpush.bf16.msrb.mxu1 %v6635_v30 }
 0x155   : > { %v8140_v32 = vld [vmem:[%s9368_s20 + $0x44c] sm:$0xf0]  ;;  %v6618_v33 = vld [vmem:[%s9368_s20 + $0x540] sm:$0xf]  ;;  %4934 = vmatmul.bf16.vlgmr.msra.gmra.mxu2 %v9478_v27  ;;  %4947 = vmatmul.bf16.vlgmr.msra.gmra.mxu3 %v9482_v29 }
 0x156   : > { %v9486_v34 = vld [vmem:[#allocation1 + $0x9] sm:$0xff]  ;;  %v8172_v36 = vld [vmem:[%s9368_s20 + $0x54c] sm:$0xf0]  ;;  %v6491_v41 = vor.u32 %v8140_v32, %v6490_v25  ;;  %4982 = vmatpush.bf16.msrb.mxu2 %v6763_v31  ;;  %4995 = vmatpush.bf16.msrb.mxu3 %v6891_v35 }
 0x157   : > { %v6746_v37 = vld [vmem:[%s9368_s20 + $0x640] sm:$0xf]  ;;  %v8204_v38 = vld [vmem:[%s9368_s20 + $0x64c] sm:$0xf0]  ;;  %4921 = vmatmul.bf16.vlgmr.msra.gmra.mxu1 %v9486_v34  ;;  %v6619_v43 = vor.u32 %v8172_v36, %v6618_v33 }
 0x158   : > { %v6874_v39 = vld [vmem:[%s9368_s20 + $0x740] sm:$0xf]  ;;  %v8236_v40 = vld [vmem:[%s9368_s20 + $0x74c] sm:$0xf0]  ;;  %v6747_v44 = vor.u32 %v8204_v38, %v6746_v37  ;;  %4957 = vmatpush.bf16.msrb.mxu0 %v6491_v41 }
 0x159   : > { %v6474_v42 = vld [vmem:[%s9368_s20 + $0x420] sm:$0xf]  ;;  %v8136_v45 = vld [vmem:[%s9368_s20 + $0x42c] sm:$0xf0]  ;;  %v6875_v48 = vor.u32 %v8236_v40, %v6874_v39  ;;  %4970 = vmatpush.bf16.msrb.mxu1 %v6619_v43 }
 0x15a   : > { %v6602_v46 = vld [vmem:[%s9368_s20 + $0x520] sm:$0xf]  ;;  %v8168_v47 = vld [vmem:[%s9368_s20 + $0x52c] sm:$0xf0]  ;;  %v6475_v55 = vor.u32 %v8136_v45, %v6474_v42  ;;  %4983 = vmatpush.bf16.msrb.mxu2 %v6747_v44 }
 0x15b   : > { %v6730_v49 = vld [vmem:[%s9368_s20 + $0x620] sm:$0xf]  ;;  %v8200_v50 = vld [vmem:[%s9368_s20 + $0x62c] sm:$0xf0]  ;;  %v6603_v62 = vor.u32 %v8168_v47, %v6602_v46  ;;  %4996 = vmatpush.bf16.msrb.mxu3 %v6875_v48 }
 0x15c   : > { %v6858_v51 = vld [vmem:[%s9368_s20 + $0x720] sm:$0xf]  ;;  %v8232_v52 = vld [vmem:[%s9368_s20 + $0x72c] sm:$0xf0]  ;;  %v6731_v63 = vor.u32 %v8200_v50, %v6730_v49  ;;  %4958 = vmatpush.bf16.msrb.mxu0 %v6475_v55 }
 0x15d   : > { %v6458_v53 = vld [vmem:[%s9368_s20 + $0x400] sm:$0xf]  ;;  %v8132_v54 = vld [vmem:[%s9368_s20 + $0x40c] sm:$0xf0]  ;;  %v6859_v3 = vor.u32 %v8232_v52, %v6858_v51  ;;  %4971 = vmatpush.bf16.msrb.mxu1 %v6603_v62 }
 0x15e   : > { %v6586_v56 = vld [vmem:[%s9368_s20 + $0x500] sm:$0xf]  ;;  %v8164_v57 = vld [vmem:[%s9368_s20 + $0x50c] sm:$0xf0]  ;;  %v6459_v9 = vor.u32 %v8132_v54, %v6458_v53  ;;  %4984 = vmatpush.bf16.msrb.mxu2 %v6731_v63 }
 0x15f   : > { %v6714_v58 = vld [vmem:[%s9368_s20 + $0x600] sm:$0xf]  ;;  %v8196_v59 = vld [vmem:[%s9368_s20 + $0x60c] sm:$0xf0]  ;;  %v6587_v13 = vor.u32 %v8164_v57, %v6586_v56  ;;  %4997 = vmatpush.bf16.msrb.mxu3 %v6859_v3 }
 0x160   : > { %v9511_v60 = vld [vmem:[#allocation1 + $0x36] sm:$0xff]  ;;  %v1781_v61 = vld [vmem:[%s10573_s0 + $0x8] sm:$0xff]  ;;  %v6715_v14 = vor.u32 %v8196_v59, %v6714_v58  ;;  %4959 = vmatpush.bf16.msrb.mxu0 %v6459_v9 }
 0x161   : > { %v9516_v0 = vld [vmem:[#allocation1 + $0x24] sm:$0xff]  ;;  %v8228_v5 = vld [vmem:[%s9368_s20 + $0x70c] sm:$0xf0]  ;;  %4972 = vmatpush.bf16.msrb.mxu1 %v6587_v13 }
 0x162   : > { %v6842_v4 = vld [vmem:[%s9368_s20 + $0x700] sm:$0xf]  ;;  %2315 = vst [vmem:[#allocation1] ss:$9 sm:$0xff] %v1781_v61  ;;  %v8288_v7 = vld [vmem:[%s9368_s20 + $0x8ec] sm:$0xf0]  ;;  %4985 = vmatpush.bf16.msrb.mxu2 %v6715_v14 }
 0x163   : > { %v7082_v6 = vld [vmem:[%s9368_s20 + $0x8e0] sm:$0xf]  ;;  %v8320_v10 = vld [vmem:[%s9368_s20 + $0x9ec] sm:$0xf0]  ;;  %v6843_v17 = vor.u32 %v8228_v5, %v6842_v4  ;;  %4960 = vmatmul.bf16.vlgmr.msrb.gmra.mxu0 %v9516_v0 }
 0x164   : > { %v7210_v8 = vld [vmem:[%s9368_s20 + $0x9e0] sm:$0xf]  ;;  %v8352_v12 = vld [vmem:[%s9368_s20 + $0xaec] sm:$0xf0]  ;;  %v7083_v18 = vor.u32 %v8288_v7, %v7082_v6 }
 0x165   : > { %v7338_v11 = vld [vmem:[%s9368_s20 + $0xae0] sm:$0xf]  ;;  %v8384_v16 = vld [vmem:[%s9368_s20 + $0xbec] sm:$0xf0]  ;;  %v7211_v19 = vor.u32 %v8320_v10, %v7210_v8  ;;  %4998 = vmatpush.bf16.msrb.mxu3 %v6843_v17  ;;  %4986 = vmatmul.bf16.vlgmr.msrb.gmra.mxu2 %v9511_v60 }
 0x166   : > { %v7466_v15 = vld [vmem:[%s9368_s20 + $0xbe0] sm:$0xf]  ;;  %v7339_v20 = vor.u32 %v8352_v12, %v7338_v11  ;;  %v8284_v22 = vld [vmem:[%s9368_s20 + $0x8cc] sm:$0xf0]  ;;  %5004 = vmatpush.bf16.msra.mxu0 %v7083_v18 }
 0x167   : > { %v7066_v21 = vld [vmem:[%s9368_s20 + $0x8c0] sm:$0xf]  ;;  %v7467_v24 = vor.u32 %v8384_v16, %v7466_v15  ;;  %v8316_v25 = vld [vmem:[%s9368_s20 + $0x9cc] sm:$0xf0]  ;;  %5017 = vmatpush.bf16.msra.mxu1 %v7211_v19 }
 0x168   : > { %v7194_v23 = vld [vmem:[%s9368_s20 + $0x9c0] sm:$0xf]  ;;  %v8348_v30 = vld [vmem:[%s9368_s20 + $0xacc] sm:$0xf0]  ;;  %v7067_v33 = vor.u32 %v8284_v22, %v7066_v21  ;;  %5030 = vmatpush.bf16.msra.mxu2 %v7339_v20  ;;  %4999 = vmatmul.bf16.vlgmr.msrb.gmra.mxu3 %v9518_v1 }
 0x169   : > { %v7322_v26 = vld [vmem:[%s9368_s20 + $0xac0] sm:$0xf]  ;;  %v8380_v32 = vld [vmem:[%s9368_s20 + $0xbcc] sm:$0xf0]  ;;  %v7195_v35 = vor.u32 %v8316_v25, %v7194_v23  ;;  %5043 = vmatpush.bf16.msra.mxu3 %v7467_v24  ;;  %4973 = vmatmul.bf16.vlgmr.msrb.gmra.mxu1 %v9520_v2 }
 0x16a   : > { %v7450_v31 = vld [vmem:[%s9368_s20 + $0xbc0] sm:$0xf]  ;;  %v7323_v36 = vor.u32 %v8348_v30, %v7322_v26  ;;  %v8280_v38 = vld [vmem:[%s9368_s20 + $0x8ac] sm:$0xf0]  ;;  %5005 = vmatpush.bf16.msra.mxu0 %v7067_v33 }
 0x16b   : > { %v7050_v37 = vld [vmem:[%s9368_s20 + $0x8a0] sm:$0xf]  ;;  %v7451_v40 = vor.u32 %v8380_v32, %v7450_v31  ;;  %v8312_v41 = vld [vmem:[%s9368_s20 + $0x9ac] sm:$0xf0]  ;;  %5018 = vmatpush.bf16.msra.mxu1 %v7195_v35 }
 0x16c   : > { %v7178_v39 = vld [vmem:[%s9368_s20 + $0x9a0] sm:$0xf]  ;;  %v8344_v43 = vld [vmem:[%s9368_s20 + $0xaac] sm:$0xf0]  ;;  %v7051_v46 = vor.u32 %v8280_v38, %v7050_v37  ;;  %5031 = vmatpush.bf16.msra.mxu2 %v7323_v36 }
 0x16d   : > { %v7306_v42 = vld [vmem:[%s9368_s20 + $0xaa0] sm:$0xf]  ;;  %v8376_v45 = vld [vmem:[%s9368_s20 + $0xbac] sm:$0xf0]  ;;  %v7179_v47 = vor.u32 %v8312_v41, %v7178_v39  ;;  %5044 = vmatpush.bf16.msra.mxu3 %v7451_v40 }
 0x16e   : > { %v7434_v44 = vld [vmem:[%s9368_s20 + $0xba0] sm:$0xf]  ;;  %v7307_v48 = vor.u32 %v8344_v43, %v7306_v42  ;;  %v8276_v50 = vld [vmem:[%s9368_s20 + $0x88c] sm:$0xf0]  ;;  %5006 = vmatpush.bf16.msra.mxu0 %v7051_v46 }
 0x16f   : > { %v7034_v49 = vld [vmem:[%s9368_s20 + $0x880] sm:$0xf]  ;;  %v7435_v52 = vor.u32 %v8376_v45, %v7434_v44  ;;  %v8308_v53 = vld [vmem:[%s9368_s20 + $0x98c] sm:$0xf0]  ;;  %5019 = vmatpush.bf16.msra.mxu1 %v7179_v47 }
 0x170   : > { %v7162_v51 = vld [vmem:[%s9368_s20 + $0x980] sm:$0xf]  ;;  %v8340_v55 = vld [vmem:[%s9368_s20 + $0xa8c] sm:$0xf0]  ;;  %v7035_v58 = vor.u32 %v8276_v50, %v7034_v49  ;;  %5032 = vmatpush.bf16.msra.mxu2 %v7307_v48 }
 0x171   : > { %v7290_v54 = vld [vmem:[%s9368_s20 + $0xa80] sm:$0xf]  ;;  %v8372_v57 = vld [vmem:[%s9368_s20 + $0xb8c] sm:$0xf0]  ;;  %v7163_v59 = vor.u32 %v8308_v53, %v7162_v51  ;;  %5045 = vmatpush.bf16.msra.mxu3 %v7435_v52 }
 0x172   : > { %v7418_v56 = vld [vmem:[%s9368_s20 + $0xb80] sm:$0xf]  ;;  %v7291_v61 = vor.u32 %v8340_v55, %v7290_v54  ;;  %v8272_v63 = vld [vmem:[%s9368_s20 + $0x86c] sm:$0xf0]  ;;  %5007 = vmatpush.bf16.msra.mxu0 %v7035_v58 }
 0x173   : > { %v7018_v62 = vld [vmem:[%s9368_s20 + $0x860] sm:$0xf]  ;;  %v7419_v4 = vor.u32 %v8372_v57, %v7418_v56  ;;  %v8304_v5 = vld [vmem:[%s9368_s20 + $0x96c] sm:$0xf0]  ;;  %5020 = vmatpush.bf16.msra.mxu1 %v7163_v59 }
 0x174   : > { %v7146_v3 = vld [vmem:[%s9368_s20 + $0x960] sm:$0xf]  ;;  %v8336_v7 = vld [vmem:[%s9368_s20 + $0xa6c] sm:$0xf0]  ;;  %v7019_v10 = vor.u32 %v8272_v63, %v7018_v62  ;;  %5033 = vmatpush.bf16.msra.mxu2 %v7291_v61 }
 0x175   : > { %v7274_v6 = vld [vmem:[%s9368_s20 + $0xa60] sm:$0xf]  ;;  %v8368_v9 = vld [vmem:[%s9368_s20 + $0xb6c] sm:$0xf0]  ;;  %v7147_v11 = vor.u32 %v8304_v5, %v7146_v3  ;;  %5046 = vmatpush.bf16.msra.mxu3 %v7419_v4 }
 0x176   : > { %v7402_v8 = vld [vmem:[%s9368_s20 + $0xb60] sm:$0xf]  ;;  %v7275_v12 = vor.u32 %v8336_v7, %v7274_v6  ;;  %v8268_v14 = vld [vmem:[%s9368_s20 + $0x84c] sm:$0xf0]  ;;  %5008 = vmatpush.bf16.msra.mxu0 %v7019_v10 }
 0x177   : > { %v7002_v13 = vld [vmem:[%s9368_s20 + $0x840] sm:$0xf]  ;;  %v7403_v16 = vor.u32 %v8368_v9, %v7402_v8  ;;  %v8300_v17 = vld [vmem:[%s9368_s20 + $0x94c] sm:$0xf0]  ;;  %5021 = vmatpush.bf16.msra.mxu1 %v7147_v11 }
 0x178   : > { %v7130_v15 = vld [vmem:[%s9368_s20 + $0x940] sm:$0xf]  ;;  %v8332_v19 = vld [vmem:[%s9368_s20 + $0xa4c] sm:$0xf0]  ;;  %v7003_v22 = vor.u32 %v8268_v14, %v7002_v13  ;;  %5034 = vmatpush.bf16.msra.mxu2 %v7275_v12  ;;  %v2316_v12 = vld [vmem:[#allocation1] sm:$0xff] }
 0x179   : > { %v7258_v18 = vld [vmem:[%s9368_s20 + $0xa40] sm:$0xf]  ;;  %v8364_v21 = vld [vmem:[%s9368_s20 + $0xb4c] sm:$0xf0]  ;;  %v7131_v23 = vor.u32 %v8300_v17, %v7130_v15  ;;  %5047 = vmatpush.bf16.msra.mxu3 %v7403_v16 }
 0x17a   : > { %v7386_v20 = vld [vmem:[%s9368_s20 + $0xb40] sm:$0xf]  ;;  %v7259_v24 = vor.u32 %v8332_v19, %v7258_v18  ;;  %v8264_v26 = vld [vmem:[%s9368_s20 + $0x82c] sm:$0xf0]  ;;  %5009 = vmatpush.bf16.msra.mxu0 %v7003_v22 }
 0x17b   : > { %v6986_v25 = vld [vmem:[%s9368_s20 + $0x820] sm:$0xf]  ;;  %v7387_v31 = vor.u32 %v8364_v21, %v7386_v20  ;;  %v8296_v32 = vld [vmem:[%s9368_s20 + $0x92c] sm:$0xf0]  ;;  %5022 = vmatpush.bf16.msra.mxu1 %v7131_v23 }
 0x17c   : > { %v7114_v30 = vld [vmem:[%s9368_s20 + $0x920] sm:$0xf]  ;;  %v8328_v35 = vld [vmem:[%s9368_s20 + $0xa2c] sm:$0xf0]  ;;  %v6987_v38 = vor.u32 %v8264_v26, %v6986_v25  ;;  %5035 = vmatpush.bf16.msra.mxu2 %v7259_v24 }
 0x17d   : > { %v7242_v33 = vld [vmem:[%s9368_s20 + $0xa20] sm:$0xf]  ;;  %v8360_v37 = vld [vmem:[%s9368_s20 + $0xb2c] sm:$0xf0]  ;;  %v7115_v41 = vor.u32 %v8296_v32, %v7114_v30  ;;  %5048 = vmatpush.bf16.msra.mxu3 %v7387_v31 }
 0x17e   : > { %v7370_v36 = vld [vmem:[%s9368_s20 + $0xb20] sm:$0xf]  ;;  %v8260_v40 = vld [vmem:[%s9368_s20 + $0x80c] sm:$0xf0]  ;;  %v7243_v42 = vor.u32 %v8328_v35, %v7242_v33  ;;  %5010 = vmatpush.bf16.msra.mxu0 %v6987_v38 }
 0x17f   : > { %v6970_v39 = vld [vmem:[%s9368_s20 + $0x800] sm:$0xf]  ;;  %v8292_v44 = vld [vmem:[%s9368_s20 + $0x90c] sm:$0xf0]  ;;  %v7371_v46 = vor.u32 %v8360_v37, %v7370_v36  ;;  %5023 = vmatpush.bf16.msra.mxu1 %v7115_v41 }
 0x180   : > { %v7098_v43 = vld [vmem:[%s9368_s20 + $0x900] sm:$0xf]  ;;  %v8324_v47 = vld [vmem:[%s9368_s20 + $0xa0c] sm:$0xf0]  ;;  %v6971_v53 = vor.u32 %v8260_v40, %v6970_v39  ;;  %5036 = vmatpush.bf16.msra.mxu2 %v7243_v42 }
 0x181   : > { %v7226_v45 = vld [vmem:[%s9368_s20 + $0xa00] sm:$0xf]  ;;  %v8356_v49 = vld [vmem:[%s9368_s20 + $0xb0c] sm:$0xf0]  ;;  %v7099_v57 = vor.u32 %v8292_v44, %v7098_v43  ;;  %5049 = vmatpush.bf16.msra.mxu3 %v7371_v46 }
 0x182   : > { %v7354_v48 = vld [vmem:[%s9368_s20 + $0xb00] sm:$0xf]  ;;  %v8416_v51 = vld [vmem:[%s9368_s20 + $0xcec] sm:$0xf0]  ;;  %v7227_v58 = vor.u32 %v8324_v47, %v7226_v45  ;;  %5011 = vmatpush.bf16.msra.mxu0 %v6971_v53 }
 0x183   : > { %v7594_v50 = vld [vmem:[%s9368_s20 + $0xce0] sm:$0xf]  ;;  %v8448_v54 = vld [vmem:[%s9368_s20 + $0xdec] sm:$0xf0]  ;;  %v7355_v62 = vor.u32 %v8356_v49, %v7354_v48  ;;  %5024 = vmatpush.bf16.msra.mxu1 %v7099_v57 }
 0x184   : > { %v7722_v52 = vld [vmem:[%s9368_s20 + $0xde0] sm:$0xf]  ;;  %v8480_v56 = vld [vmem:[%s9368_s20 + $0xeec] sm:$0xf0]  ;;  %v7595_v63 = vor.u32 %v8416_v51, %v7594_v50  ;;  %5037 = vmatpush.bf16.msra.mxu2 %v7227_v58 }
 0x185   : > { %v7850_v55 = vld [vmem:[%s9368_s20 + $0xee0] sm:$0xf]  ;;  %v8512_v61 = vld [vmem:[%s9368_s20 + $0xfec] sm:$0xf0]  ;;  %v7723_v3 = vor.u32 %v8448_v54, %v7722_v52  ;;  %5050 = vmatpush.bf16.msra.mxu3 %v7355_v62  ;;  %5012 = vmatmul.bf16.vlgmr.msra.gmra.mxu0 %v2316_v12 }
 0x186   : > { %v7978_v59 = vld [vmem:[%s9368_s20 + $0xfe0] sm:$0xf]  ;;  %v7851_v4 = vor.u32 %v8480_v56, %v7850_v55  ;;  %v8412_v6 = vld [vmem:[%s9368_s20 + $0xccc] sm:$0xf0]  ;;  %5056 = vmatpush.bf16.msrb.mxu0 %v7595_v63 }
 0x187   : > { %v7578_v5 = vld [vmem:[%s9368_s20 + $0xcc0] sm:$0xf]  ;;  %v7979_v8 = vor.u32 %v8512_v61, %v7978_v59  ;;  %v8444_v9 = vld [vmem:[%s9368_s20 + $0xdcc] sm:$0xf0]  ;;  %5069 = vmatpush.bf16.msrb.mxu1 %v7723_v3 }
 0x188   : > { %v7706_v7 = vld [vmem:[%s9368_s20 + $0xdc0] sm:$0xf]  ;;  %v8476_v11 = vld [vmem:[%s9368_s20 + $0xecc] sm:$0xf0]  ;;  %v7579_v18 = vor.u32 %v8412_v6, %v7578_v5  ;;  %5082 = vmatpush.bf16.msrb.mxu2 %v7851_v4 }
 0x189   : > { %v7834_v10 = vld [vmem:[%s9368_s20 + $0xec0] sm:$0xf]  ;;  %v8508_v14 = vld [vmem:[%s9368_s20 + $0xfcc] sm:$0xf0]  ;;  %v7707_v19 = vor.u32 %v8444_v9, %v7706_v7  ;;  %5095 = vmatpush.bf16.msrb.mxu3 %v7979_v8 }
 0x18a   : > { %v7962_v13 = vld [vmem:[%s9368_s20 + $0xfc0] sm:$0xf]  ;;  %v2318_v15 = vld [vmem:[#allocation1 + $0x12] sm:$0xff]  ;;  %v2319_v17 = vld [vmem:[#allocation1 + $0x1b] sm:$0xff]  ;;  %v7835_v20 = vor.u32 %v8476_v11, %v7834_v10  ;;  %5057 = vmatpush.bf16.msrb.mxu0 %v7579_v18 }
 0x18b   : > { %v2317_v16 = vld [vmem:[#allocation1 + $0x9] sm:$0xff]  ;;  %v8408_v22 = vld [vmem:[%s9368_s20 + $0xcac] sm:$0xf0]  ;;  %v7963_v24 = vor.u32 %v8508_v14, %v7962_v13  ;;  %5038 = vmatmul.bf16.vlgmr.msra.gmra.mxu2 %v2318_v15  ;;  %5051 = vmatmul.bf16.vlgmr.msra.gmra.mxu3 %v2319_v17 }
 0x18c   : > { %v7562_v21 = vld [vmem:[%s9368_s20 + $0xca0] sm:$0xf]  ;;  %v8440_v25 = vld [vmem:[%s9368_s20 + $0xdac] sm:$0xf0]  ;;  %5025 = vmatmul.bf16.vlgmr.msra.gmra.mxu1 %v2317_v16  ;;  %5083 = vmatpush.bf16.msrb.mxu2 %v7835_v20 }
 0x18d   : > { %v7690_v23 = vld [vmem:[%s9368_s20 + $0xda0] sm:$0xf]  ;;  %v8472_v30 = vld [vmem:[%s9368_s20 + $0xeac] sm:$0xf0]  ;;  %v7563_v33 = vor.u32 %v8408_v22, %v7562_v21  ;;  %5070 = vmatpush.bf16.msrb.mxu1 %v7707_v19  ;;  %5096 = vmatpush.bf16.msrb.mxu3 %v7963_v24 }
 0x18e   : > { %v7818_v26 = vld [vmem:[%s9368_s20 + $0xea0] sm:$0xf]  ;;  %v8504_v32 = vld [vmem:[%s9368_s20 + $0xfac] sm:$0xf0]  ;;  %v7691_v35 = vor.u32 %v8440_v25, %v7690_v23 }
 0x18f   : > { %v7946_v31 = vld [vmem:[%s9368_s20 + $0xfa0] sm:$0xf]  ;;  %v7819_v36 = vor.u32 %v8472_v30, %v7818_v26  ;;  %v8404_v38 = vld [vmem:[%s9368_s20 + $0xc8c] sm:$0xf0]  ;;  %5058 = vmatpush.bf16.msrb.mxu0 %v7563_v33 }
 0x190   : > { %v7546_v37 = vld [vmem:[%s9368_s20 + $0xc80] sm:$0xf]  ;;  %v7947_v40 = vor.u32 %v8504_v32, %v7946_v31  ;;  %v8436_v41 = vld [vmem:[%s9368_s20 + $0xd8c] sm:$0xf0] }
 0x191   : > { %v7674_v39 = vld [vmem:[%s9368_s20 + $0xd80] sm:$0xf]  ;;  %v8468_v43 = vld [vmem:[%s9368_s20 + $0xe8c] sm:$0xf0]  ;;  %v7547_v46 = vor.u32 %v8404_v38, %v7546_v37  ;;  %5071 = vmatpush.bf16.msrb.mxu1 %v7691_v35  ;;  %5084 = vmatpush.bf16.msrb.mxu2 %v7819_v36  ;;  %v8030_v38 = vld [vmem:[%s9368_s20 + $0xe4] sm:$0xf] }
 0x192   : > { %v7802_v42 = vld [vmem:[%s9368_s20 + $0xe80] sm:$0xf]  ;;  %v8500_v45 = vld [vmem:[%s9368_s20 + $0xf8c] sm:$0xf0]  ;;  %v7675_v47 = vor.u32 %v8436_v41, %v7674_v39  ;;  %5097 = vmatpush.bf16.msrb.mxu3 %v7947_v40  ;;  %v6060_v39 = vld [vmem:[%s9368_s20 + $0xf0] sm:$0xf0] }
 0x193   : > { %v7930_v44 = vld [vmem:[%s9368_s20 + $0xf80] sm:$0xf]  ;;  %v7803_v48 = vor.u32 %v8468_v43, %v7802_v42  ;;  %v8400_v50 = vld [vmem:[%s9368_s20 + $0xc6c] sm:$0xf0]  ;;  %5059 = vmatpush.bf16.msrb.mxu0 %v7547_v46  ;;  %v8062_v40 = vld [vmem:[%s9368_s20 + $0x1e4] sm:$0xf] }
 0x194   : > { %v7530_v49 = vld [vmem:[%s9368_s20 + $0xc60] sm:$0xf]  ;;  %v7931_v52 = vor.u32 %v8500_v45, %v7930_v44  ;;  %v8432_v53 = vld [vmem:[%s9368_s20 + $0xd6c] sm:$0xf0]  ;;  %v6188_v42 = vld [vmem:[%s9368_s20 + $0x1f0] sm:$0xf0] }
 0x195   : > { %v7658_v51 = vld [vmem:[%s9368_s20 + $0xd60] sm:$0xf]  ;;  %v8464_v55 = vld [vmem:[%s9368_s20 + $0xe6c] sm:$0xf0]  ;;  %v7531_v58 = vor.u32 %v8400_v50, %v7530_v49  ;;  %5072 = vmatpush.bf16.msrb.mxu1 %v7675_v47  ;;  %5085 = vmatpush.bf16.msrb.mxu2 %v7803_v48  ;;  %v8094_v43 = vld [vmem:[%s9368_s20 + $0x2e4] sm:$0xf]  ;;  %v6063_v50 = vor.u32 %v8030_v38, %v6060_v39 }
 0x196   : > { %v7786_v54 = vld [vmem:[%s9368_s20 + $0xe60] sm:$0xf]  ;;  %v8496_v57 = vld [vmem:[%s9368_s20 + $0xf6c] sm:$0xf0]  ;;  %v7659_v59 = vor.u32 %v8432_v53, %v7658_v51  ;;  %5098 = vmatpush.bf16.msrb.mxu3 %v7931_v52  ;;  %v6316_v44 = vld [vmem:[%s9368_s20 + $0x2f0] sm:$0xf0]  ;;  %v6191_v51 = vor.u32 %v8062_v40, %v6188_v42 }
 0x197   : > { %v7914_v56 = vld [vmem:[%s9368_s20 + $0xf60] sm:$0xf]  ;;  %v7787_v61 = vor.u32 %v8464_v55, %v7786_v54  ;;  %v8396_v63 = vld [vmem:[%s9368_s20 + $0xc4c] sm:$0xf0]  ;;  %5060 = vmatpush.bf16.msrb.mxu0 %v7531_v58  ;;  %v8126_v47 = vld [vmem:[%s9368_s20 + $0x3e4] sm:$0xf]  ;;  %v6319_v52 = vor.u32 %v8094_v43, %v6316_v44 }
 0x198   : > { %v7514_v62 = vld [vmem:[%s9368_s20 + $0xc40] sm:$0xf]  ;;  %v7915_v4 = vor.u32 %v8496_v57, %v7914_v56  ;;  %v8428_v5 = vld [vmem:[%s9368_s20 + $0xd4c] sm:$0xf0]  ;;  %v6444_v48 = vld [vmem:[%s9368_s20 + $0x3f0] sm:$0xf0] }
 0x199   : > { %v7642_v3 = vld [vmem:[%s9368_s20 + $0xd40] sm:$0xf]  ;;  %v8460_v7 = vld [vmem:[%s9368_s20 + $0xe4c] sm:$0xf0]  ;;  %v7515_v10 = vor.u32 %v8396_v63, %v7514_v62  ;;  %5073 = vmatpush.bf16.msrb.mxu1 %v7659_v59  ;;  %5086 = vmatpush.bf16.msrb.mxu2 %v7787_v61  ;;  %v8026_v53 = vld [vmem:[%s9368_s20 + $0xc4] sm:$0xf]  ;;  %v6447_v56 = vor.u32 %v8126_v47, %v6444_v48 }
 0x19a   : > { %v7770_v6 = vld [vmem:[%s9368_s20 + $0xe40] sm:$0xf]  ;;  %v8492_v9 = vld [vmem:[%s9368_s20 + $0xf4c] sm:$0xf0]  ;;  %v7643_v11 = vor.u32 %v8428_v5, %v7642_v3  ;;  %5099 = vmatpush.bf16.msrb.mxu3 %v7915_v4  ;;  %v6044_v54 = vld [vmem:[%s9368_s20 + $0xd0] sm:$0xf0] }
 0x19b   : > { %v7898_v8 = vld [vmem:[%s9368_s20 + $0xf40] sm:$0xf]  ;;  %v7771_v12 = vor.u32 %v8460_v7, %v7770_v6  ;;  %v8392_v14 = vld [vmem:[%s9368_s20 + $0xc2c] sm:$0xf0]  ;;  %5061 = vmatpush.bf16.msrb.mxu0 %v7515_v10  ;;  %v8058_v55 = vld [vmem:[%s9368_s20 + $0x1c4] sm:$0xf]  ;;  %v6047_v6 = vor.u32 %v8026_v53, %v6044_v54 }
 0x19c   : > { %v7498_v13 = vld [vmem:[%s9368_s20 + $0xc20] sm:$0xf]  ;;  %v7899_v16 = vor.u32 %v8492_v9, %v7898_v8  ;;  %v8424_v17 = vld [vmem:[%s9368_s20 + $0xd2c] sm:$0xf0]  ;;  %v6172_v57 = vld [vmem:[%s9368_s20 + $0x1d0] sm:$0xf0] }
 0x19d   : > { %v7626_v15 = vld [vmem:[%s9368_s20 + $0xd20] sm:$0xf]  ;;  %v8456_v19 = vld [vmem:[%s9368_s20 + $0xe2c] sm:$0xf0]  ;;  %v7499_v22 = vor.u32 %v8392_v14, %v7498_v13  ;;  %5074 = vmatpush.bf16.msrb.mxu1 %v7643_v11  ;;  %5087 = vmatpush.bf16.msrb.mxu2 %v7771_v12  ;;  %v8090_v58 = vld [vmem:[%s9368_s20 + $0x2c4] sm:$0xf]  ;;  %v6175_v7 = vor.u32 %v8058_v55, %v6172_v57 }
 0x19e   : > { %v7754_v18 = vld [vmem:[%s9368_s20 + $0xe20] sm:$0xf]  ;;  %v8488_v21 = vld [vmem:[%s9368_s20 + $0xf2c] sm:$0xf0]  ;;  %v7627_v25 = vor.u32 %v8424_v17, %v7626_v15  ;;  %5100 = vmatpush.bf16.msrb.mxu3 %v7899_v16  ;;  %v6300_v59 = vld [vmem:[%s9368_s20 + $0x2d0] sm:$0xf0] }
 0x19f   : > { %v7882_v20 = vld [vmem:[%s9368_s20 + $0xf20] sm:$0xf]  ;;  %v8388_v24 = vld [vmem:[%s9368_s20 + $0xc0c] sm:$0xf0]  ;;  %v7755_v26 = vor.u32 %v8456_v19, %v7754_v18  ;;  %5062 = vmatpush.bf16.msrb.mxu0 %v7499_v22  ;;  %v8122_v62 = vld [vmem:[%s9368_s20 + $0x3c4] sm:$0xf]  ;;  %v6303_v8 = vor.u32 %v8090_v58, %v6300_v59 }
 0x1a0   : > { %v7482_v23 = vld [vmem:[%s9368_s20 + $0xc00] sm:$0xf]  ;;  %v8420_v31 = vld [vmem:[%s9368_s20 + $0xd0c] sm:$0xf0]  ;;  %v7883_v33 = vor.u32 %v8488_v21, %v7882_v20  ;;  %v6428_v63 = vld [vmem:[%s9368_s20 + $0x3d0] sm:$0xf0] }
 0x1a1   : > { %v7610_v30 = vld [vmem:[%s9368_s20 + $0xd00] sm:$0xf]  ;;  %v8452_v35 = vld [vmem:[%s9368_s20 + $0xe0c] sm:$0xf0]  ;;  %v7483_v41 = vor.u32 %v8388_v24, %v7482_v23  ;;  %5075 = vmatpush.bf16.msrb.mxu1 %v7627_v25  ;;  %5088 = vmatpush.bf16.msrb.mxu2 %v7755_v26  ;;  %v2321_v4 = vld [vmem:[#allocation1 + $0x2d] sm:$0xff]  ;;  %v6431_v12 = vor.u32 %v8122_v62, %v6428_v63 }
 0x1a2   : > { %v7738_v32 = vld [vmem:[%s9368_s20 + $0xe00] sm:$0xf]  ;;  %v8484_v37 = vld [vmem:[%s9368_s20 + $0xf0c] sm:$0xf0]  ;;  %v7611_v45 = vor.u32 %v8420_v31, %v7610_v30  ;;  %5101 = vmatpush.bf16.msrb.mxu3 %v7883_v33  ;;  %v2323_v5 = vld [vmem:[#allocation1 + $0x3f] sm:$0xff] }
 0x1a3   : > { %v7866_v36 = vld [vmem:[%s9368_s20 + $0xf00] sm:$0xf]  ;;  %v7739_v46 = vor.u32 %v8452_v35, %v7738_v32  ;;  %5063 = vmatpush.bf16.msrb.mxu0 %v7483_v41  ;;  %v2322_v3 = vld [vmem:[#allocation1 + $0x36] sm:$0xff]  ;;  %v8022_v9 = vld [vmem:[%s9368_s20 + $0xa4] sm:$0xf] }
 0x1a4   : > { %v7867_v49 = vor.u32 %v8484_v37, %v7866_v36  ;;  %v2320_v61 = vld [vmem:[#allocation1 + $0x24] sm:$0xff]  ;;  %v6028_v10 = vld [vmem:[%s9368_s20 + $0xb0] sm:$0xf0]  ;;  %v8054_v11 = vld [vmem:[%s9368_s20 + $0x1a4] sm:$0xf] }
 0x1a5   : > { %5076 = vmatpush.bf16.msrb.mxu1 %v7611_v45  ;;  %5089 = vmatpush.bf16.msrb.mxu2 %v7739_v46  ;;  %v6156_v13 = vld [vmem:[%s9368_s20 + $0x1b0] sm:$0xf0]  ;;  %v8086_v14 = vld [vmem:[%s9368_s20 + $0x2a4] sm:$0xf]  ;;  %v6031_v18 = vor.u32 %v8022_v9, %v6028_v10 }
 0x1a6   : > { %5102 = vmatpush.bf16.msrb.mxu3 %v7867_v49  ;;  %5064 = vmatmul.bf16.vlgmr.msrb.gmra.mxu0 %v2320_v61  ;;  %v6284_v15 = vld [vmem:[%s9368_s20 + $0x2b0] sm:$0xf0]  ;;  %v8118_v16 = vld [vmem:[%s9368_s20 + $0x3a4] sm:$0xf]  ;;  %v6159_v19 = vor.u32 %v8054_v11, %v6156_v13 }
 0x1a7   : > { %5108 = vmatpush.bf16.msra.mxu0 %v6063_v50  ;;  %v6412_v17 = vld [vmem:[%s9368_s20 + $0x3b0] sm:$0xf0]  ;;  %v6287_v20 = vor.u32 %v8086_v14, %v6284_v15  ;;  %v8018_v21 = vld [vmem:[%s9368_s20 + $0x84] sm:$0xf] }
 0x1a8   : > { %5090 = vmatmul.bf16.vlgmr.msrb.gmra.mxu2 %v2322_v3  ;;  %5077 = vmatmul.bf16.vlgmr.msrb.gmra.mxu1 %v2321_v4  ;;  %v6012_v22 = vld [vmem:[%s9368_s20 + $0x90] sm:$0xf0]  ;;  %v8050_v23 = vld [vmem:[%s9368_s20 + $0x184] sm:$0xf]  ;;  %v6415_v24 = vor.u32 %v8118_v16, %v6412_v17 }
 0x1a9   : > { %5121 = vmatpush.bf16.msra.mxu1 %v6191_v51  ;;  %5134 = vmatpush.bf16.msra.mxu2 %v6319_v52  ;;  %v6140_v25 = vld [vmem:[%s9368_s20 + $0x190] sm:$0xf0]  ;;  %v8082_v26 = vld [vmem:[%s9368_s20 + $0x284] sm:$0xf]  ;;  %v6015_v33 = vor.u32 %v8018_v21, %v6012_v22 }
 0x1aa   : > { %5147 = vmatpush.bf16.msra.mxu3 %v6447_v56  ;;  %v6268_v30 = vld [vmem:[%s9368_s20 + $0x290] sm:$0xf0]  ;;  %v8114_v31 = vld [vmem:[%s9368_s20 + $0x384] sm:$0xf]  ;;  %v6143_v35 = vor.u32 %v8050_v23, %v6140_v25 }
 0x1ab   : > { %5103 = vmatmul.bf16.vlgmr.msrb.gmra.mxu3 %v2323_v5  ;;  %5109 = vmatpush.bf16.msra.mxu0 %v6047_v6  ;;  %v6396_v32 = vld [vmem:[%s9368_s20 + $0x390] sm:$0xf0]  ;;  %v6271_v36 = vor.u32 %v8082_v26, %v6268_v30  ;;  %v8014_v37 = vld [vmem:[%s9368_s20 + $0x64] sm:$0xf] }
 0x1ac   : > { %v5996_v38 = vld [vmem:[%s9368_s20 + $0x70] sm:$0xf0]  ;;  %v8046_v39 = vld [vmem:[%s9368_s20 + $0x164] sm:$0xf]  ;;  %v6399_v40 = vor.u32 %v8114_v31, %v6396_v32 }
 0x1ad   : > { %5122 = vmatpush.bf16.msra.mxu1 %v6175_v7  ;;  %5135 = vmatpush.bf16.msra.mxu2 %v6303_v8  ;;  %v6124_v41 = vld [vmem:[%s9368_s20 + $0x170] sm:$0xf0]  ;;  %v8078_v42 = vld [vmem:[%s9368_s20 + $0x264] sm:$0xf]  ;;  %v5999_v46 = vor.u32 %v8014_v37, %v5996_v38 }
 0x1ae   : > { %5148 = vmatpush.bf16.msra.mxu3 %v6431_v12  ;;  %v6252_v43 = vld [vmem:[%s9368_s20 + $0x270] sm:$0xf0]  ;;  %v8110_v44 = vld [vmem:[%s9368_s20 + $0x364] sm:$0xf]  ;;  %v6127_v47 = vor.u32 %v8046_v39, %v6124_v41 }
 0x1af   : > { %5110 = vmatpush.bf16.msra.mxu0 %v6031_v18  ;;  %v6380_v45 = vld [vmem:[%s9368_s20 + $0x370] sm:$0xf0]  ;;  %v6255_v48 = vor.u32 %v8078_v42, %v6252_v43  ;;  %v8010_v49 = vld [vmem:[%s9368_s20 + $0x44] sm:$0xf] }
 0x1b0   : > { %v5980_v50 = vld [vmem:[%s9368_s20 + $0x50] sm:$0xf0]  ;;  %v8042_v51 = vld [vmem:[%s9368_s20 + $0x144] sm:$0xf]  ;;  %v6383_v52 = vor.u32 %v8110_v44, %v6380_v45 }
 0x1b1   : > { %5123 = vmatpush.bf16.msra.mxu1 %v6159_v19  ;;  %5136 = vmatpush.bf16.msra.mxu2 %v6287_v20  ;;  %v6108_v53 = vld [vmem:[%s9368_s20 + $0x150] sm:$0xf0]  ;;  %v8074_v54 = vld [vmem:[%s9368_s20 + $0x244] sm:$0xf]  ;;  %v5983_v58 = vor.u32 %v8010_v49, %v5980_v50 }
 0x1b2   : > { %5149 = vmatpush.bf16.msra.mxu3 %v6415_v24  ;;  %v6236_v55 = vld [vmem:[%s9368_s20 + $0x250] sm:$0xf0]  ;;  %v8106_v56 = vld [vmem:[%s9368_s20 + $0x344] sm:$0xf]  ;;  %v6111_v59 = vor.u32 %v8042_v51, %v6108_v53 }
 0x1b3   : > { %5111 = vmatpush.bf16.msra.mxu0 %v6015_v33  ;;  %v6364_v57 = vld [vmem:[%s9368_s20 + $0x350] sm:$0xf0]  ;;  %v6239_v61 = vor.u32 %v8074_v54, %v6236_v55  ;;  %v8006_v62 = vld [vmem:[%s9368_s20 + $0x24] sm:$0xf] }
 0x1b4   : > { %v5964_v63 = vld [vmem:[%s9368_s20 + $0x30] sm:$0xf0]  ;;  %v8038_v3 = vld [vmem:[%s9368_s20 + $0x124] sm:$0xf]  ;;  %v6367_v4 = vor.u32 %v8106_v56, %v6364_v57 }
 0x1b5   : > { %5124 = vmatpush.bf16.msra.mxu1 %v6143_v35  ;;  %5137 = vmatpush.bf16.msra.mxu2 %v6271_v36  ;;  %v6092_v5 = vld [vmem:[%s9368_s20 + $0x130] sm:$0xf0]  ;;  %v8070_v6 = vld [vmem:[%s9368_s20 + $0x224] sm:$0xf]  ;;  %v5967_v10 = vor.u32 %v8006_v62, %v5964_v63 }
 0x1b6   : > { %5150 = vmatpush.bf16.msra.mxu3 %v6399_v40  ;;  %v6220_v7 = vld [vmem:[%s9368_s20 + $0x230] sm:$0xf0]  ;;  %v8102_v8 = vld [vmem:[%s9368_s20 + $0x324] sm:$0xf]  ;;  %v6095_v13 = vor.u32 %v8038_v3, %v6092_v5 }
 0x1b7   : > { %5112 = vmatpush.bf16.msra.mxu0 %v5999_v46  ;;  %v6348_v9 = vld [vmem:[%s9368_s20 + $0x330] sm:$0xf0]  ;;  %v8002_v11 = vld [vmem:[%s9368_s20 + $0x4] sm:$0xf]  ;;  %v6223_v14 = vor.u32 %v8070_v6, %v6220_v7 }
 0x1b8   : > { %v5948_v12 = vld [vmem:[%s9368_s20 + $0x10] sm:$0xf0]  ;;  %v8034_v15 = vld [vmem:[%s9368_s20 + $0x104] sm:$0xf]  ;;  %v6351_v18 = vor.u32 %v8102_v8, %v6348_v9 }
 0x1b9   : > { %5125 = vmatpush.bf16.msra.mxu1 %v6127_v47  ;;  %5138 = vmatpush.bf16.msra.mxu2 %v6255_v48  ;;  %v6076_v16 = vld [vmem:[%s9368_s20 + $0x110] sm:$0xf0]  ;;  %v8066_v17 = vld [vmem:[%s9368_s20 + $0x204] sm:$0xf]  ;;  %v5951_v25 = vor.u32 %v8002_v11, %v5948_v12 }
 0x1ba   : > { %5151 = vmatpush.bf16.msra.mxu3 %v6383_v52  ;;  %v6204_v19 = vld [vmem:[%s9368_s20 + $0x210] sm:$0xf0]  ;;  %v8098_v20 = vld [vmem:[%s9368_s20 + $0x304] sm:$0xf]  ;;  %v6079_v32 = vor.u32 %v8034_v15, %v6076_v16 }
 0x1bb   : > { %5113 = vmatpush.bf16.msra.mxu0 %v5983_v58  ;;  %v6332_v21 = vld [vmem:[%s9368_s20 + $0x310] sm:$0xf0]  ;;  %v8158_v22 = vld [vmem:[%s9368_s20 + $0x4e4] sm:$0xf]  ;;  %v6207_v33 = vor.u32 %v8066_v17, %v6204_v19 }
 0x1bc   : > { %v6572_v23 = vld [vmem:[%s9368_s20 + $0x4f0] sm:$0xf0]  ;;  %v8190_v24 = vld [vmem:[%s9368_s20 + $0x5e4] sm:$0xf]  ;;  %v6335_v37 = vor.u32 %v8098_v20, %v6332_v21 }
 0x1bd   : > { %5126 = vmatpush.bf16.msra.mxu1 %v6111_v59  ;;  %5139 = vmatpush.bf16.msra.mxu2 %v6239_v61  ;;  %v6700_v26 = vld [vmem:[%s9368_s20 + $0x5f0] sm:$0xf0]  ;;  %v8222_v30 = vld [vmem:[%s9368_s20 + $0x6e4] sm:$0xf]  ;;  %v6575_v38 = vor.u32 %v8158_v22, %v6572_v23 }
 0x1be   : > { %5152 = vmatpush.bf16.msra.mxu3 %v6367_v4  ;;  %v6828_v31 = vld [vmem:[%s9368_s20 + $0x6f0] sm:$0xf0]  ;;  %v8254_v35 = vld [vmem:[%s9368_s20 + $0x7e4] sm:$0xf]  ;;  %v6703_v39 = vor.u32 %v8190_v24, %v6700_v26 }
 0x1bf   : > { %5114 = vmatpush.bf16.msra.mxu0 %v5967_v10  ;;  %v6956_v36 = vld [vmem:[%s9368_s20 + $0x7f0] sm:$0xf0]  ;;  %v6831_v40 = vor.u32 %v8222_v30, %v6828_v31  ;;  %v8154_v41 = vld [vmem:[%s9368_s20 + $0x4c4] sm:$0xf] }
 0x1c0   : > { %v6556_v42 = vld [vmem:[%s9368_s20 + $0x4d0] sm:$0xf0]  ;;  %v8186_v43 = vld [vmem:[%s9368_s20 + $0x5c4] sm:$0xf]  ;;  %v6959_v44 = vor.u32 %v8254_v35, %v6956_v36 }
 0x1c1   : > { %5127 = vmatpush.bf16.msra.mxu1 %v6095_v13  ;;  %5140 = vmatpush.bf16.msra.mxu2 %v6223_v14  ;;  %v6684_v45 = vld [vmem:[%s9368_s20 + $0x5d0] sm:$0xf0]  ;;  %v8218_v46 = vld [vmem:[%s9368_s20 + $0x6c4] sm:$0xf]  ;;  %v6559_v50 = vor.u32 %v8154_v41, %v6556_v42 }
 0x1c2   : > { %5153 = vmatpush.bf16.msra.mxu3 %v6351_v18  ;;  %v6812_v47 = vld [vmem:[%s9368_s20 + $0x6d0] sm:$0xf0]  ;;  %v8250_v48 = vld [vmem:[%s9368_s20 + $0x7c4] sm:$0xf]  ;;  %v6687_v51 = vor.u32 %v8186_v43, %v6684_v45 }
 0x1c3   : > { %5115 = vmatpush.bf16.msra.mxu0 %v5951_v25  ;;  %v6940_v49 = vld [vmem:[%s9368_s20 + $0x7d0] sm:$0xf0]  ;;  %v6815_v52 = vor.u32 %v8218_v46, %v6812_v47  ;;  %v8150_v53 = vld [vmem:[%s9368_s20 + $0x4a4] sm:$0xf] }
 0x1c4   : > { %v6540_v54 = vld [vmem:[%s9368_s20 + $0x4b0] sm:$0xf0]  ;;  %v8182_v55 = vld [vmem:[%s9368_s20 + $0x5a4] sm:$0xf]  ;;  %v6943_v56 = vor.u32 %v8250_v48, %v6940_v49 }
 0x1c5   : > { %5128 = vmatpush.bf16.msra.mxu1 %v6079_v32  ;;  %5141 = vmatpush.bf16.msra.mxu2 %v6207_v33  ;;  %v6668_v57 = vld [vmem:[%s9368_s20 + $0x5b0] sm:$0xf0]  ;;  %v8214_v58 = vld [vmem:[%s9368_s20 + $0x6a4] sm:$0xf]  ;;  %v6543_v63 = vor.u32 %v8150_v53, %v6540_v54 }
 0x1c6   : > { %5154 = vmatpush.bf16.msra.mxu3 %v6335_v37  ;;  %v6796_v59 = vld [vmem:[%s9368_s20 + $0x6b0] sm:$0xf0]  ;;  %v8246_v61 = vld [vmem:[%s9368_s20 + $0x7a4] sm:$0xf]  ;;  %5116 = vmatmul.bf16.vlgmr.msra.gmra.mxu0 %v9480_v28  ;;  %v6671_v3 = vor.u32 %v8182_v55, %v6668_v57 }
 0x1c7   : > { %5160 = vmatpush.bf16.msrb.mxu0 %v6575_v38  ;;  %v6924_v62 = vld [vmem:[%s9368_s20 + $0x7b0] sm:$0xf0]  ;;  %v6799_v4 = vor.u32 %v8214_v58, %v6796_v59  ;;  %v8146_v5 = vld [vmem:[%s9368_s20 + $0x484] sm:$0xf]  ;;  %v4909_v59 = vpop.f32.mrf.mxu0 }
 0x1c8   : > { %5142 = vmatmul.bf16.vlgmr.msra.gmra.mxu2 %v9478_v27  ;;  %5129 = vmatmul.bf16.vlgmr.msra.gmra.mxu1 %v9486_v34  ;;  %v6524_v6 = vld [vmem:[%s9368_s20 + $0x490] sm:$0xf0]  ;;  %v8178_v7 = vld [vmem:[%s9368_s20 + $0x584] sm:$0xf]  ;;  %v6927_v8 = vor.u32 %v8246_v61, %v6924_v62 }
 0x1c9   : > { %5173 = vmatpush.bf16.msrb.mxu1 %v6703_v39  ;;  %5186 = vmatpush.bf16.msrb.mxu2 %v6831_v40  ;;  %v6652_v9 = vld [vmem:[%s9368_s20 + $0x590] sm:$0xf0]  ;;  %v8210_v10 = vld [vmem:[%s9368_s20 + $0x684] sm:$0xf]  ;;  %v6527_v14 = vor.u32 %v8146_v5, %v6524_v6  ;;  %v2294_v40 = vld [vmem:[%s9778_s5] sm:$0xf] }
 0x1ca   : > { %5199 = vmatpush.bf16.msrb.mxu3 %v6959_v44  ;;  %v6780_v11 = vld [vmem:[%s9368_s20 + $0x690] sm:$0xf0]  ;;  %v8242_v12 = vld [vmem:[%s9368_s20 + $0x784] sm:$0xf]  ;;  %v6655_v15 = vor.u32 %v8178_v7, %v6652_v9  ;;  %v2296_v49 = vperm.slane %v2294_v40, 0 }
 0x1cb   : > { %5155 = vmatmul.bf16.vlgmr.msra.gmra.mxu3 %v9482_v29  ;;  %5161 = vmatpush.bf16.msrb.mxu0 %v6559_v50  ;;  %v6908_v13 = vld [vmem:[%s9368_s20 + $0x790] sm:$0xf0]  ;;  %v6783_v16 = vor.u32 %v8210_v10, %v6780_v11  ;;  %v8142_v17 = vld [vmem:[%s9368_s20 + $0x464] sm:$0xf] }
 0x1cc   : > { %v6508_v18 = vld [vmem:[%s9368_s20 + $0x470] sm:$0xf0]  ;;  %v8174_v19 = vld [vmem:[%s9368_s20 + $0x564] sm:$0xf]  ;;  %v6911_v20 = vor.u32 %v8242_v12, %v6908_v13  ;;  %v4910_v5 = vadd.f32 %v4909_v59, %v2296_v49 }
 0x1cd   : > { %5174 = vmatpush.bf16.msrb.mxu1 %v6687_v51  ;;  %5187 = vmatpush.bf16.msrb.mxu2 %v6815_v52  ;;  %v6636_v21 = vld [vmem:[%s9368_s20 + $0x570] sm:$0xf0]  ;;  %v8206_v22 = vld [vmem:[%s9368_s20 + $0x664] sm:$0xf]  ;;  %v6511_v26 = vor.u32 %v8142_v17, %v6508_v18 }
 0x1ce   : > { %5200 = vmatpush.bf16.msrb.mxu3 %v6943_v56  ;;  %v6764_v23 = vld [vmem:[%s9368_s20 + $0x670] sm:$0xf0]  ;;  %v8238_v24 = vld [vmem:[%s9368_s20 + $0x764] sm:$0xf]  ;;  %v6639_v31 = vor.u32 %v8174_v19, %v6636_v21 }
 0x1cf   : > { %5162 = vmatpush.bf16.msrb.mxu0 %v6543_v63  ;;  %v6892_v25 = vld [vmem:[%s9368_s20 + $0x770] sm:$0xf0]  ;;  %v8138_v30 = vld [vmem:[%s9368_s20 + $0x444] sm:$0xf]  ;;  %v6767_v32 = vor.u32 %v8206_v22, %v6764_v23 }
 0x1d0   : > { %v6492_v33 = vld [vmem:[%s9368_s20 + $0x450] sm:$0xf0]  ;;  %v8170_v35 = vld [vmem:[%s9368_s20 + $0x544] sm:$0xf]  ;;  %v6895_v37 = vor.u32 %v8238_v24, %v6892_v25 }
 0x1d1   : > { %5175 = vmatpush.bf16.msrb.mxu1 %v6671_v3  ;;  %5188 = vmatpush.bf16.msrb.mxu2 %v6799_v4  ;;  %v6620_v36 = vld [vmem:[%s9368_s20 + $0x550] sm:$0xf0]  ;;  %v8202_v38 = vld [vmem:[%s9368_s20 + $0x644] sm:$0xf]  ;;  %v6495_v43 = vor.u32 %v8138_v30, %v6492_v33 }
 0x1d2   : > { %5201 = vmatpush.bf16.msrb.mxu3 %v6927_v8  ;;  %v6748_v39 = vld [vmem:[%s9368_s20 + $0x650] sm:$0xf0]  ;;  %v8234_v41 = vld [vmem:[%s9368_s20 + $0x744] sm:$0xf]  ;;  %v6623_v45 = vor.u32 %v8170_v35, %v6620_v36 }
 0x1d3   : > { %5163 = vmatpush.bf16.msrb.mxu0 %v6527_v14  ;;  %v6876_v42 = vld [vmem:[%s9368_s20 + $0x750] sm:$0xf0]  ;;  %v8134_v44 = vld [vmem:[%s9368_s20 + $0x424] sm:$0xf]  ;;  %v6751_v46 = vor.u32 %v8202_v38, %v6748_v39 }
 0x1d4   : > { %v6476_v47 = vld [vmem:[%s9368_s20 + $0x430] sm:$0xf0]  ;;  %v8166_v48 = vld [vmem:[%s9368_s20 + $0x524] sm:$0xf]  ;;  %v6879_v50 = vor.u32 %v8234_v41, %v6876_v42  ;;  %v4922_v6 = vpop.f32.mrf.mxu1  ;;  %v4911_v42 = vpop.f32.mrf.mxu0 }
 0x1d5   : > { %5176 = vmatpush.bf16.msrb.mxu1 %v6655_v15  ;;  %5189 = vmatpush.bf16.msrb.mxu2 %v6783_v16  ;;  %v6604_v51 = vld [vmem:[%s9368_s20 + $0x530] sm:$0xf0]  ;;  %v8198_v52 = vld [vmem:[%s9368_s20 + $0x624] sm:$0xf]  ;;  %v6479_v56 = vor.u32 %v8134_v44, %v6476_v47  ;;  %v4923_v14 = vadd.f32 %v4922_v6, %v4910_v5 }
 0x1d6   : > { %5202 = vmatpush.bf16.msrb.mxu3 %v6911_v20  ;;  %v6732_v53 = vld [vmem:[%s9368_s20 + $0x630] sm:$0xf0]  ;;  %v8230_v54 = vld [vmem:[%s9368_s20 + $0x724] sm:$0xf]  ;;  %v6607_v61 = vor.u32 %v8166_v48, %v6604_v51 }
 0x1d7   : > { %5164 = vmatpush.bf16.msrb.mxu0 %v6511_v26  ;;  %v6860_v55 = vld [vmem:[%s9368_s20 + $0x730] sm:$0xf0]  ;;  %v8130_v57 = vld [vmem:[%s9368_s20 + $0x404] sm:$0xf]  ;;  %v6735_v62 = vor.u32 %v8198_v52, %v6732_v53 }
 0x1d8   : > { %v6460_v58 = vld [vmem:[%s9368_s20 + $0x410] sm:$0xf0]  ;;  %v8162_v63 = vld [vmem:[%s9368_s20 + $0x504] sm:$0xf]  ;;  %v6863_v7 = vor.u32 %v8230_v54, %v6860_v55  ;;  %v4935_v23 = vpop.f32.mrf.mxu2  ;;  %v4948_v30 = vpop.f32.mrf.mxu3 }
 0x1d9   : > { %5177 = vmatpush.bf16.msrb.mxu1 %v6639_v31  ;;  %5190 = vmatpush.bf16.msrb.mxu2 %v6767_v32  ;;  %v6588_v3 = vld [vmem:[%s9368_s20 + $0x510] sm:$0xf0]  ;;  %v8194_v4 = vld [vmem:[%s9368_s20 + $0x604] sm:$0xf]  ;;  %v6463_v15 = vor.u32 %v8130_v57, %v6460_v58  ;;  %v4936_v26 = vadd.f32 %v4935_v23, %v4923_v14 }
 0x1da   : > { %5203 = vmatpush.bf16.msrb.mxu3 %v6895_v37  ;;  %v6716_v8 = vld [vmem:[%s9368_s20 + $0x610] sm:$0xf0]  ;;  %v8226_v9 = vld [vmem:[%s9368_s20 + $0x704] sm:$0xf]  ;;  %v6591_v19 = vor.u32 %v8162_v63, %v6588_v3 }
 0x1db   : > { %5165 = vmatpush.bf16.msrb.mxu0 %v6495_v43  ;;  %v6844_v10 = vld [vmem:[%s9368_s20 + $0x710] sm:$0xf0]  ;;  %v8286_v11 = vld [vmem:[%s9368_s20 + $0x8e4] sm:$0xf]  ;;  %v6719_v20 = vor.u32 %v8194_v4, %v6716_v8  ;;  %v4949_v41 = vadd.f32 %v4948_v30, %v4936_v26 }
 0x1dc   : > { %v7084_v12 = vld [vmem:[%s9368_s20 + $0x8f0] sm:$0xf0]  ;;  %v8318_v13 = vld [vmem:[%s9368_s20 + $0x9e4] sm:$0xf]  ;;  %v6847_v24 = vor.u32 %v8226_v9, %v6844_v10 }
 0x1dd   : > { %5178 = vmatpush.bf16.msrb.mxu1 %v6623_v45  ;;  %5191 = vmatpush.bf16.msrb.mxu2 %v6751_v46  ;;  %v7212_v16 = vld [vmem:[%s9368_s20 + $0x9f0] sm:$0xf0]  ;;  %v8350_v17 = vld [vmem:[%s9368_s20 + $0xae4] sm:$0xf]  ;;  %v7087_v25 = vor.u32 %v8286_v11, %v7084_v12  ;;  %v4924_v45 = vpop.f32.mrf.mxu1 }
 0x1de   : > { %5204 = vmatpush.bf16.msrb.mxu3 %v6879_v50  ;;  %v7340_v18 = vld [vmem:[%s9368_s20 + $0xaf0] sm:$0xf0]  ;;  %v8382_v21 = vld [vmem:[%s9368_s20 + $0xbe4] sm:$0xf]  ;;  %v7215_v31 = vor.u32 %v8318_v13, %v7212_v16 }
 0x1df   : > { %5166 = vmatpush.bf16.msrb.mxu0 %v6479_v56  ;;  %v7468_v22 = vld [vmem:[%s9368_s20 + $0xbf0] sm:$0xf0]  ;;  %v7343_v32 = vor.u32 %v8350_v17, %v7340_v18  ;;  %v8282_v33 = vld [vmem:[%s9368_s20 + $0x8c4] sm:$0xf] }
 0x1e0   : > { %v7068_v35 = vld [vmem:[%s9368_s20 + $0x8d0] sm:$0xf0]  ;;  %v8314_v36 = vld [vmem:[%s9368_s20 + $0x9c4] sm:$0xf]  ;;  %v7471_v37 = vor.u32 %v8382_v21, %v7468_v22  ;;  %v4937_v58 = vpop.f32.mrf.mxu2  ;;  %v4961_v13 = vpop.f32.mrf.mxu0 }
 0x1e1   : > { %5179 = vmatpush.bf16.msrb.mxu1 %v6607_v61  ;;  %5192 = vmatpush.bf16.msrb.mxu2 %v6735_v62  ;;  %v7196_v38 = vld [vmem:[%s9368_s20 + $0x9d0] sm:$0xf0]  ;;  %v8346_v39 = vld [vmem:[%s9368_s20 + $0xac4] sm:$0xf]  ;;  %v7071_v46 = vor.u32 %v8282_v33, %v7068_v35  ;;  %v4950_v61 = vpop.f32.mrf.mxu3 }
 0x1e2   : > { %5205 = vmatpush.bf16.msrb.mxu3 %v6863_v7  ;;  %v7324_v40 = vld [vmem:[%s9368_s20 + $0xad0] sm:$0xf0]  ;;  %v8378_v43 = vld [vmem:[%s9368_s20 + $0xbc4] sm:$0xf]  ;;  %v7199_v47 = vor.u32 %v8314_v36, %v7196_v38 }
 0x1e3   : > { %5167 = vmatpush.bf16.msrb.mxu0 %v6463_v15  ;;  %v7452_v44 = vld [vmem:[%s9368_s20 + $0xbd0] sm:$0xf0]  ;;  %v7327_v48 = vor.u32 %v8346_v39, %v7324_v40  ;;  %v8278_v49 = vld [vmem:[%s9368_s20 + $0x8a4] sm:$0xf] }
 0x1e4   : > { %v7052_v50 = vld [vmem:[%s9368_s20 + $0x8b0] sm:$0xf0]  ;;  %v8310_v51 = vld [vmem:[%s9368_s20 + $0x9a4] sm:$0xf]  ;;  %v7455_v52 = vor.u32 %v8378_v43, %v7452_v44 }
 0x1e5   : > { %5180 = vmatpush.bf16.msrb.mxu1 %v6591_v19  ;;  %5193 = vmatpush.bf16.msrb.mxu2 %v6719_v20  ;;  %v7180_v53 = vld [vmem:[%s9368_s20 + $0x9b0] sm:$0xf0]  ;;  %v8342_v54 = vld [vmem:[%s9368_s20 + $0xaa4] sm:$0xf]  ;;  %v7055_v59 = vor.u32 %v8278_v49, %v7052_v50  ;;  %v4962_v19 = vadd.f32 %v4961_v13, %v4949_v41 }
 0x1e6   : > { %5206 = vmatpush.bf16.msrb.mxu3 %v6847_v24  ;;  %v7308_v55 = vld [vmem:[%s9368_s20 + $0xab0] sm:$0xf0]  ;;  %v8374_v56 = vld [vmem:[%s9368_s20 + $0xba4] sm:$0xf]  ;;  %5168 = vmatmul.bf16.vlgmr.msrb.gmra.mxu0 %v9516_v0  ;;  %v7183_v62 = vor.u32 %v8310_v51, %v7180_v53  ;;  %v4974_v20 = vpop.f32.mrf.mxu1 }
 0x1e7   : > { %5212 = vmatpush.bf16.msra.mxu0 %v7087_v25  ;;  %v7436_v57 = vld [vmem:[%s9368_s20 + $0xbb0] sm:$0xf0]  ;;  %v7311_v63 = vor.u32 %v8342_v54, %v7308_v55  ;;  %v8274_v3 = vld [vmem:[%s9368_s20 + $0x884] sm:$0xf]  ;;  %v4975_v30 = vadd.f32 %v4974_v20, %v4962_v19 }
 0x1e8   : > { %5194 = vmatmul.bf16.vlgmr.msrb.gmra.mxu2 %v9511_v60  ;;  %5181 = vmatmul.bf16.vlgmr.msrb.gmra.mxu1 %v9520_v2  ;;  %v7036_v4 = vld [vmem:[%s9368_s20 + $0x890] sm:$0xf0]  ;;  %v8306_v5 = vld [vmem:[%s9368_s20 + $0x984] sm:$0xf]  ;;  %v7439_v6 = vor.u32 %v8374_v56, %v7436_v57  ;;  %v4987_v38 = vpop.f32.mrf.mxu2  ;;  %v4963_v49 = vpop.f32.mrf.mxu0 }
 0x1e9   : > { %5225 = vmatpush.bf16.msra.mxu1 %v7215_v31  ;;  %5238 = vmatpush.bf16.msra.mxu2 %v7343_v32  ;;  %v7164_v7 = vld [vmem:[%s9368_s20 + $0x990] sm:$0xf0]  ;;  %v8338_v8 = vld [vmem:[%s9368_s20 + $0xa84] sm:$0xf]  ;;  %v7039_v12 = vor.u32 %v8274_v3, %v7036_v4  ;;  %v4988_v43 = vadd.f32 %v4987_v38, %v4975_v30 }
 0x1ea   : > { %5251 = vmatpush.bf16.msra.mxu3 %v7471_v37  ;;  %v7292_v9 = vld [vmem:[%s9368_s20 + $0xa90] sm:$0xf0]  ;;  %v8370_v10 = vld [vmem:[%s9368_s20 + $0xb84] sm:$0xf]  ;;  %v7167_v14 = vor.u32 %v8306_v5, %v7164_v7 }
 0x1eb   : > { %5207 = vmatmul.bf16.vlgmr.msrb.gmra.mxu3 %v9518_v1  ;;  %5213 = vmatpush.bf16.msra.mxu0 %v7071_v46  ;;  %v7420_v11 = vld [vmem:[%s9368_s20 + $0xb90] sm:$0xf0]  ;;  %v7295_v15 = vor.u32 %v8338_v8, %v7292_v9  ;;  %v8270_v16 = vld [vmem:[%s9368_s20 + $0x864] sm:$0xf]  ;;  %v5000_v44 = vpop.f32.mrf.mxu3 }
 0x1ec   : > { %v7020_v17 = vld [vmem:[%s9368_s20 + $0x870] sm:$0xf0]  ;;  %v8302_v18 = vld [vmem:[%s9368_s20 + $0x964] sm:$0xf]  ;;  %v7423_v21 = vor.u32 %v8370_v10, %v7420_v11 }
 0x1ed   : > { %5226 = vmatpush.bf16.msra.mxu1 %v7199_v47  ;;  %5239 = vmatpush.bf16.msra.mxu2 %v7327_v48  ;;  %v7148_v22 = vld [vmem:[%s9368_s20 + $0x970] sm:$0xf0]  ;;  %v8334_v23 = vld [vmem:[%s9368_s20 + $0xa64] sm:$0xf]  ;;  %v7023_v31 = vor.u32 %v8270_v16, %v7020_v17  ;;  %v9857_v48 = vadd.f32 %v5000_v44, %v4988_v43 }
 0x1ee   : > { %5252 = vmatpush.bf16.msra.mxu3 %v7455_v52  ;;  %v7276_v24 = vld [vmem:[%s9368_s20 + $0xa70] sm:$0xf0]  ;;  %v8366_v25 = vld [vmem:[%s9368_s20 + $0xb64] sm:$0xf]  ;;  %v7151_v32 = vor.u32 %v8302_v18, %v7148_v22  ;;  %v4976_v55 = vpop.f32.mrf.mxu1 }
 0x1ef   : > { %5214 = vmatpush.bf16.msra.mxu0 %v7055_v59  ;;  %v7404_v26 = vld [vmem:[%s9368_s20 + $0xb70] sm:$0xf0]  ;;  %v7279_v33 = vor.u32 %v8334_v23, %v7276_v24  ;;  %v8266_v35 = vld [vmem:[%s9368_s20 + $0x844] sm:$0xf] }
 0x1f0   : > { %v7004_v36 = vld [vmem:[%s9368_s20 + $0x850] sm:$0xf0]  ;;  %v8298_v37 = vld [vmem:[%s9368_s20 + $0x944] sm:$0xf]  ;;  %v7407_v39 = vor.u32 %v8366_v25, %v7404_v26  ;;  %v4989_v10 = vpop.f32.mrf.mxu2 }
 0x1f1   : > { %5227 = vmatpush.bf16.msra.mxu1 %v7183_v62  ;;  %5240 = vmatpush.bf16.msra.mxu2 %v7311_v63  ;;  %v7132_v40 = vld [vmem:[%s9368_s20 + $0x950] sm:$0xf0]  ;;  %v8330_v41 = vld [vmem:[%s9368_s20 + $0xa44] sm:$0xf]  ;;  %v7007_v47 = vor.u32 %v8266_v35, %v7004_v36 }
 0x1f2   : > { %5253 = vmatpush.bf16.msra.mxu3 %v7439_v6  ;;  %v7260_v42 = vld [vmem:[%s9368_s20 + $0xa50] sm:$0xf0]  ;;  %v8362_v45 = vld [vmem:[%s9368_s20 + $0xb44] sm:$0xf]  ;;  %v7135_v50 = vor.u32 %v8298_v37, %v7132_v40 }
 0x1f3   : > { %5215 = vmatpush.bf16.msra.mxu0 %v7039_v12  ;;  %v7388_v46 = vld [vmem:[%s9368_s20 + $0xb50] sm:$0xf0]  ;;  %v7263_v51 = vor.u32 %v8330_v41, %v7260_v42  ;;  %v8262_v52 = vld [vmem:[%s9368_s20 + $0x824] sm:$0xf] }
 0x1f4   : > { %v6988_v53 = vld [vmem:[%s9368_s20 + $0x830] sm:$0xf0]  ;;  %v8294_v54 = vld [vmem:[%s9368_s20 + $0x924] sm:$0xf]  ;;  %v7391_v56 = vor.u32 %v8362_v45, %v7388_v46 }
 0x1f5   : > { %5228 = vmatpush.bf16.msra.mxu1 %v7167_v14  ;;  %5241 = vmatpush.bf16.msra.mxu2 %v7295_v15  ;;  %v7116_v57 = vld [vmem:[%s9368_s20 + $0x930] sm:$0xf0]  ;;  %v8326_v58 = vld [vmem:[%s9368_s20 + $0xa24] sm:$0xf]  ;;  %v6991_v63 = vor.u32 %v8262_v52, %v6988_v53  ;;  %v5002_v15 = vpop.f32.mrf.mxu3 }
 0x1f6   : > { %5254 = vmatpush.bf16.msra.mxu3 %v7423_v21  ;;  %v7244_v59 = vld [vmem:[%s9368_s20 + $0xa30] sm:$0xf0]  ;;  %v8358_v61 = vld [vmem:[%s9368_s20 + $0xb24] sm:$0xf]  ;;  %v7119_v5 = vor.u32 %v8294_v54, %v7116_v57 }
 0x1f7   : > { %5216 = vmatpush.bf16.msra.mxu0 %v7023_v31  ;;  %v7372_v62 = vld [vmem:[%s9368_s20 + $0xb30] sm:$0xf0]  ;;  %v8258_v3 = vld [vmem:[%s9368_s20 + $0x804] sm:$0xf]  ;;  %v7247_v6 = vor.u32 %v8326_v58, %v7244_v59 }
 0x1f8   : > { %v6972_v4 = vld [vmem:[%s9368_s20 + $0x810] sm:$0xf0]  ;;  %v8290_v7 = vld [vmem:[%s9368_s20 + $0x904] sm:$0xf]  ;;  %v7375_v11 = vor.u32 %v8358_v61, %v7372_v62 }
 0x1f9   : > { %5229 = vmatpush.bf16.msra.mxu1 %v7151_v32  ;;  %5242 = vmatpush.bf16.msra.mxu2 %v7279_v33  ;;  %v7100_v8 = vld [vmem:[%s9368_s20 + $0x910] sm:$0xf0]  ;;  %v8322_v9 = vld [vmem:[%s9368_s20 + $0xa04] sm:$0xf]  ;;  %v6975_v19 = vor.u32 %v8258_v3, %v6972_v4 }
 0x1fa   : > { %5255 = vmatpush.bf16.msra.mxu3 %v7407_v39  ;;  %v7228_v12 = vld [vmem:[%s9368_s20 + $0xa10] sm:$0xf0]  ;;  %v8354_v13 = vld [vmem:[%s9368_s20 + $0xb04] sm:$0xf]  ;;  %v7103_v23 = vor.u32 %v8290_v7, %v7100_v8 }
 0x1fb   : > { %5217 = vmatpush.bf16.msra.mxu0 %v7007_v47  ;;  %v7356_v14 = vld [vmem:[%s9368_s20 + $0xb10] sm:$0xf0]  ;;  %v8414_v16 = vld [vmem:[%s9368_s20 + $0xce4] sm:$0xf]  ;;  %v7231_v24 = vor.u32 %v8322_v9, %v7228_v12 }
 0x1fc   : > { %v7596_v17 = vld [vmem:[%s9368_s20 + $0xcf0] sm:$0xf0]  ;;  %v8446_v18 = vld [vmem:[%s9368_s20 + $0xde4] sm:$0xf]  ;;  %v7359_v30 = vor.u32 %v8354_v13, %v7356_v14 }
 0x1fd   : > { %5230 = vmatpush.bf16.msra.mxu1 %v7135_v50  ;;  %5243 = vmatpush.bf16.msra.mxu2 %v7263_v51  ;;  %v7724_v20 = vld [vmem:[%s9368_s20 + $0xdf0] sm:$0xf0]  ;;  %v8478_v21 = vld [vmem:[%s9368_s20 + $0xee4] sm:$0xf]  ;;  %v7599_v31 = vor.u32 %v8414_v16, %v7596_v17  ;;  %v8602_v51 = vld [vmem:[#allocation1] sm:$0xff] }
 0x1fe   : > { %5256 = vmatpush.bf16.msra.mxu3 %v7391_v56  ;;  %v7852_v22 = vld [vmem:[%s9368_s20 + $0xef0] sm:$0xf0]  ;;  %v8510_v25 = vld [vmem:[%s9368_s20 + $0xfe4] sm:$0xf]  ;;  %v7727_v32 = vor.u32 %v8446_v18, %v7724_v20  ;;  %v8603_v56 = vld [vmem:[#allocation1 + $0x12] sm:$0xff] }
 0x1ff   : > { %5218 = vmatpush.bf16.msra.mxu0 %v6991_v63  ;;  %v7980_v26 = vld [vmem:[%s9368_s20 + $0xff0] sm:$0xf0]  ;;  %v7855_v33 = vor.u32 %v8478_v21, %v7852_v22  ;;  %v8410_v35 = vld [vmem:[%s9368_s20 + $0xcc4] sm:$0xf] }
 0x200   : > { %v7580_v36 = vld [vmem:[%s9368_s20 + $0xcd0] sm:$0xf0]  ;;  %v8442_v37 = vld [vmem:[%s9368_s20 + $0xdc4] sm:$0xf]  ;;  %v7983_v38 = vor.u32 %v8510_v25, %v7980_v26 }
 0x201   : > { %5231 = vmatpush.bf16.msra.mxu1 %v7119_v5  ;;  %5244 = vmatpush.bf16.msra.mxu2 %v7247_v6  ;;  %v7708_v39 = vld [vmem:[%s9368_s20 + $0xdd0] sm:$0xf0]  ;;  %v8474_v40 = vld [vmem:[%s9368_s20 + $0xec4] sm:$0xf]  ;;  %v7583_v44 = vor.u32 %v8410_v35, %v7580_v36 }
 0x202   : > { %5257 = vmatpush.bf16.msra.mxu3 %v7375_v11  ;;  %v7836_v41 = vld [vmem:[%s9368_s20 + $0xed0] sm:$0xf0]  ;;  %v8506_v42 = vld [vmem:[%s9368_s20 + $0xfc4] sm:$0xf]  ;;  %v7711_v45 = vor.u32 %v8442_v37, %v7708_v39  ;;  %v5013_v11 = vpop.f32.mrf.mxu0 }
 0x203   : > { %5219 = vmatpush.bf16.msra.mxu0 %v6975_v19  ;;  %v7964_v43 = vld [vmem:[%s9368_s20 + $0xfd0] sm:$0xf0]  ;;  %v7839_v46 = vor.u32 %v8474_v40, %v7836_v41  ;;  %v8406_v47 = vld [vmem:[%s9368_s20 + $0xca4] sm:$0xf]  ;;  %v5014_v14 = vadd.f32 %v5013_v11, %v9857_v48 }
 0x204   : > { %v7564_v49 = vld [vmem:[%s9368_s20 + $0xcb0] sm:$0xf0]  ;;  %v8438_v50 = vld [vmem:[%s9368_s20 + $0xda4] sm:$0xf]  ;;  %v7967_v52 = vor.u32 %v8506_v42, %v7964_v43 }
 0x205   : > { %5232 = vmatpush.bf16.msra.mxu1 %v7103_v23  ;;  %5245 = vmatpush.bf16.msra.mxu2 %v7231_v24  ;;  %v7692_v53 = vld [vmem:[%s9368_s20 + $0xdb0] sm:$0xf0]  ;;  %v8470_v54 = vld [vmem:[%s9368_s20 + $0xea4] sm:$0xf]  ;;  %v7567_v62 = vor.u32 %v8406_v47, %v7564_v49 }
 0x206   : > { %5258 = vmatpush.bf16.msra.mxu3 %v7359_v30  ;;  %5220 = vmatmul.bf16.vlgmr.msra.gmra.mxu0 %v8602_v51  ;;  %v7820_v55 = vld [vmem:[%s9368_s20 + $0xeb0] sm:$0xf0]  ;;  %v8604_v57 = vld [vmem:[#allocation1 + $0x9] sm:$0xff]  ;;  %v7695_v63 = vor.u32 %v8438_v50, %v7692_v53 }
 0x207   : > { %5264 = vmatpush.bf16.msrb.mxu0 %v7599_v31  ;;  %v8502_v58 = vld [vmem:[%s9368_s20 + $0xfa4] sm:$0xf]  ;;  %v7948_v59 = vld [vmem:[%s9368_s20 + $0xfb0] sm:$0xf0]  ;;  %v7823_v3 = vor.u32 %v8470_v54, %v7820_v55 }
 0x208   : > { %5246 = vmatmul.bf16.vlgmr.msra.gmra.mxu2 %v8603_v56  ;;  %5233 = vmatmul.bf16.vlgmr.msra.gmra.mxu1 %v8604_v57  ;;  %v8605_v61 = vld [vmem:[#allocation1 + $0x1b] sm:$0xff]  ;;  %v8402_v4 = vld [vmem:[%s9368_s20 + $0xc84] sm:$0xf]  ;;  %v7951_v7 = vor.u32 %v8502_v58, %v7948_v59 }
 0x209   : > { %5277 = vmatpush.bf16.msrb.mxu1 %v7727_v32  ;;  %5290 = vmatpush.bf16.msrb.mxu2 %v7855_v33  ;;  %v7548_v5 = vld [vmem:[%s9368_s20 + $0xc90] sm:$0xf0]  ;;  %v8434_v6 = vld [vmem:[%s9368_s20 + $0xd84] sm:$0xf]  ;;  %v5026_v16 = vpop.f32.mrf.mxu1 }
 0x20a   : > { %5303 = vmatpush.bf16.msrb.mxu3 %v7983_v38  ;;  %v7676_v8 = vld [vmem:[%s9368_s20 + $0xd90] sm:$0xf0]  ;;  %v8466_v9 = vld [vmem:[%s9368_s20 + $0xe84] sm:$0xf]  ;;  %v7551_v15 = vor.u32 %v8402_v4, %v7548_v5  ;;  %v5027_v23 = vadd.f32 %v5026_v16, %v5014_v14  ;;  %v5015_v47 = vpop.f32.mrf.mxu0  ;;  %v6066_v16 = vld [vmem:[%s9368_s20 + $0xe8] sm:$0xf] }
 0x20b   : > { %5259 = vmatmul.bf16.vlgmr.msra.gmra.mxu3 %v8605_v61  ;;  %5265 = vmatpush.bf16.msrb.mxu0 %v7583_v44  ;;  %v7804_v10 = vld [vmem:[%s9368_s20 + $0xe90] sm:$0xf0]  ;;  %v8498_v12 = vld [vmem:[%s9368_s20 + $0xf84] sm:$0xf]  ;;  %v7679_v17 = vor.u32 %v8434_v6, %v7676_v8  ;;  %v6034_v47 = vld [vmem:[%s9368_s20 + $0xa8] sm:$0xf] }
 0x20c   : > { %v7932_v13 = vld [vmem:[%s9368_s20 + $0xf90] sm:$0xf0]  ;;  %v7807_v18 = vor.u32 %v8466_v9, %v7804_v10  ;;  %v8398_v19 = vld [vmem:[%s9368_s20 + $0xc64] sm:$0xf] }
 0x20d   : > { %5278 = vmatpush.bf16.msrb.mxu1 %v7711_v45  ;;  %5291 = vmatpush.bf16.msrb.mxu2 %v7839_v46  ;;  %v7532_v20 = vld [vmem:[%s9368_s20 + $0xc70] sm:$0xf0]  ;;  %v8430_v21 = vld [vmem:[%s9368_s20 + $0xd64] sm:$0xf]  ;;  %v7935_v22 = vor.u32 %v8498_v12, %v7932_v13 }
 0x20e   : > { %5304 = vmatpush.bf16.msrb.mxu3 %v7967_v52  ;;  %v7660_v24 = vld [vmem:[%s9368_s20 + $0xd70] sm:$0xf0]  ;;  %v8462_v25 = vld [vmem:[%s9368_s20 + $0xe64] sm:$0xf]  ;;  %v7535_v31 = vor.u32 %v8398_v19, %v7532_v20  ;;  %v5039_v39 = vpop.f32.mrf.mxu2  ;;  %v5052_v44 = vpop.f32.mrf.mxu3 }
 0x20f   : > { %5266 = vmatpush.bf16.msrb.mxu0 %v7567_v62  ;;  %v7788_v48 = vld [vmem:[%s9368_s20 + $0xe70] sm:$0xf0]  ;;  %v8494_v26 = vld [vmem:[%s9368_s20 + $0xf64] sm:$0xf]  ;;  %v7663_v32 = vor.u32 %v8430_v21, %v7660_v24  ;;  %v5040_v43 = vadd.f32 %v5039_v39, %v5027_v23  ;;  %v8065_v21 = vld [vmem:[%s9368_s20 + $0x1f4] sm:$0xf0] }
 0x210   : > { %v7916_v30 = vld [vmem:[%s9368_s20 + $0xf70] sm:$0xf0]  ;;  %v7791_v33 = vor.u32 %v8462_v25, %v7788_v48  ;;  %v8394_v35 = vld [vmem:[%s9368_s20 + $0xc44] sm:$0xf]  ;;  %v8097_v23 = vld [vmem:[%s9368_s20 + $0x2f4] sm:$0xf0] }
 0x211   : > { %5279 = vmatpush.bf16.msrb.mxu1 %v7695_v63  ;;  %5292 = vmatpush.bf16.msrb.mxu2 %v7823_v3  ;;  %v7516_v36 = vld [vmem:[%s9368_s20 + $0xc50] sm:$0xf0]  ;;  %v8426_v37 = vld [vmem:[%s9368_s20 + $0xd44] sm:$0xf]  ;;  %v7919_v38 = vor.u32 %v8494_v26, %v7916_v30  ;;  %v5028_v50 = vpop.f32.mrf.mxu1  ;;  %v9924_v51 = vadd.f32 %v5052_v44, %v5040_v43  ;;  %v6450_v48 = vld [vmem:[%s9368_s20 + $0x3e8] sm:$0xf] }
 0x212   : > { %5305 = vmatpush.bf16.msrb.mxu3 %v7951_v7  ;;  %v7644_v40 = vld [vmem:[%s9368_s20 + $0xd50] sm:$0xf0]  ;;  %v8458_v41 = vld [vmem:[%s9368_s20 + $0xe44] sm:$0xf]  ;;  %v7519_v49 = vor.u32 %v8394_v35, %v7516_v36  ;;  %v8129_v26 = vld [vmem:[%s9368_s20 + $0x3f4] sm:$0xf0] }
 0x213   : > { %5267 = vmatpush.bf16.msrb.mxu0 %v7551_v15  ;;  %v7772_v42 = vld [vmem:[%s9368_s20 + $0xe50] sm:$0xf0]  ;;  %v8490_v45 = vld [vmem:[%s9368_s20 + $0xf44] sm:$0xf]  ;;  %v7647_v52 = vor.u32 %v8426_v37, %v7644_v40  ;;  %v6050_v35 = vld [vmem:[%s9368_s20 + $0xc8] sm:$0xf] }
 0x214   : > { %v7900_v46 = vld [vmem:[%s9368_s20 + $0xf50] sm:$0xf0]  ;;  %v7775_v53 = vor.u32 %v8458_v41, %v7772_v42  ;;  %v8390_v54 = vld [vmem:[%s9368_s20 + $0xc24] sm:$0xf]  ;;  %v8029_v36 = vld [vmem:[%s9368_s20 + $0xd4] sm:$0xf0] }
 0x215   : > { %5280 = vmatpush.bf16.msrb.mxu1 %v7679_v17  ;;  %5293 = vmatpush.bf16.msrb.mxu2 %v7807_v18  ;;  %v7500_v55 = vld [vmem:[%s9368_s20 + $0xc30] sm:$0xf0]  ;;  %v8422_v56 = vld [vmem:[%s9368_s20 + $0xd24] sm:$0xf]  ;;  %v7903_v57 = vor.u32 %v8490_v45, %v7900_v46  ;;  %v8033_v17 = vld [vmem:[%s9368_s20 + $0xf4] sm:$0xf0]  ;;  %v6051_v44 = vor.u32 %v8029_v36, %v6050_v35 }
 0x216   : > { %5306 = vmatpush.bf16.msrb.mxu3 %v7935_v22  ;;  %v7628_v58 = vld [vmem:[%s9368_s20 + $0xd30] sm:$0xf0]  ;;  %v8454_v59 = vld [vmem:[%s9368_s20 + $0xe24] sm:$0xf]  ;;  %v7503_v3 = vor.u32 %v8390_v54, %v7500_v55  ;;  %v5041_v15 = vpop.f32.mrf.mxu2  ;;  %v6194_v18 = vld [vmem:[%s9368_s20 + $0x1e8] sm:$0xf]  ;;  %v5054_v19 = vpop.f32.mrf.mxu3 }
 0x217   : > { %5268 = vmatpush.bf16.msrb.mxu0 %v7535_v31  ;;  %v7756_v61 = vld [vmem:[%s9368_s20 + $0xe30] sm:$0xf0]  ;;  %v8486_v62 = vld [vmem:[%s9368_s20 + $0xf24] sm:$0xf]  ;;  %v7631_v6 = vor.u32 %v8422_v56, %v7628_v58  ;;  %v6322_v22 = vld [vmem:[%s9368_s20 + $0x2e8] sm:$0xf]  ;;  %v6067_v31 = vor.u32 %v8033_v17, %v6066_v16 }
 0x218   : > { %v7884_v63 = vld [vmem:[%s9368_s20 + $0xf30] sm:$0xf0]  ;;  %v8386_v4 = vld [vmem:[%s9368_s20 + $0xc04] sm:$0xf]  ;;  %v7759_v7 = vor.u32 %v8454_v59, %v7756_v61  ;;  %v6178_v37 = vld [vmem:[%s9368_s20 + $0x1c8] sm:$0xf] }
 0x219   : > { %5281 = vmatpush.bf16.msrb.mxu1 %v7663_v32  ;;  %5294 = vmatpush.bf16.msrb.mxu2 %v7791_v33  ;;  %v7484_v5 = vld [vmem:[%s9368_s20 + $0xc10] sm:$0xf0]  ;;  %v8418_v8 = vld [vmem:[%s9368_s20 + $0xd04] sm:$0xf]  ;;  %v7887_v11 = vor.u32 %v8486_v62, %v7884_v63  ;;  %v6195_v32 = vor.u32 %v8065_v21, %v6194_v18  ;;  %v6323_v33 = vor.u32 %v8097_v23, %v6322_v22  ;;  %v8061_v39 = vld [vmem:[%s9368_s20 + $0x1d4] sm:$0xf0] }
 0x21a   : > { %5307 = vmatpush.bf16.msrb.mxu3 %v7919_v38  ;;  %v7612_v9 = vld [vmem:[%s9368_s20 + $0xd10] sm:$0xf0]  ;;  %v8450_v10 = vld [vmem:[%s9368_s20 + $0xe04] sm:$0xf]  ;;  %v7487_v20 = vor.u32 %v8386_v4, %v7484_v5  ;;  %v6451_v38 = vor.u32 %v8129_v26, %v6450_v48  ;;  %v6306_v40 = vld [vmem:[%s9368_s20 + $0x2c8] sm:$0xf]  ;;  %v6179_v45 = vor.u32 %v8061_v39, %v6178_v37 }
 0x21b   : > { %5269 = vmatpush.bf16.msrb.mxu0 %v7519_v49  ;;  %v7740_v12 = vld [vmem:[%s9368_s20 + $0xe10] sm:$0xf0]  ;;  %v8482_v13 = vld [vmem:[%s9368_s20 + $0xf04] sm:$0xf]  ;;  %v7615_v24 = vor.u32 %v8418_v8, %v7612_v9  ;;  %v8093_v41 = vld [vmem:[%s9368_s20 + $0x2d4] sm:$0xf0] }
 0x21c   : > { %v7868_v14 = vld [vmem:[%s9368_s20 + $0xf10] sm:$0xf0]  ;;  %v7743_v25 = vor.u32 %v8450_v10, %v7740_v12  ;;  %v6434_v42 = vld [vmem:[%s9368_s20 + $0x3c8] sm:$0xf]  ;;  %v8125_v43 = vld [vmem:[%s9368_s20 + $0x3d4] sm:$0xf0]  ;;  %v6307_v46 = vor.u32 %v8093_v41, %v6306_v40 }
 0x21d   : > { %5282 = vmatpush.bf16.msrb.mxu1 %v7647_v52  ;;  %5295 = vmatpush.bf16.msrb.mxu2 %v7775_v53  ;;  %v7871_v30 = vor.u32 %v8482_v13, %v7868_v14  ;;  %v8025_v49 = vld [vmem:[%s9368_s20 + $0xb4] sm:$0xf0]  ;;  %v6162_v50 = vld [vmem:[%s9368_s20 + $0x1a8] sm:$0xf]  ;;  %v8606_v52 = vld [vmem:[#allocation1 + $0x24] sm:$0xff]  ;;  %v6435_v53 = vor.u32 %v8125_v43, %v6434_v42 }
 0x21e   : > { %5308 = vmatpush.bf16.msrb.mxu3 %v7903_v57  ;;  %v8057_v54 = vld [vmem:[%s9368_s20 + $0x1b4] sm:$0xf0]  ;;  %v6290_v55 = vld [vmem:[%s9368_s20 + $0x2a8] sm:$0xf]  ;;  %v8607_v57 = vld [vmem:[#allocation1 + $0x36] sm:$0xff]  ;;  %v6035_v63 = vor.u32 %v8025_v49, %v6034_v47 }
 0x21f   : > { %5270 = vmatpush.bf16.msrb.mxu0 %v7503_v3  ;;  %v8089_v56 = vld [vmem:[%s9368_s20 + $0x2b4] sm:$0xf0]  ;;  %v8608_v58 = vld [vmem:[#allocation1 + $0x2d] sm:$0xff]  ;;  %v6163_v3 = vor.u32 %v8057_v54, %v6162_v50 }
 0x220   : > { %v6418_v59 = vld [vmem:[%s9368_s20 + $0x3a8] sm:$0xf]  ;;  %v8121_v61 = vld [vmem:[%s9368_s20 + $0x3b4] sm:$0xf0]  ;;  %v6291_v4 = vor.u32 %v8089_v56, %v6290_v55 }
 0x221   : > { %5283 = vmatpush.bf16.msrb.mxu1 %v7631_v6  ;;  %5296 = vmatpush.bf16.msrb.mxu2 %v7759_v7  ;;  %v8609_v62 = vld [vmem:[#allocation1 + $0x3f] sm:$0xff]  ;;  %v6018_v5 = vld [vmem:[%s9368_s20 + $0x88] sm:$0xf]  ;;  %v6419_v8 = vor.u32 %v8121_v61, %v6418_v59 }
 0x222   : > { %5309 = vmatpush.bf16.msrb.mxu3 %v7887_v11  ;;  %v8021_v6 = vld [vmem:[%s9368_s20 + $0x94] sm:$0xf0]  ;;  %v6146_v7 = vld [vmem:[%s9368_s20 + $0x188] sm:$0xf] }
 0x223   : > { %5271 = vmatpush.bf16.msrb.mxu0 %v7487_v20  ;;  %v8053_v9 = vld [vmem:[%s9368_s20 + $0x194] sm:$0xf0]  ;;  %v6274_v10 = vld [vmem:[%s9368_s20 + $0x288] sm:$0xf]  ;;  %v5065_v12 = vpop.f32.mrf.mxu0  ;;  %v6019_v16 = vor.u32 %v8021_v6, %v6018_v5 }
 0x224   : > { %v8085_v11 = vld [vmem:[%s9368_s20 + $0x294] sm:$0xf0]  ;;  %v6402_v13 = vld [vmem:[%s9368_s20 + $0x388] sm:$0xf]  ;;  %v5066_v15 = vadd.f32 %v5065_v12, %v9924_v51  ;;  %v6147_v18 = vor.u32 %v8053_v9, %v6146_v7 }
 0x225   : > { %5284 = vmatpush.bf16.msrb.mxu1 %v7615_v24  ;;  %5297 = vmatpush.bf16.msrb.mxu2 %v7743_v25  ;;  %v8117_v14 = vld [vmem:[%s9368_s20 + $0x394] sm:$0xf0]  ;;  %v5078_v17 = vpop.f32.mrf.mxu1  ;;  %v6275_v19 = vor.u32 %v8085_v11, %v6274_v10  ;;  %v6002_v20 = vld [vmem:[%s9368_s20 + $0x68] sm:$0xf] }
 0x226   : > { %5310 = vmatpush.bf16.msrb.mxu3 %v7871_v30  ;;  %5272 = vmatmul.bf16.vlgmr.msrb.gmra.mxu0 %v8606_v52  ;;  %v8017_v21 = vld [vmem:[%s9368_s20 + $0x74] sm:$0xf0]  ;;  %v6130_v22 = vld [vmem:[%s9368_s20 + $0x168] sm:$0xf]  ;;  %v6403_v23 = vor.u32 %v8117_v14, %v6402_v13  ;;  %v5079_v24 = vadd.f32 %v5078_v17, %v5066_v15 }
 0x227   : > { %5316 = vmatpush.bf16.msra.mxu0 %v6067_v31  ;;  %v8049_v25 = vld [vmem:[%s9368_s20 + $0x174] sm:$0xf0]  ;;  %v6258_v48 = vld [vmem:[%s9368_s20 + $0x268] sm:$0xf]  ;;  %v6003_v31 = vor.u32 %v8017_v21, %v6002_v20 }
 0x228   : > { %5298 = vmatmul.bf16.vlgmr.msrb.gmra.mxu2 %v8607_v57  ;;  %5285 = vmatmul.bf16.vlgmr.msrb.gmra.mxu1 %v8608_v58  ;;  %v8081_v51 = vld [vmem:[%s9368_s20 + $0x274] sm:$0xf0]  ;;  %v6386_v26 = vld [vmem:[%s9368_s20 + $0x368] sm:$0xf] }
 0x229   : > { %5329 = vmatpush.bf16.msra.mxu1 %v6195_v32  ;;  %5342 = vmatpush.bf16.msra.mxu2 %v6323_v33  ;;  %v8113_v30 = vld [vmem:[%s9368_s20 + $0x374] sm:$0xf0]  ;;  %v6131_v32 = vor.u32 %v8049_v25, %v6130_v22  ;;  %v6259_v33 = vor.u32 %v8081_v51, %v6258_v48  ;;  %v5986_v35 = vld [vmem:[%s9368_s20 + $0x48] sm:$0xf] }
 0x22a   : > { %5355 = vmatpush.bf16.msra.mxu3 %v6451_v38  ;;  %v8013_v36 = vld [vmem:[%s9368_s20 + $0x54] sm:$0xf0]  ;;  %v6114_v37 = vld [vmem:[%s9368_s20 + $0x148] sm:$0xf]  ;;  %v6387_v38 = vor.u32 %v8113_v30, %v6386_v26 }
 0x22b   : > { %5311 = vmatmul.bf16.vlgmr.msrb.gmra.mxu3 %v8609_v62  ;;  %5317 = vmatpush.bf16.msra.mxu0 %v6051_v44  ;;  %v5091_v39 = vpop.f32.mrf.mxu2  ;;  %v8045_v40 = vld [vmem:[%s9368_s20 + $0x154] sm:$0xf0]  ;;  %v6242_v41 = vld [vmem:[%s9368_s20 + $0x248] sm:$0xf]  ;;  %v5067_v47 = vpop.f32.mrf.mxu0  ;;  %v5987_v49 = vor.u32 %v8013_v36, %v5986_v35 }
 0x22c   : > { %v8077_v42 = vld [vmem:[%s9368_s20 + $0x254] sm:$0xf0]  ;;  %v5092_v43 = vadd.f32 %v5091_v39, %v5079_v24  ;;  %v5970_v55 = vld [vmem:[%s9368_s20 + $0x28] sm:$0xf] }
 0x22d   : > { %5330 = vmatpush.bf16.msra.mxu1 %v6179_v45  ;;  %5343 = vmatpush.bf16.msra.mxu2 %v6307_v46  ;;  %v6370_v45 = vld [vmem:[%s9368_s20 + $0x348] sm:$0xf]  ;;  %v8109_v46 = vld [vmem:[%s9368_s20 + $0x354] sm:$0xf0]  ;;  %v5080_v50 = vpop.f32.mrf.mxu1  ;;  %v6243_v54 = vor.u32 %v8077_v42, %v6242_v41 }
 0x22e   : > { %5356 = vmatpush.bf16.msra.mxu3 %v6435_v53  ;;  %v5104_v44 = vpop.f32.mrf.mxu3  ;;  %v6115_v53 = vor.u32 %v8045_v40, %v6114_v37  ;;  %v8009_v56 = vld [vmem:[%s9368_s20 + $0x34] sm:$0xf0]  ;;  %v6098_v57 = vld [vmem:[%s9368_s20 + $0x128] sm:$0xf]  ;;  %v6371_v58 = vor.u32 %v8109_v46, %v6370_v45 }
 0x22f   : > { %5318 = vmatpush.bf16.msra.mxu0 %v6035_v63  ;;  %v9991_v52 = vadd.f32 %v5104_v44, %v5092_v43  ;;  %v8041_v59 = vld [vmem:[%s9368_s20 + $0x134] sm:$0xf0]  ;;  %v6226_v61 = vld [vmem:[%s9368_s20 + $0x228] sm:$0xf] }
 0x230   : > { %v8073_v62 = vld [vmem:[%s9368_s20 + $0x234] sm:$0xf0]  ;;  %v6354_v63 = vld [vmem:[%s9368_s20 + $0x328] sm:$0xf]  ;;  %v6099_v7 = vor.u32 %v8041_v59, %v6098_v57 }
 0x231   : > { %5331 = vmatpush.bf16.msra.mxu1 %v6163_v3  ;;  %5344 = vmatpush.bf16.msra.mxu2 %v6291_v4  ;;  %v8105_v3 = vld [vmem:[%s9368_s20 + $0x334] sm:$0xf0]  ;;  %v5971_v4 = vor.u32 %v8009_v56, %v5970_v55  ;;  %v5954_v5 = vld [vmem:[%s9368_s20 + $0x8] sm:$0xf] }
 0x232   : > { %5357 = vmatpush.bf16.msra.mxu3 %v6419_v8  ;;  %v8005_v6 = vld [vmem:[%s9368_s20 + $0x14] sm:$0xf0]  ;;  %v6227_v8 = vor.u32 %v8073_v62, %v6226_v61  ;;  %v6082_v9 = vld [vmem:[%s9368_s20 + $0x108] sm:$0xf]  ;;  %v6355_v12 = vor.u32 %v8105_v3, %v6354_v63 }
 0x233   : > { %5319 = vmatpush.bf16.msra.mxu0 %v6019_v16  ;;  %v8037_v10 = vld [vmem:[%s9368_s20 + $0x114] sm:$0xf0]  ;;  %v6210_v11 = vld [vmem:[%s9368_s20 + $0x208] sm:$0xf]  ;;  %v5093_v16 = vpop.f32.mrf.mxu2  ;;  %v5955_v21 = vor.u32 %v8005_v6, %v5954_v5 }
 0x234   : > { %v8069_v13 = vld [vmem:[%s9368_s20 + $0x214] sm:$0xf0]  ;;  %v6338_v14 = vld [vmem:[%s9368_s20 + $0x308] sm:$0xf]  ;;  %v6083_v25 = vor.u32 %v8037_v10, %v6082_v9 }
 0x235   : > { %5332 = vmatpush.bf16.msra.mxu1 %v6147_v18  ;;  %5345 = vmatpush.bf16.msra.mxu2 %v6275_v19  ;;  %v8101_v15 = vld [vmem:[%s9368_s20 + $0x314] sm:$0xf0]  ;;  %v6578_v17 = vld [vmem:[%s9368_s20 + $0x4e8] sm:$0xf]  ;;  %v6211_v48 = vor.u32 %v8069_v13, %v6210_v11 }
 0x236   : > { %5358 = vmatpush.bf16.msra.mxu3 %v6403_v23  ;;  %v8161_v18 = vld [vmem:[%s9368_s20 + $0x4f4] sm:$0xf0]  ;;  %v6706_v19 = vld [vmem:[%s9368_s20 + $0x5e8] sm:$0xf]  ;;  %v5106_v20 = vpop.f32.mrf.mxu3  ;;  %v6339_v30 = vor.u32 %v8101_v15, %v6338_v14 }
 0x237   : > { %5320 = vmatpush.bf16.msra.mxu0 %v6003_v31  ;;  %v8193_v22 = vld [vmem:[%s9368_s20 + $0x5f4] sm:$0xf0]  ;;  %v6834_v23 = vld [vmem:[%s9368_s20 + $0x6e8] sm:$0xf]  ;;  %v6579_v31 = vor.u32 %v8161_v18, %v6578_v17 }
 0x238   : > { %v8225_v24 = vld [vmem:[%s9368_s20 + $0x6f4] sm:$0xf0]  ;;  %v6962_v51 = vld [vmem:[%s9368_s20 + $0x7e8] sm:$0xf] }
 0x239   : > { %5333 = vmatpush.bf16.msra.mxu1 %v6131_v32  ;;  %5346 = vmatpush.bf16.msra.mxu2 %v6259_v33  ;;  %v8257_v26 = vld [vmem:[%s9368_s20 + $0x7f4] sm:$0xf0]  ;;  %v6707_v32 = vor.u32 %v8193_v22, %v6706_v19  ;;  %v6835_v33 = vor.u32 %v8225_v24, %v6834_v23  ;;  %v6562_v35 = vld [vmem:[%s9368_s20 + $0x4c8] sm:$0xf] }
 0x23a   : > { %5359 = vmatpush.bf16.msra.mxu3 %v6387_v38  ;;  %v8157_v36 = vld [vmem:[%s9368_s20 + $0x4d4] sm:$0xf0]  ;;  %v6690_v37 = vld [vmem:[%s9368_s20 + $0x5c8] sm:$0xf]  ;;  %v6963_v38 = vor.u32 %v8257_v26, %v6962_v51 }
 0x23b   : > { %5321 = vmatpush.bf16.msra.mxu0 %v5987_v49  ;;  %v8189_v39 = vld [vmem:[%s9368_s20 + $0x5d4] sm:$0xf0]  ;;  %v6818_v40 = vld [vmem:[%s9368_s20 + $0x6c8] sm:$0xf]  ;;  %v6563_v44 = vor.u32 %v8157_v36, %v6562_v35 }
 0x23c   : > { %v8221_v41 = vld [vmem:[%s9368_s20 + $0x6d4] sm:$0xf0]  ;;  %v6946_v42 = vld [vmem:[%s9368_s20 + $0x7c8] sm:$0xf]  ;;  %v6691_v45 = vor.u32 %v8189_v39, %v6690_v37 }
 0x23d   : > { %5334 = vmatpush.bf16.msra.mxu1 %v6115_v53  ;;  %5347 = vmatpush.bf16.msra.mxu2 %v6243_v54  ;;  %v8253_v43 = vld [vmem:[%s9368_s20 + $0x7d4] sm:$0xf0]  ;;  %v6819_v46 = vor.u32 %v8221_v41, %v6818_v40  ;;  %v6546_v47 = vld [vmem:[%s9368_s20 + $0x4a8] sm:$0xf] }
 0x23e   : > { %5360 = vmatpush.bf16.msra.mxu3 %v6371_v58  ;;  %v8153_v49 = vld [vmem:[%s9368_s20 + $0x4b4] sm:$0xf0]  ;;  %v6674_v50 = vld [vmem:[%s9368_s20 + $0x5a8] sm:$0xf]  ;;  %v6947_v53 = vor.u32 %v8253_v43, %v6946_v42 }
 0x23f   : > { %5322 = vmatpush.bf16.msra.mxu0 %v5971_v4  ;;  %v8185_v54 = vld [vmem:[%s9368_s20 + $0x5b4] sm:$0xf0]  ;;  %v6802_v55 = vld [vmem:[%s9368_s20 + $0x6a8] sm:$0xf]  ;;  %v6547_v59 = vor.u32 %v8153_v49, %v6546_v47 }
 0x240   : > { %v8217_v56 = vld [vmem:[%s9368_s20 + $0x6b4] sm:$0xf0]  ;;  %v6930_v57 = vld [vmem:[%s9368_s20 + $0x7a8] sm:$0xf]  ;;  %v6675_v62 = vor.u32 %v8185_v54, %v6674_v50 }
 0x241   : > { %5335 = vmatpush.bf16.msra.mxu1 %v6099_v7  ;;  %5348 = vmatpush.bf16.msra.mxu2 %v6227_v8  ;;  %v8249_v58 = vld [vmem:[%s9368_s20 + $0x7b4] sm:$0xf0]  ;;  %v6530_v61 = vld [vmem:[%s9368_s20 + $0x488] sm:$0xf]  ;;  %v6803_v63 = vor.u32 %v8217_v56, %v6802_v55 }
 0x242   : > { %5361 = vmatpush.bf16.msra.mxu3 %v6355_v12  ;;  %v8149_v3 = vld [vmem:[%s9368_s20 + $0x494] sm:$0xf0]  ;;  %v6658_v4 = vld [vmem:[%s9368_s20 + $0x588] sm:$0xf]  ;;  %v6931_v7 = vor.u32 %v8249_v58, %v6930_v57 }
 0x243   : > { %5323 = vmatpush.bf16.msra.mxu0 %v5955_v21  ;;  %v8610_v5 = vld [vmem:[%s9778_s5] sm:$0xf]  ;;  %v6786_v9 = vld [vmem:[%s9368_s20 + $0x688] sm:$0xf]  ;;  %v6531_v13 = vor.u32 %v8149_v3, %v6530_v61  ;;  %v5117_v14 = vpop.f32.mrf.mxu0 }
 0x244   : > { %v2297_v6 = vperm.slane %v8610_v5, 1  ;;  %v8181_v8 = vld [vmem:[%s9368_s20 + $0x594] sm:$0xf0]  ;;  %v6914_v11 = vld [vmem:[%s9368_s20 + $0x788] sm:$0xf] }
 0x245   : > { %5336 = vmatpush.bf16.msra.mxu1 %v6083_v25  ;;  %5349 = vmatpush.bf16.msra.mxu2 %v6211_v48  ;;  %v8213_v10 = vld [vmem:[%s9368_s20 + $0x694] sm:$0xf0]  ;;  %v6659_v15 = vor.u32 %v8181_v8, %v6658_v4  ;;  %v6514_v17 = vld [vmem:[%s9368_s20 + $0x468] sm:$0xf]  ;;  %v5130_v21 = vpop.f32.mrf.mxu1 }
 0x246   : > { %5362 = vmatpush.bf16.msra.mxu3 %v6339_v30  ;;  %5324 = vmatmul.bf16.vlgmr.msra.gmra.mxu0 %v9480_v28  ;;  %v8245_v12 = vld [vmem:[%s9368_s20 + $0x794] sm:$0xf0]  ;;  %v6787_v16 = vor.u32 %v8213_v10, %v6786_v9  ;;  %v6642_v19 = vld [vmem:[%s9368_s20 + $0x568] sm:$0xf]  ;;  %v5118_v20 = vadd.f32 %v5117_v14, %v2297_v6 }
 0x247   : > { %5368 = vmatpush.bf16.msrb.mxu0 %v6579_v31  ;;  %v8145_v18 = vld [vmem:[%s9368_s20 + $0x474] sm:$0xf0]  ;;  %v6915_v22 = vor.u32 %v8245_v12, %v6914_v11  ;;  %v6770_v24 = vld [vmem:[%s9368_s20 + $0x668] sm:$0xf] }
 0x248   : > { %5350 = vmatmul.bf16.vlgmr.msra.gmra.mxu2 %v9478_v27  ;;  %5337 = vmatmul.bf16.vlgmr.msra.gmra.mxu1 %v9486_v34  ;;  %v8177_v23 = vld [vmem:[%s9368_s20 + $0x574] sm:$0xf0]  ;;  %v6898_v48 = vld [vmem:[%s9368_s20 + $0x768] sm:$0xf]  ;;  %v5131_v26 = vadd.f32 %v5130_v21, %v5118_v20  ;;  %v6515_v30 = vor.u32 %v8145_v18, %v6514_v17 }
 0x249   : > { %5381 = vmatpush.bf16.msrb.mxu1 %v6707_v32  ;;  %5394 = vmatpush.bf16.msrb.mxu2 %v6835_v33  ;;  %v8209_v25 = vld [vmem:[%s9368_s20 + $0x674] sm:$0xf0]  ;;  %v6643_v31 = vor.u32 %v8177_v23, %v6642_v19  ;;  %v6498_v33 = vld [vmem:[%s9368_s20 + $0x448] sm:$0xf] }
 0x24a   : > { %5407 = vmatpush.bf16.msrb.mxu3 %v6963_v38  ;;  %v8241_v51 = vld [vmem:[%s9368_s20 + $0x774] sm:$0xf0]  ;;  %v6771_v32 = vor.u32 %v8209_v25, %v6770_v24  ;;  %v6626_v36 = vld [vmem:[%s9368_s20 + $0x548] sm:$0xf] }
 0x24b   : > { %5363 = vmatmul.bf16.vlgmr.msra.gmra.mxu3 %v9482_v29  ;;  %5369 = vmatpush.bf16.msrb.mxu0 %v6563_v44  ;;  %v8141_v35 = vld [vmem:[%s9368_s20 + $0x454] sm:$0xf0]  ;;  %v5143_v37 = vpop.f32.mrf.mxu2  ;;  %v6899_v38 = vor.u32 %v8241_v51, %v6898_v48  ;;  %v6754_v40 = vld [vmem:[%s9368_s20 + $0x648] sm:$0xf]  ;;  %v5119_v49 = vpop.f32.mrf.mxu0 }
 0x24c   : > { %v8173_v39 = vld [vmem:[%s9368_s20 + $0x554] sm:$0xf0]  ;;  %v5144_v42 = vadd.f32 %v5143_v37, %v5131_v26  ;;  %v6882_v44 = vld [vmem:[%s9368_s20 + $0x748] sm:$0xf] }
 0x24d   : > { %5382 = vmatpush.bf16.msrb.mxu1 %v6691_v45  ;;  %5395 = vmatpush.bf16.msrb.mxu2 %v6819_v46  ;;  %v8205_v41 = vld [vmem:[%s9368_s20 + $0x654] sm:$0xf0]  ;;  %v6499_v46 = vor.u32 %v8141_v35, %v6498_v33  ;;  %v6627_v50 = vor.u32 %v8173_v39, %v6626_v36  ;;  %v6482_v54 = vld [vmem:[%s9368_s20 + $0x428] sm:$0xf]  ;;  %v5132_v57 = vpop.f32.mrf.mxu1 }
 0x24e   : > { %5408 = vmatpush.bf16.msrb.mxu3 %v6947_v53  ;;  %v5156_v43 = vpop.f32.mrf.mxu3  ;;  %v8237_v45 = vld [vmem:[%s9368_s20 + $0x754] sm:$0xf0]  ;;  %v6755_v53 = vor.u32 %v8205_v41, %v6754_v40  ;;  %v6610_v56 = vld [vmem:[%s9368_s20 + $0x528] sm:$0xf] }
 0x24f   : > { %5370 = vmatpush.bf16.msrb.mxu0 %v6547_v59  ;;  %v10062_v47 = vadd.f32 %v5156_v43, %v5144_v42  ;;  %v8137_v55 = vld [vmem:[%s9368_s20 + $0x434] sm:$0xf0]  ;;  %v6883_v58 = vor.u32 %v8237_v45, %v6882_v44  ;;  %v6738_v61 = vld [vmem:[%s9368_s20 + $0x628] sm:$0xf] }
 0x250   : > { %v8169_v59 = vld [vmem:[%s9368_s20 + $0x534] sm:$0xf0]  ;;  %v6483_v4 = vor.u32 %v8137_v55, %v6482_v54  ;;  %v6466_v5 = vld [vmem:[%s9368_s20 + $0x408] sm:$0xf] }
 0x251   : > { %5383 = vmatpush.bf16.msrb.mxu1 %v6675_v62  ;;  %5396 = vmatpush.bf16.msrb.mxu2 %v6803_v63  ;;  %v8201_v62 = vld [vmem:[%s9368_s20 + $0x634] sm:$0xf0]  ;;  %v6866_v63 = vld [vmem:[%s9368_s20 + $0x728] sm:$0xf] }
 0x252   : > { %5409 = vmatpush.bf16.msrb.mxu3 %v6931_v7  ;;  %v8233_v3 = vld [vmem:[%s9368_s20 + $0x734] sm:$0xf0]  ;;  %v6611_v7 = vor.u32 %v8169_v59, %v6610_v56  ;;  %v6739_v8 = vor.u32 %v8201_v62, %v6738_v61  ;;  %v6594_v9 = vld [vmem:[%s9368_s20 + $0x508] sm:$0xf] }
 0x253   : > { %5371 = vmatpush.bf16.msrb.mxu0 %v6531_v13  ;;  %v8133_v6 = vld [vmem:[%s9368_s20 + $0x414] sm:$0xf0]  ;;  %v6722_v11 = vld [vmem:[%s9368_s20 + $0x608] sm:$0xf]  ;;  %v5145_v12 = vpop.f32.mrf.mxu2  ;;  %v6867_v13 = vor.u32 %v8233_v3, %v6866_v63 }
 0x254   : > { %v8165_v10 = vld [vmem:[%s9368_s20 + $0x514] sm:$0xf0]  ;;  %v7090_v18 = vld [vmem:[%s9368_s20 + $0x8e8] sm:$0xf]  ;;  %v6467_v21 = vor.u32 %v8133_v6, %v6466_v5 }
 0x255   : > { %5384 = vmatpush.bf16.msrb.mxu1 %v6659_v15  ;;  %5397 = vmatpush.bf16.msrb.mxu2 %v6787_v16  ;;  %v8197_v14 = vld [vmem:[%s9368_s20 + $0x614] sm:$0xf0]  ;;  %v6850_v15 = vld [vmem:[%s9368_s20 + $0x708] sm:$0xf]  ;;  %v6595_v25 = vor.u32 %v8165_v10, %v6594_v9 }
 0x256   : > { %5410 = vmatpush.bf16.msrb.mxu3 %v6915_v22  ;;  %v8229_v16 = vld [vmem:[%s9368_s20 + $0x714] sm:$0xf0]  ;;  %v5158_v17 = vpop.f32.mrf.mxu3  ;;  %v7218_v20 = vld [vmem:[%s9368_s20 + $0x9e8] sm:$0xf]  ;;  %v6723_v48 = vor.u32 %v8197_v14, %v6722_v11 }
 0x257   : > { %5372 = vmatpush.bf16.msrb.mxu0 %v6515_v30  ;;  %v8289_v19 = vld [vmem:[%s9368_s20 + $0x8f4] sm:$0xf0]  ;;  %v7346_v23 = vld [vmem:[%s9368_s20 + $0xae8] sm:$0xf]  ;;  %v6851_v30 = vor.u32 %v8229_v16, %v6850_v15 }
 0x258   : > { %v8321_v22 = vld [vmem:[%s9368_s20 + $0x9f4] sm:$0xf0]  ;;  %v7474_v51 = vld [vmem:[%s9368_s20 + $0xbe8] sm:$0xf] }
 0x259   : > { %5385 = vmatpush.bf16.msrb.mxu1 %v6643_v31  ;;  %5398 = vmatpush.bf16.msrb.mxu2 %v6771_v32  ;;  %v8353_v24 = vld [vmem:[%s9368_s20 + $0xaf4] sm:$0xf0]  ;;  %v7091_v31 = vor.u32 %v8289_v19, %v7090_v18  ;;  %v7219_v32 = vor.u32 %v8321_v22, %v7218_v20  ;;  %v7074_v35 = vld [vmem:[%s9368_s20 + $0x8c8] sm:$0xf] }
 0x25a   : > { %5411 = vmatpush.bf16.msrb.mxu3 %v6899_v38  ;;  %v8385_v26 = vld [vmem:[%s9368_s20 + $0xbf4] sm:$0xf0]  ;;  %v7347_v33 = vor.u32 %v8353_v24, %v7346_v23  ;;  %v7202_v37 = vld [vmem:[%s9368_s20 + $0x9c8] sm:$0xf] }
 0x25b   : > { %5373 = vmatpush.bf16.msrb.mxu0 %v6499_v46  ;;  %v8285_v36 = vld [vmem:[%s9368_s20 + $0x8d4] sm:$0xf0]  ;;  %v7475_v38 = vor.u32 %v8385_v26, %v7474_v51  ;;  %v7330_v40 = vld [vmem:[%s9368_s20 + $0xac8] sm:$0xf] }
 0x25c   : > { %v8317_v39 = vld [vmem:[%s9368_s20 + $0x9d4] sm:$0xf0]  ;;  %v7458_v42 = vld [vmem:[%s9368_s20 + $0xbc8] sm:$0xf]  ;;  %v7075_v44 = vor.u32 %v8285_v36, %v7074_v35 }
 0x25d   : > { %5386 = vmatpush.bf16.msrb.mxu1 %v6627_v50  ;;  %5399 = vmatpush.bf16.msrb.mxu2 %v6755_v53  ;;  %v8349_v41 = vld [vmem:[%s9368_s20 + $0xad4] sm:$0xf0]  ;;  %v7203_v45 = vor.u32 %v8317_v39, %v7202_v37  ;;  %v7058_v49 = vld [vmem:[%s9368_s20 + $0x8a8] sm:$0xf] }
 0x25e   : > { %5412 = vmatpush.bf16.msrb.mxu3 %v6883_v58  ;;  %v8381_v43 = vld [vmem:[%s9368_s20 + $0xbd4] sm:$0xf0]  ;;  %v7331_v46 = vor.u32 %v8349_v41, %v7330_v40  ;;  %v7186_v53 = vld [vmem:[%s9368_s20 + $0x9a8] sm:$0xf] }
 0x25f   : > { %5374 = vmatpush.bf16.msrb.mxu0 %v6483_v4  ;;  %v8281_v50 = vld [vmem:[%s9368_s20 + $0x8b4] sm:$0xf0]  ;;  %v7459_v54 = vor.u32 %v8381_v43, %v7458_v42  ;;  %v7314_v56 = vld [vmem:[%s9368_s20 + $0xaa8] sm:$0xf] }
 0x260   : > { %v8313_v55 = vld [vmem:[%s9368_s20 + $0x9b4] sm:$0xf0]  ;;  %v7442_v58 = vld [vmem:[%s9368_s20 + $0xba8] sm:$0xf]  ;;  %v7059_v61 = vor.u32 %v8281_v50, %v7058_v49 }
 0x261   : > { %5387 = vmatpush.bf16.msrb.mxu1 %v6611_v7  ;;  %5400 = vmatpush.bf16.msrb.mxu2 %v6739_v8  ;;  %v8345_v57 = vld [vmem:[%s9368_s20 + $0xab4] sm:$0xf0]  ;;  %v7187_v62 = vor.u32 %v8313_v55, %v7186_v53  ;;  %v7042_v3 = vld [vmem:[%s9368_s20 + $0x888] sm:$0xf] }
 0x262   : > { %5413 = vmatpush.bf16.msrb.mxu3 %v6867_v13  ;;  %v8377_v59 = vld [vmem:[%s9368_s20 + $0xbb4] sm:$0xf0]  ;;  %v7315_v63 = vor.u32 %v8345_v57, %v7314_v56  ;;  %v7170_v5 = vld [vmem:[%s9368_s20 + $0x988] sm:$0xf] }
 0x263   : > { %5375 = vmatpush.bf16.msrb.mxu0 %v6467_v21  ;;  %v8277_v4 = vld [vmem:[%s9368_s20 + $0x894] sm:$0xf0]  ;;  %v7443_v6 = vor.u32 %v8377_v59, %v7442_v58  ;;  %v7298_v8 = vld [vmem:[%s9368_s20 + $0xa88] sm:$0xf]  ;;  %v5169_v13 = vpop.f32.mrf.mxu0 }
 0x264   : > { %v8309_v7 = vld [vmem:[%s9368_s20 + $0x994] sm:$0xf0]  ;;  %v7426_v10 = vld [vmem:[%s9368_s20 + $0xb88] sm:$0xf]  ;;  %v7043_v12 = vor.u32 %v8277_v4, %v7042_v3  ;;  %v5170_v19 = vadd.f32 %v5169_v13, %v10062_v47 }
 0x265   : > { %5388 = vmatpush.bf16.msrb.mxu1 %v6595_v25  ;;  %5401 = vmatpush.bf16.msrb.mxu2 %v6723_v48  ;;  %v8341_v9 = vld [vmem:[%s9368_s20 + $0xa94] sm:$0xf0]  ;;  %v7171_v14 = vor.u32 %v8309_v7, %v7170_v5  ;;  %v7026_v16 = vld [vmem:[%s9368_s20 + $0x868] sm:$0xf]  ;;  %v5182_v20 = vpop.f32.mrf.mxu1 }
 0x266   : > { %5414 = vmatpush.bf16.msrb.mxu3 %v6851_v30  ;;  %5376 = vmatmul.bf16.vlgmr.msrb.gmra.mxu0 %v9516_v0  ;;  %v8373_v11 = vld [vmem:[%s9368_s20 + $0xb94] sm:$0xf0]  ;;  %v7299_v15 = vor.u32 %v8341_v9, %v7298_v8  ;;  %v7154_v18 = vld [vmem:[%s9368_s20 + $0x968] sm:$0xf]  ;;  %v5183_v51 = vadd.f32 %v5182_v20, %v5170_v19 }
 0x267   : > { %5420 = vmatpush.bf16.msra.mxu0 %v7091_v31  ;;  %v8273_v17 = vld [vmem:[%s9368_s20 + $0x874] sm:$0xf0]  ;;  %v7427_v21 = vor.u32 %v8373_v11, %v7426_v10  ;;  %v7282_v23 = vld [vmem:[%s9368_s20 + $0xa68] sm:$0xf] }
 0x268   : > { %5402 = vmatmul.bf16.vlgmr.msrb.gmra.mxu2 %v9511_v60  ;;  %5389 = vmatmul.bf16.vlgmr.msrb.gmra.mxu1 %v9520_v2  ;;  %v8305_v22 = vld [vmem:[%s9368_s20 + $0x974] sm:$0xf0]  ;;  %v7410_v25 = vld [vmem:[%s9368_s20 + $0xb68] sm:$0xf]  ;;  %v7027_v26 = vor.u32 %v8273_v17, %v7026_v16 }
 0x269   : > { %5433 = vmatpush.bf16.msra.mxu1 %v7219_v32  ;;  %5446 = vmatpush.bf16.msra.mxu2 %v7347_v33  ;;  %v8337_v24 = vld [vmem:[%s9368_s20 + $0xa74] sm:$0xf0]  ;;  %v7155_v47 = vor.u32 %v8305_v22, %v7154_v18  ;;  %v7010_v31 = vld [vmem:[%s9368_s20 + $0x848] sm:$0xf] }
 0x26a   : > { %5459 = vmatpush.bf16.msra.mxu3 %v7475_v38  ;;  %v8369_v48 = vld [vmem:[%s9368_s20 + $0xb74] sm:$0xf0]  ;;  %v7283_v30 = vor.u32 %v8337_v24, %v7282_v23  ;;  %v7138_v33 = vld [vmem:[%s9368_s20 + $0x948] sm:$0xf] }
 0x26b   : > { %5415 = vmatmul.bf16.vlgmr.msrb.gmra.mxu3 %v9518_v1  ;;  %5421 = vmatpush.bf16.msra.mxu0 %v7075_v44  ;;  %v8269_v32 = vld [vmem:[%s9368_s20 + $0x854] sm:$0xf0]  ;;  %v5195_v35 = vpop.f32.mrf.mxu2  ;;  %v7411_v36 = vor.u32 %v8369_v48, %v7410_v25  ;;  %v7266_v38 = vld [vmem:[%s9368_s20 + $0xa48] sm:$0xf] }
 0x26c   : > { %v8301_v37 = vld [vmem:[%s9368_s20 + $0x954] sm:$0xf0]  ;;  %v5196_v40 = vadd.f32 %v5195_v35, %v5183_v51  ;;  %v7394_v42 = vld [vmem:[%s9368_s20 + $0xb48] sm:$0xf]  ;;  %v7011_v44 = vor.u32 %v8269_v32, %v7010_v31 }
 0x26d   : > { %5434 = vmatpush.bf16.msra.mxu1 %v7203_v45  ;;  %5447 = vmatpush.bf16.msra.mxu2 %v7331_v46  ;;  %v8333_v39 = vld [vmem:[%s9368_s20 + $0xa54] sm:$0xf0]  ;;  %v5171_v46 = vpop.f32.mrf.mxu0  ;;  %v7139_v49 = vor.u32 %v8301_v37, %v7138_v33  ;;  %v6994_v53 = vld [vmem:[%s9368_s20 + $0x828] sm:$0xf]  ;;  %v5184_v56 = vpop.f32.mrf.mxu1 }
 0x26e   : > { %5460 = vmatpush.bf16.msra.mxu3 %v7459_v54  ;;  %v5208_v41 = vpop.f32.mrf.mxu3  ;;  %v8365_v43 = vld [vmem:[%s9368_s20 + $0xb54] sm:$0xf0]  ;;  %v7267_v50 = vor.u32 %v8333_v39, %v7266_v38  ;;  %v7122_v55 = vld [vmem:[%s9368_s20 + $0x928] sm:$0xf] }
 0x26f   : > { %5422 = vmatpush.bf16.msra.mxu0 %v7059_v61  ;;  %v10133_v45 = vadd.f32 %v5208_v41, %v5196_v40  ;;  %v8265_v54 = vld [vmem:[%s9368_s20 + $0x834] sm:$0xf0]  ;;  %v7395_v57 = vor.u32 %v8365_v43, %v7394_v42  ;;  %v7250_v59 = vld [vmem:[%s9368_s20 + $0xa28] sm:$0xf] }
 0x270   : > { %v8297_v58 = vld [vmem:[%s9368_s20 + $0x934] sm:$0xf0]  ;;  %v6995_v3 = vor.u32 %v8265_v54, %v6994_v53  ;;  %v6978_v4 = vld [vmem:[%s9368_s20 + $0x808] sm:$0xf] }
 0x271   : > { %5435 = vmatpush.bf16.msra.mxu1 %v7187_v62  ;;  %5448 = vmatpush.bf16.msra.mxu2 %v7315_v63  ;;  %v8329_v61 = vld [vmem:[%s9368_s20 + $0xa34] sm:$0xf0]  ;;  %v7378_v62 = vld [vmem:[%s9368_s20 + $0xb28] sm:$0xf] }
 0x272   : > { %5461 = vmatpush.bf16.msra.mxu3 %v7443_v6  ;;  %v8361_v63 = vld [vmem:[%s9368_s20 + $0xb34] sm:$0xf0]  ;;  %v7123_v6 = vor.u32 %v8297_v58, %v7122_v55  ;;  %v7251_v7 = vor.u32 %v8329_v61, %v7250_v59  ;;  %v7106_v8 = vld [vmem:[%s9368_s20 + $0x908] sm:$0xf] }
 0x273   : > { %5423 = vmatpush.bf16.msra.mxu0 %v7043_v12  ;;  %v8261_v5 = vld [vmem:[%s9368_s20 + $0x814] sm:$0xf0]  ;;  %v7234_v10 = vld [vmem:[%s9368_s20 + $0xa08] sm:$0xf]  ;;  %v5197_v11 = vpop.f32.mrf.mxu2  ;;  %v7379_v12 = vor.u32 %v8361_v63, %v7378_v62 }
 0x274   : > { %v8293_v9 = vld [vmem:[%s9368_s20 + $0x914] sm:$0xf0]  ;;  %v7602_v17 = vld [vmem:[%s9368_s20 + $0xce8] sm:$0xf]  ;;  %v6979_v20 = vor.u32 %v8261_v5, %v6978_v4 }
 0x275   : > { %5436 = vmatpush.bf16.msra.mxu1 %v7171_v14  ;;  %5449 = vmatpush.bf16.msra.mxu2 %v7299_v15  ;;  %v8325_v13 = vld [vmem:[%s9368_s20 + $0xa14] sm:$0xf0]  ;;  %v7362_v14 = vld [vmem:[%s9368_s20 + $0xb08] sm:$0xf]  ;;  %v7107_v24 = vor.u32 %v8293_v9, %v7106_v8 }
 0x276   : > { %5462 = vmatpush.bf16.msra.mxu3 %v7427_v21  ;;  %v8357_v15 = vld [vmem:[%s9368_s20 + $0xb14] sm:$0xf0]  ;;  %v5210_v16 = vpop.f32.mrf.mxu3  ;;  %v7730_v19 = vld [vmem:[%s9368_s20 + $0xde8] sm:$0xf]  ;;  %v7235_v25 = vor.u32 %v8325_v13, %v7234_v10 }
 0x277   : > { %5424 = vmatpush.bf16.msra.mxu0 %v7027_v26  ;;  %v8417_v18 = vld [vmem:[%s9368_s20 + $0xcf4] sm:$0xf0]  ;;  %v7858_v22 = vld [vmem:[%s9368_s20 + $0xee8] sm:$0xf]  ;;  %v7363_v26 = vor.u32 %v8357_v15, %v7362_v14 }
 0x278   : > { %v8449_v21 = vld [vmem:[%s9368_s20 + $0xdf4] sm:$0xf0]  ;;  %v7986_v48 = vld [vmem:[%s9368_s20 + $0xfe8] sm:$0xf] }
 0x279   : > { %5437 = vmatpush.bf16.msra.mxu1 %v7155_v47  ;;  %5450 = vmatpush.bf16.msra.mxu2 %v7283_v30  ;;  %v8481_v23 = vld [vmem:[%s9368_s20 + $0xef4] sm:$0xf0]  ;;  %v7603_v47 = vor.u32 %v8417_v18, %v7602_v17  ;;  %v7731_v30 = vor.u32 %v8449_v21, %v7730_v19  ;;  %v7586_v32 = vld [vmem:[%s9368_s20 + $0xcc8] sm:$0xf] }
 0x27a   : > { %5463 = vmatpush.bf16.msra.mxu3 %v7411_v36  ;;  %v8513_v51 = vld [vmem:[%s9368_s20 + $0xff4] sm:$0xf0]  ;;  %v7859_v31 = vor.u32 %v8481_v23, %v7858_v22  ;;  %v7714_v35 = vld [vmem:[%s9368_s20 + $0xdc8] sm:$0xf] }
 0x27b   : > { %5425 = vmatpush.bf16.msra.mxu0 %v7011_v44  ;;  %v8413_v33 = vld [vmem:[%s9368_s20 + $0xcd4] sm:$0xf0]  ;;  %v7987_v36 = vor.u32 %v8513_v51, %v7986_v48  ;;  %v7842_v38 = vld [vmem:[%s9368_s20 + $0xec8] sm:$0xf] }
 0x27c   : > { %v8445_v37 = vld [vmem:[%s9368_s20 + $0xdd4] sm:$0xf0]  ;;  %v7970_v40 = vld [vmem:[%s9368_s20 + $0xfc8] sm:$0xf]  ;;  %v7587_v42 = vor.u32 %v8413_v33, %v7586_v32 }
 0x27d   : > { %5438 = vmatpush.bf16.msra.mxu1 %v7139_v49  ;;  %5451 = vmatpush.bf16.msra.mxu2 %v7267_v50  ;;  %v8477_v39 = vld [vmem:[%s9368_s20 + $0xed4] sm:$0xf0]  ;;  %v7715_v43 = vor.u32 %v8445_v37, %v7714_v35  ;;  %v7570_v46 = vld [vmem:[%s9368_s20 + $0xca8] sm:$0xf] }
 0x27e   : > { %5464 = vmatpush.bf16.msra.mxu3 %v7395_v57  ;;  %v8509_v41 = vld [vmem:[%s9368_s20 + $0xfd4] sm:$0xf0]  ;;  %v7843_v44 = vor.u32 %v8477_v39, %v7842_v38  ;;  %v7698_v50 = vld [vmem:[%s9368_s20 + $0xda8] sm:$0xf] }
 0x27f   : > { %5426 = vmatpush.bf16.msra.mxu0 %v6995_v3  ;;  %v8409_v49 = vld [vmem:[%s9368_s20 + $0xcb4] sm:$0xf0]  ;;  %v7971_v54 = vor.u32 %v8509_v41, %v7970_v40  ;;  %v7826_v56 = vld [vmem:[%s9368_s20 + $0xea8] sm:$0xf] }
 0x280   : > { %v8611_v53 = vld [vmem:[#allocation1] sm:$0xff]  ;;  %v8612_v58 = vld [vmem:[#allocation1 + $0x12] sm:$0xff]  ;;  %v8613_v59 = vld [vmem:[#allocation1 + $0x9] sm:$0xff]  ;;  %v7571_v3 = vor.u32 %v8409_v49, %v7570_v46 }
 0x281   : > { %5439 = vmatpush.bf16.msra.mxu1 %v7123_v6  ;;  %5452 = vmatpush.bf16.msra.mxu2 %v7251_v7  ;;  %v8441_v55 = vld [vmem:[%s9368_s20 + $0xdb4] sm:$0xf0]  ;;  %v7954_v61 = vld [vmem:[%s9368_s20 + $0xfa8] sm:$0xf] }
 0x282   : > { %5465 = vmatpush.bf16.msra.mxu3 %v7379_v12  ;;  %v8473_v57 = vld [vmem:[%s9368_s20 + $0xeb4] sm:$0xf0]  ;;  %v7699_v4 = vor.u32 %v8441_v55, %v7698_v50  ;;  %v7554_v6 = vld [vmem:[%s9368_s20 + $0xc88] sm:$0xf] }
 0x283   : > { %5427 = vmatpush.bf16.msra.mxu0 %v6979_v20  ;;  %v8505_v62 = vld [vmem:[%s9368_s20 + $0xfb4] sm:$0xf0]  ;;  %v7827_v5 = vor.u32 %v8473_v57, %v7826_v56  ;;  %v7682_v8 = vld [vmem:[%s9368_s20 + $0xd88] sm:$0xf]  ;;  %v5221_v13 = vpop.f32.mrf.mxu0 }
 0x284   : > { %v8614_v63 = vld [vmem:[#allocation1 + $0x1b] sm:$0xff]  ;;  %v7955_v9 = vor.u32 %v8505_v62, %v7954_v61  ;;  %v7810_v11 = vld [vmem:[%s9368_s20 + $0xe88] sm:$0xf]  ;;  %v5222_v16 = vadd.f32 %v5221_v13, %v10133_v45 }
 0x285   : > { %5440 = vmatpush.bf16.msra.mxu1 %v7107_v24  ;;  %5453 = vmatpush.bf16.msra.mxu2 %v7235_v25  ;;  %v8405_v7 = vld [vmem:[%s9368_s20 + $0xc94] sm:$0xf0]  ;;  %v7938_v14 = vld [vmem:[%s9368_s20 + $0xf88] sm:$0xf]  ;;  %v5234_v18 = vpop.f32.mrf.mxu1 }
 0x286   : > { %5466 = vmatpush.bf16.msra.mxu3 %v7363_v26  ;;  %5428 = vmatmul.bf16.vlgmr.msra.gmra.mxu0 %v8611_v53  ;;  %v8437_v10 = vld [vmem:[%s9368_s20 + $0xd94] sm:$0xf0]  ;;  %v7555_v17 = vor.u32 %v8405_v7, %v7554_v6  ;;  %v7538_v21 = vld [vmem:[%s9368_s20 + $0xc68] sm:$0xf]  ;;  %v5235_v25 = vadd.f32 %v5234_v18, %v5222_v16 }
 0x287   : > { %5472 = vmatpush.bf16.msrb.mxu0 %v7603_v47  ;;  %v8469_v12 = vld [vmem:[%s9368_s20 + $0xe94] sm:$0xf0]  ;;  %v7683_v19 = vor.u32 %v8437_v10, %v7682_v8  ;;  %v7666_v23 = vld [vmem:[%s9368_s20 + $0xd68] sm:$0xf] }
 0x288   : > { %5454 = vmatmul.bf16.vlgmr.msra.gmra.mxu2 %v8612_v58  ;;  %5441 = vmatmul.bf16.vlgmr.msra.gmra.mxu1 %v8613_v59  ;;  %v8501_v15 = vld [vmem:[%s9368_s20 + $0xf94] sm:$0xf0]  ;;  %v7811_v20 = vor.u32 %v8469_v12, %v7810_v11  ;;  %v7794_v51 = vld [vmem:[%s9368_s20 + $0xe68] sm:$0xf] }
 0x289   : > { %5485 = vmatpush.bf16.msrb.mxu1 %v7731_v30  ;;  %5498 = vmatpush.bf16.msrb.mxu2 %v7859_v31  ;;  %v8401_v22 = vld [vmem:[%s9368_s20 + $0xc74] sm:$0xf0]  ;;  %v7939_v24 = vor.u32 %v8501_v15, %v7938_v14  ;;  %v7922_v26 = vld [vmem:[%s9368_s20 + $0xf68] sm:$0xf] }
 0x28a   : > { %5511 = vmatpush.bf16.msrb.mxu3 %v7987_v36  ;;  %v8433_v48 = vld [vmem:[%s9368_s20 + $0xd74] sm:$0xf0]  ;;  %v7539_v30 = vor.u32 %v8401_v22, %v7538_v21  ;;  %v7522_v33 = vld [vmem:[%s9368_s20 + $0xc48] sm:$0xf]  ;;  %v8063_v21 = vld [vmem:[%s9368_s20 + $0x1ec] sm:$0xf] }
 0x28b   : > { %5467 = vmatmul.bf16.vlgmr.msra.gmra.mxu3 %v8614_v63  ;;  %5473 = vmatpush.bf16.msrb.mxu0 %v7587_v42  ;;  %v8465_v45 = vld [vmem:[%s9368_s20 + $0xe74] sm:$0xf0]  ;;  %v7667_v31 = vor.u32 %v8433_v48, %v7666_v23  ;;  %v7650_v36 = vld [vmem:[%s9368_s20 + $0xd48] sm:$0xf]  ;;  %v5247_v38 = vpop.f32.mrf.mxu2  ;;  %v5223_v49 = vpop.f32.mrf.mxu0  ;;  %v6324_v48 = vld [vmem:[%s9368_s20 + $0x2f8] sm:$0xf0] }
 0x28c   : > { %v8497_v47 = vld [vmem:[%s9368_s20 + $0xf74] sm:$0xf0]  ;;  %v7795_v32 = vor.u32 %v8465_v45, %v7794_v51  ;;  %v7778_v40 = vld [vmem:[%s9368_s20 + $0xe48] sm:$0xf]  ;;  %v5248_v42 = vadd.f32 %v5247_v38, %v5235_v25  ;;  %v8095_v25 = vld [vmem:[%s9368_s20 + $0x2ec] sm:$0xf] }
 0x28d   : > { %5486 = vmatpush.bf16.msrb.mxu1 %v7715_v43  ;;  %5499 = vmatpush.bf16.msrb.mxu2 %v7843_v44  ;;  %v8397_v35 = vld [vmem:[%s9368_s20 + $0xc54] sm:$0xf0]  ;;  %v7923_v37 = vor.u32 %v8497_v47, %v7922_v26  ;;  %v7906_v44 = vld [vmem:[%s9368_s20 + $0xf48] sm:$0xf]  ;;  %v5236_v53 = vpop.f32.mrf.mxu1  ;;  %v8127_v26 = vld [vmem:[%s9368_s20 + $0x3ec] sm:$0xf] }
 0x28e   : > { %5512 = vmatpush.bf16.msrb.mxu3 %v7971_v54  ;;  %v8429_v39 = vld [vmem:[%s9368_s20 + $0xd54] sm:$0xf0]  ;;  %v5260_v43 = vpop.f32.mrf.mxu3  ;;  %v7523_v50 = vor.u32 %v8397_v35, %v7522_v33  ;;  %v7506_v57 = vld [vmem:[%s9368_s20 + $0xc28] sm:$0xf]  ;;  %v6452_v47 = vld [vmem:[%s9368_s20 + $0x3f8] sm:$0xf0]  ;;  %v6327_v33 = vor.u32 %v8095_v25, %v6324_v48 }
 0x28f   : > { %5474 = vmatpush.bf16.msrb.mxu0 %v7571_v3  ;;  %v8461_v41 = vld [vmem:[%s9368_s20 + $0xe54] sm:$0xf0]  ;;  %v10200_v54 = vadd.f32 %v5260_v43, %v5248_v42  ;;  %v7651_v55 = vor.u32 %v8429_v39, %v7650_v36  ;;  %v7634_v59 = vld [vmem:[%s9368_s20 + $0xd28] sm:$0xf]  ;;  %v8027_v35 = vld [vmem:[%s9368_s20 + $0xcc] sm:$0xf]  ;;  %v6455_v38 = vor.u32 %v8127_v26, %v6452_v47 }
 0x290   : > { %v8493_v46 = vld [vmem:[%s9368_s20 + $0xf54] sm:$0xf0]  ;;  %v7779_v56 = vor.u32 %v8461_v41, %v7778_v40  ;;  %v7762_v63 = vld [vmem:[%s9368_s20 + $0xe28] sm:$0xf]  ;;  %v6052_v36 = vld [vmem:[%s9368_s20 + $0xd8] sm:$0xf0] }
 0x291   : > { %5487 = vmatpush.bf16.msrb.mxu1 %v7699_v4  ;;  %5500 = vmatpush.bf16.msrb.mxu2 %v7827_v5  ;;  %v8393_v58 = vld [vmem:[%s9368_s20 + $0xc34] sm:$0xf0]  ;;  %v7907_v61 = vor.u32 %v8493_v46, %v7906_v44  ;;  %v7890_v4 = vld [vmem:[%s9368_s20 + $0xf28] sm:$0xf]  ;;  %v6180_v39 = vld [vmem:[%s9368_s20 + $0x1d8] sm:$0xf0]  ;;  %v6055_v44 = vor.u32 %v8027_v35, %v6052_v36 }
 0x292   : > { %5513 = vmatpush.bf16.msrb.mxu3 %v7955_v9  ;;  %v8425_v62 = vld [vmem:[%s9368_s20 + $0xd34] sm:$0xf0]  ;;  %v7507_v6 = vor.u32 %v8393_v58, %v7506_v57  ;;  %v7490_v7 = vld [vmem:[%s9368_s20 + $0xc08] sm:$0xf]  ;;  %v8091_v40 = vld [vmem:[%s9368_s20 + $0x2cc] sm:$0xf] }
 0x293   : > { %5475 = vmatpush.bf16.msrb.mxu0 %v7555_v17  ;;  %v8457_v3 = vld [vmem:[%s9368_s20 + $0xe34] sm:$0xf0]  ;;  %v7635_v9 = vor.u32 %v8425_v62, %v7634_v59  ;;  %v7618_v11 = vld [vmem:[%s9368_s20 + $0xd08] sm:$0xf]  ;;  %v5249_v18 = vpop.f32.mrf.mxu2  ;;  %v6308_v41 = vld [vmem:[%s9368_s20 + $0x2d8] sm:$0xf0] }
 0x294   : > { %v8489_v5 = vld [vmem:[%s9368_s20 + $0xf34] sm:$0xf0]  ;;  %v7763_v10 = vor.u32 %v8457_v3, %v7762_v63  ;;  %v7746_v13 = vld [vmem:[%s9368_s20 + $0xe08] sm:$0xf]  ;;  %v8123_v42 = vld [vmem:[%s9368_s20 + $0x3cc] sm:$0xf]  ;;  %v6311_v49 = vor.u32 %v8091_v40, %v6308_v41 }
 0x295   : > { %5488 = vmatpush.bf16.msrb.mxu1 %v7683_v19  ;;  %5501 = vmatpush.bf16.msrb.mxu2 %v7811_v20  ;;  %v8389_v8 = vld [vmem:[%s9368_s20 + $0xc14] sm:$0xf0]  ;;  %v7891_v14 = vor.u32 %v8489_v5, %v7890_v4  ;;  %v7874_v16 = vld [vmem:[%s9368_s20 + $0xf08] sm:$0xf]  ;;  %v8031_v19 = vld [vmem:[%s9368_s20 + $0xec] sm:$0xf] }
 0x296   : > { %5514 = vmatpush.bf16.msrb.mxu3 %v7939_v24  ;;  %v8421_v12 = vld [vmem:[%s9368_s20 + $0xd14] sm:$0xf0]  ;;  %v6068_v20 = vld [vmem:[%s9368_s20 + $0xf8] sm:$0xf0]  ;;  %v5262_v22 = vpop.f32.mrf.mxu3  ;;  %v7491_v23 = vor.u32 %v8389_v8, %v7490_v7  ;;  %v8087_v59 = vld [vmem:[%s9368_s20 + $0x2ac] sm:$0xf] }
 0x297   : > { %5476 = vmatpush.bf16.msrb.mxu0 %v7539_v30  ;;  %v8453_v15 = vld [vmem:[%s9368_s20 + $0xe14] sm:$0xf0]  ;;  %v6196_v24 = vld [vmem:[%s9368_s20 + $0x1f8] sm:$0xf0]  ;;  %v7619_v51 = vor.u32 %v8421_v12, %v7618_v11  ;;  %v7992_v62 = vmul.f32 -1.442695, %v9991_v52 }
 0x298   : > { %v8485_v17 = vld [vmem:[%s9368_s20 + $0xf14] sm:$0xf0]  ;;  %v7747_v45 = vor.u32 %v8453_v15, %v7746_v13  ;;  %v6436_v43 = vld [vmem:[%s9368_s20 + $0x3d8] sm:$0xf0]  ;;  %v8616_v63 = vld [vmem:[#allocation1 + $0x36] sm:$0xff] }
 0x299   : > { %5489 = vmatpush.bf16.msrb.mxu1 %v7667_v31  ;;  %5502 = vmatpush.bf16.msrb.mxu2 %v7795_v32  ;;  %v7875_v30 = vor.u32 %v8485_v17, %v7874_v16  ;;  %v6071_v31 = vor.u32 %v8031_v19, %v6068_v20  ;;  %v6199_v32 = vor.u32 %v8063_v21, %v6196_v24  ;;  %v6036_v53 = vld [vmem:[%s9368_s20 + $0xb8] sm:$0xf0]  ;;  %v8617_v3 = vld [vmem:[#allocation1 + $0x2d] sm:$0xff]  ;;  %8586 = vpow2.f32 %v7992_v62 }
 0x29a   : > { %5515 = vmatpush.bf16.msrb.mxu3 %v7923_v37  ;;  %v8059_v37 = vld [vmem:[%s9368_s20 + $0x1cc] sm:$0xf]  ;;  %v6439_v57 = vor.u32 %v8123_v42, %v6436_v43  ;;  %v6164_v58 = vld [vmem:[%s9368_s20 + $0x1b8] sm:$0xf0] }
 0x29b   : > { %5477 = vmatpush.bf16.msrb.mxu0 %v7523_v50  ;;  %v6183_v46 = vor.u32 %v8059_v37, %v6180_v39  ;;  %v8023_v50 = vld [vmem:[%s9368_s20 + $0xac] sm:$0xf]  ;;  %v6420_v5 = vld [vmem:[%s9368_s20 + $0x3b8] sm:$0xf0] }
 0x29c   : > { %v8119_v4 = vld [vmem:[%s9368_s20 + $0x3ac] sm:$0xf]  ;;  %v6039_v7 = vor.u32 %v8023_v50, %v6036_v53  ;;  %v6148_v13 = vld [vmem:[%s9368_s20 + $0x198] sm:$0xf0] }
 0x29d   : > { %5490 = vmatpush.bf16.msrb.mxu1 %v7651_v55  ;;  %5503 = vmatpush.bf16.msrb.mxu2 %v7779_v56  ;;  %v8055_v55 = vld [vmem:[%s9368_s20 + $0x1ac] sm:$0xf]  ;;  %v8615_v56 = vld [vmem:[#allocation1 + $0x24] sm:$0xff]  ;;  %v6423_v12 = vor.u32 %v8119_v4, %v6420_v5 }
 0x29e   : > { %5516 = vmatpush.bf16.msrb.mxu3 %v7907_v61  ;;  %v6292_v61 = vld [vmem:[%s9368_s20 + $0x2b8] sm:$0xf0]  ;;  %v6167_v52 = vor.u32 %v8055_v55, %v6164_v58  ;;  %v8051_v11 = vld [vmem:[%s9368_s20 + $0x18c] sm:$0xf] }
 0x29f   : > { %5478 = vmatpush.bf16.msrb.mxu0 %v7507_v6  ;;  %v8618_v6 = vld [vmem:[#allocation1 + $0x3f] sm:$0xff]  ;;  %v6295_v8 = vor.u32 %v8087_v59, %v6292_v61  ;;  %v8115_v17 = vld [vmem:[%s9368_s20 + $0x38c] sm:$0xf]  ;;  %v6151_v22 = vor.u32 %v8051_v11, %v6148_v13 }
 0x2a0   : > { %v6276_v15 = vld [vmem:[%s9368_s20 + $0x298] sm:$0xf0]  ;;  %v8015_v24 = vld [vmem:[%s9368_s20 + $0x6c] sm:$0xf] }
 0x2a1   : > { %5491 = vmatpush.bf16.msrb.mxu1 %v7635_v9  ;;  %5504 = vmatpush.bf16.msrb.mxu2 %v7763_v10  ;;  %v8019_v9 = vld [vmem:[%s9368_s20 + $0x8c] sm:$0xf]  ;;  %v6020_v10 = vld [vmem:[%s9368_s20 + $0x98] sm:$0xf0] }
 0x2a2   : > { %5517 = vmatpush.bf16.msrb.mxu3 %v7891_v14  ;;  %v8083_v14 = vld [vmem:[%s9368_s20 + $0x28c] sm:$0xf]  ;;  %v6404_v18 = vld [vmem:[%s9368_s20 + $0x398] sm:$0xf0]  ;;  %v6023_v20 = vor.u32 %v8019_v9, %v6020_v10 }
 0x2a3   : > { %5479 = vmatpush.bf16.msrb.mxu0 %v7491_v23  ;;  %v5273_v16 = vpop.f32.mrf.mxu0  ;;  %v6279_v23 = vor.u32 %v8083_v14, %v6276_v15  ;;  %v6004_v25 = vld [vmem:[%s9368_s20 + $0x78] sm:$0xf0]  ;;  %v8047_v48 = vld [vmem:[%s9368_s20 + $0x16c] sm:$0xf] }
 0x2a4   : > { %v5274_v19 = vadd.f32 %v5273_v16, %v10200_v54  ;;  %v6132_v26 = vld [vmem:[%s9368_s20 + $0x178] sm:$0xf0]  ;;  %v8079_v47 = vld [vmem:[%s9368_s20 + $0x26c] sm:$0xf] }
 0x2a5   : > { %5492 = vmatpush.bf16.msrb.mxu1 %v7619_v51  ;;  %5505 = vmatpush.bf16.msrb.mxu2 %v7747_v45  ;;  %v5286_v21 = vpop.f32.mrf.mxu1  ;;  %v6407_v51 = vor.u32 %v8115_v17, %v6404_v18  ;;  %v6260_v54 = vld [vmem:[%s9368_s20 + $0x278] sm:$0xf0]  ;;  %v6135_v35 = vor.u32 %v8047_v48, %v6132_v26  ;;  %v8011_v37 = vld [vmem:[%s9368_s20 + $0x4c] sm:$0xf] }
 0x2a6   : > { %5518 = vmatpush.bf16.msrb.mxu3 %v7875_v30  ;;  %5480 = vmatmul.bf16.vlgmr.msrb.gmra.mxu0 %v8615_v56  ;;  %v5287_v45 = vadd.f32 %v5286_v21, %v5274_v19  ;;  %v8111_v30 = vld [vmem:[%s9368_s20 + $0x36c] sm:$0xf]  ;;  %v6263_v36 = vor.u32 %v8079_v47, %v6260_v54  ;;  %v6116_v42 = vld [vmem:[%s9368_s20 + $0x158] sm:$0xf0] }
 0x2a7   : > { %5524 = vmatpush.bf16.msra.mxu0 %v6071_v31  ;;  %v6388_v31 = vld [vmem:[%s9368_s20 + $0x378] sm:$0xf0]  ;;  %v8043_v39 = vld [vmem:[%s9368_s20 + $0x14c] sm:$0xf] }
 0x2a8   : > { %5506 = vmatmul.bf16.vlgmr.msrb.gmra.mxu2 %v8616_v63  ;;  %5493 = vmatmul.bf16.vlgmr.msrb.gmra.mxu1 %v8617_v3  ;;  %v6391_v40 = vor.u32 %v8111_v30, %v6388_v31  ;;  %v8075_v43 = vld [vmem:[%s9368_s20 + $0x24c] sm:$0xf]  ;;  %v6372_v53 = vld [vmem:[%s9368_s20 + $0x358] sm:$0xf0]  ;;  %v6119_v61 = vor.u32 %v8043_v39, %v6116_v42 }
 0x2a9   : > { %5537 = vmatpush.bf16.msra.mxu1 %v6199_v32  ;;  %5550 = vmatpush.bf16.msra.mxu2 %v6327_v33  ;;  %v6007_v32 = vor.u32 %v8015_v24, %v6004_v25  ;;  %v8587_v33 = vpop.eup %8586  ;;  %v8107_v50 = vld [vmem:[%s9368_s20 + $0x34c] sm:$0xf]  ;;  %v5972_v3 = vld [vmem:[%s9368_s20 + $0x38] sm:$0xf0] }
 0x2aa   : > { %5563 = vmatpush.bf16.msra.mxu3 %v6455_v38  ;;  %v5988_v38 = vld [vmem:[%s9368_s20 + $0x58] sm:$0xf0]  ;;  %v10268_v56 = vadd.f32 1.0, %v8587_v33  ;;  %v8007_v63 = vld [vmem:[%s9368_s20 + $0x2c] sm:$0xf]  ;;  %v6375_v5 = vor.u32 %v8107_v50, %v6372_v53 }
 0x2ab   : > { %5519 = vmatmul.bf16.vlgmr.msrb.gmra.mxu3 %v8618_v6  ;;  %5525 = vmatpush.bf16.msra.mxu0 %v6055_v44  ;;  %v5299_v41 = vpop.f32.mrf.mxu2  ;;  %v6244_v44 = vld [vmem:[%s9368_s20 + $0x258] sm:$0xf0]  ;;  %v5275_v55 = vpop.f32.mrf.mxu0  ;;  %v8039_v4 = vld [vmem:[%s9368_s20 + $0x12c] sm:$0xf]  ;;  %v5975_v11 = vor.u32 %v8007_v63, %v5972_v3 }
 0x2ac   : > { %v6247_v62 = vor.u32 %v8075_v43, %v6244_v44  ;;  %v6100_v6 = vld [vmem:[%s9368_s20 + $0x138] sm:$0xf0]  ;;  %v8103_v9 = vld [vmem:[%s9368_s20 + $0x32c] sm:$0xf]  ;;  %8588 = vrcp.f32 %v10268_v56  ;;  %vm5753_vm4 = vweird.f32 %v10268_v56 }
 0x2ad   : > { %5538 = vmatpush.bf16.msra.mxu1 %v6183_v46  ;;  %5551 = vmatpush.bf16.msra.mxu2 %v6311_v49  ;;  %v5300_v46 = vadd.f32 %v5299_v41, %v5287_v45  ;;  %v5288_v58 = vpop.f32.mrf.mxu1  ;;  %v6356_v10 = vld [vmem:[%s9368_s20 + $0x338] sm:$0xf0]  ;;  %v6103_v14 = vor.u32 %v8039_v4, %v6100_v6  ;;  %v8035_v16 = vld [vmem:[%s9368_s20 + $0x10c] sm:$0xf] }
 0x2ae   : > { %5564 = vmatpush.bf16.msra.mxu3 %v6439_v57  ;;  %v5312_v49 = vpop.f32.mrf.mxu3  ;;  %v5991_v57 = vor.u32 %v8011_v37, %v5988_v38  ;;  %v5956_v13 = vld [vmem:[%s9368_s20 + $0x18] sm:$0xf0]  ;;  %v8067_v18 = vld [vmem:[%s9368_s20 + $0x20c] sm:$0xf]  ;;  %v6359_v19 = vor.u32 %v8103_v9, %v6356_v10 }
 0x2af   : > { %5526 = vmatpush.bf16.msra.mxu0 %v6039_v7  ;;  %v5313_v59 = vadd.f32 %v5312_v49, %v5300_v46  ;;  %v8071_v7 = vld [vmem:[%s9368_s20 + $0x22c] sm:$0xf]  ;;  %v6084_v17 = vld [vmem:[%s9368_s20 + $0x118] sm:$0xf0] }
 0x2b0   : > { %v8099_v21 = vld [vmem:[%s9368_s20 + $0x30c] sm:$0xf]  ;;  %v6580_v25 = vld [vmem:[%s9368_s20 + $0x4f8] sm:$0xf0]  ;;  %v6087_v30 = vor.u32 %v8035_v16, %v6084_v17 }
 0x2b1   : > { %5539 = vmatpush.bf16.msra.mxu1 %v6167_v52  ;;  %5552 = vmatpush.bf16.msra.mxu2 %v6295_v8  ;;  %v6228_v52 = vld [vmem:[%s9368_s20 + $0x238] sm:$0xf0]  ;;  %v7993_v8 = vmul.f32 -1.442695, %v5313_v59  ;;  %v8159_v24 = vld [vmem:[%s9368_s20 + $0x4ec] sm:$0xf] }
 0x2b2   : > { %5565 = vmatpush.bf16.msra.mxu3 %v6423_v12  ;;  %v8003_v12 = vld [vmem:[%s9368_s20 + $0xc] sm:$0xf]  ;;  %v6231_v15 = vor.u32 %v8071_v7, %v6228_v52  ;;  %v6708_v26 = vld [vmem:[%s9368_s20 + $0x5f8] sm:$0xf0]  ;;  %v6583_v37 = vor.u32 %v8159_v24, %v6580_v25 }
 0x2b3   : > { %5527 = vmatpush.bf16.msra.mxu0 %v6023_v20  ;;  %8590 = vpow2.f32 %v7993_v8  ;;  %v6212_v20 = vld [vmem:[%s9368_s20 + $0x218] sm:$0xf0]  ;;  %v8191_v48 = vld [vmem:[%s9368_s20 + $0x5ec] sm:$0xf]  ;;  %v5959_v45 = vor.u32 %v8003_v12, %v5956_v13 }
 0x2b4   : > { %v8223_v47 = vld [vmem:[%s9368_s20 + $0x6ec] sm:$0xf]  ;;  %v6836_v54 = vld [vmem:[%s9368_s20 + $0x6f8] sm:$0xf0]  ;;  %v6215_v31 = vor.u32 %v8067_v18, %v6212_v20 }
 0x2b5   : > { %5540 = vmatpush.bf16.msra.mxu1 %v6151_v22  ;;  %5553 = vmatpush.bf16.msra.mxu2 %v6279_v23  ;;  %v6340_v22 = vld [vmem:[%s9368_s20 + $0x318] sm:$0xf0]  ;;  %v5301_v23 = vpop.f32.mrf.mxu2  ;;  %v8155_v38 = vld [vmem:[%s9368_s20 + $0x4cc] sm:$0xf]  ;;  %v6839_v41 = vor.u32 %v8223_v47, %v6836_v54 }
 0x2b6   : > { %5566 = vmatpush.bf16.msra.mxu3 %v6407_v51  ;;  %v5314_v51 = vpop.f32.mrf.mxu3  ;;  %v6964_v33 = vld [vmem:[%s9368_s20 + $0x7f8] sm:$0xf0]  ;;  %v8187_v43 = vld [vmem:[%s9368_s20 + $0x5cc] sm:$0xf] }
 0x2b7   : > { %5528 = vmatpush.bf16.msra.mxu0 %v6007_v32  ;;  %v8255_v32 = vld [vmem:[%s9368_s20 + $0x7ec] sm:$0xf]  ;;  %v6564_v42 = vld [vmem:[%s9368_s20 + $0x4d8] sm:$0xf0] }
 0x2b8   : > { %v6692_v44 = vld [vmem:[%s9368_s20 + $0x5d8] sm:$0xf0]  ;;  %v6967_v49 = vor.u32 %v8255_v32, %v6964_v33  ;;  %v8219_v50 = vld [vmem:[%s9368_s20 + $0x6cc] sm:$0xf]  ;;  %v6567_v59 = vor.u32 %v8155_v38, %v6564_v42 }
 0x2b9   : > { %5541 = vmatpush.bf16.msra.mxu1 %v6135_v35  ;;  %5554 = vmatpush.bf16.msra.mxu2 %v6263_v36  ;;  %v10295_v35 = vpop.eup %8588  ;;  %v6343_v36 = vor.u32 %v8099_v21, %v6340_v22  ;;  %v6820_v53 = vld [vmem:[%s9368_s20 + $0x6d8] sm:$0xf0]  ;;  %v8251_v55 = vld [vmem:[%s9368_s20 + $0x7cc] sm:$0xf] }
 0x2ba   : > { %5567 = vmatpush.bf16.msra.mxu3 %v6391_v40  ;;  %v8591_v39 = vpop.eup %8590  ;;  %v6711_v40 = vor.u32 %v8191_v48, %v6708_v26  ;;  %v5749_v58 = vmul.f32 %v10295_v35, %v10268_v56  ;;  %v8151_v63 = vld [vmem:[%s9368_s20 + $0x4ac] sm:$0xf]  ;;  %v6548_v3 = vld [vmem:[%s9368_s20 + $0x4b8] sm:$0xf0]  ;;  %vm5754_vm1 = vweird.f32 %v10295_v35 }
 0x2bb   : > { %5529 = vmatpush.bf16.msra.mxu0 %v5991_v57  ;;  %v10301_v46 = vadd.f32 1.0, %v8591_v39  ;;  %v6948_v57 = vld [vmem:[%s9368_s20 + $0x7d8] sm:$0xf0]  ;;  %v8183_v4 = vld [vmem:[%s9368_s20 + $0x5ac] sm:$0xf]  ;;  %vm10376_vm6 = vmor %vm5753_vm4, %vm5754_vm1  ;;  %vm5817_vm1 = vcmask 1045508  }
 0x2bc   : > { %v6676_v6 = vld [vmem:[%s9368_s20 + $0x5b8] sm:$0xf0]  ;;  %v8215_v7 = vld [vmem:[%s9368_s20 + $0x6ac] sm:$0xf]  ;;  %v5750_v10 = vsub.f32 1.0, %v5749_v58 }
 0x2bd   : > { %5542 = vmatpush.bf16.msra.mxu1 %v6119_v61  ;;  %5555 = vmatpush.bf16.msra.mxu2 %v6247_v62  ;;  %8592 = vrcp.f32 %v10301_v46  ;;  %v6695_v61 = vor.u32 %v8187_v43, %v6692_v44  ;;  %v6823_v62 = vor.u32 %v8219_v50, %v6820_v53  ;;  %v6804_v52 = vld [vmem:[%s9368_s20 + $0x6b8] sm:$0xf0]  ;;  %v8247_v8 = vld [vmem:[%s9368_s20 + $0x7ac] sm:$0xf]  ;;  %v5774_v33 = vand.u32 2147483648, %v10301_v46 }
 0x2be   : > { %5568 = vmatpush.bf16.msra.mxu3 %v6375_v5  ;;  %v6951_v5 = vor.u32 %v8251_v55, %v6948_v57  ;;  %v6932_v9 = vld [vmem:[%s9368_s20 + $0x7b8] sm:$0xf0]  ;;  %v8147_v12 = vld [vmem:[%s9368_s20 + $0x48c] sm:$0xf]  ;;  %v6807_v13 = vor.u32 %v8215_v7, %v6804_v52  ;;  %v5751_v51 = vmul.f32 %v10295_v35, %v5750_v10  ;;  %v5772_v43 = vand.u32 2147483647, %v10301_v46 }
 0x2bf   : > { %5530 = vmatpush.bf16.msra.mxu0 %v5975_v11  ;;  %v6551_v11 = vor.u32 %v8151_v63, %v6548_v3  ;;  %v6935_v17 = vor.u32 %v8247_v8, %v6932_v9  ;;  %v6660_v18 = vld [vmem:[%s9368_s20 + $0x598] sm:$0xf0]  ;;  %v8243_v21 = vld [vmem:[%s9368_s20 + $0x78c] sm:$0xf]  ;;  %v5757_v53 = vand.u32 2147483647, %v10268_v56  ;;  %vm5768_vm2 = vweird.f32 %v10301_v46 }
 0x2c0   : > { %v6916_v22 = vld [vmem:[%s9368_s20 + $0x798] sm:$0xf0]  ;;  %v8143_v24 = vld [vmem:[%s9368_s20 + $0x46c] sm:$0xf]  ;;  %v5752_v50 = vadd.f32 %v10295_v35, %v5751_v51  ;;  %v5759_v52 = vand.u32 2147483648, %v10268_v56  ;;  %v5775_v8 = vor.u32 1.1754944e-38, %v5774_v33 }
 0x2c1   : > { %5543 = vmatpush.bf16.msra.mxu1 %v6103_v14  ;;  %5556 = vmatpush.bf16.msra.mxu2 %v6231_v15  ;;  %v6532_v14 = vld [vmem:[%s9368_s20 + $0x498] sm:$0xf0]  ;;  %v8175_v54 = vld [vmem:[%s9368_s20 + $0x56c] sm:$0xf]  ;;  %vm5773_vm5 = vcmp.eq.f32.partialorder %v5772_v43, 8.507059e+37  ;;  %vm5758_vm8 = vcmp.eq.f32.partialorder %v5757_v53, 8.507059e+37 }
 0x2c2   : > { %5569 = vmatpush.bf16.msra.mxu3 %v6359_v19  ;;  %v6788_v19 = vld [vmem:[%s9368_s20 + $0x698] sm:$0xf0]  ;;  %v6535_v23 = vor.u32 %v8147_v12, %v6532_v14  ;;  %v8235_v9 = vld [vmem:[%s9368_s20 + $0x74c] sm:$0xf] }
 0x2c3   : > { %5531 = vmatpush.bf16.msra.mxu0 %v5959_v45  ;;  %v10329_v16 = vpop.eup %8592  ;;  %v6516_v25 = vld [vmem:[%s9368_s20 + $0x478] sm:$0xf0]  ;;  %v5325_v48 = vpop.f32.mrf.mxu0  ;;  %v8351_v53 = vld [vmem:[%s9368_s20 + $0xaec] sm:$0xf] }
 0x2c4   : > { %v5764_v20 = vmul.f32 %v10329_v16, %v10301_v46  ;;  %v6772_v38 = vld [vmem:[%s9368_s20 + $0x678] sm:$0xf0]  ;;  %vm5769_vm0 = vweird.f32 %v10329_v16  ;;  %v6519_v44 = vor.u32 %v8143_v24, %v6516_v25  ;;  %v8231_v24 = vld [vmem:[%s9368_s20 + $0x72c] sm:$0xf] }
 0x2c5   : > { %5544 = vmatpush.bf16.msra.mxu1 %v6087_v30  ;;  %5557 = vmatpush.bf16.msra.mxu2 %v6215_v31  ;;  %v6644_v30 = vld [vmem:[%s9368_s20 + $0x578] sm:$0xf0]  ;;  %v5338_v32 = vpop.f32.mrf.mxu1  ;;  %vm5770_vm3 = vmor %vm5768_vm2, %vm5769_vm0  ;;  %vm5819_vm2 = vcmask 1043456  }
 0x2c6   : > { %5570 = vmatpush.bf16.msra.mxu3 %v6343_v36  ;;  %5532 = vmatmul.bf16.vlgmr.msra.gmra.mxu0 %v9480_v28  ;;  %v8179_v28 = vld [vmem:[%s9368_s20 + $0x58c] sm:$0xf]  ;;  %v5765_v45 = vsub.f32 1.0, %v5764_v20  ;;  %v6919_v36 = vor.u32 %v8243_v21, %v6916_v22  ;;  %v6647_v55 = vor.u32 %v8175_v54, %v6644_v30  ;;  %v6500_v58 = vld [vmem:[%s9368_s20 + $0x458] sm:$0xf0] }
 0x2c7   : > { %5576 = vmatpush.bf16.msrb.mxu0 %v6583_v37  ;;  %v6663_v26 = vor.u32 %v8179_v28, %v6660_v18  ;;  %v8207_v37 = vld [vmem:[%s9368_s20 + $0x66c] sm:$0xf]  ;;  %v6884_v10 = vld [vmem:[%s9368_s20 + $0x758] sm:$0xf0] }
 0x2c8   : > { %5558 = vmatmul.bf16.vlgmr.msra.gmra.mxu2 %v9478_v27  ;;  %5545 = vmatmul.bf16.vlgmr.msra.gmra.mxu1 %v9486_v34  ;;  %v6679_v27 = vor.u32 %v8183_v4, %v6676_v6  ;;  %v8211_v34 = vld [vmem:[%s9368_s20 + $0x68c] sm:$0xf]  ;;  %v5766_v39 = vmul.f32 %v10329_v16, %v5765_v45  ;;  %v6775_v57 = vor.u32 %v8207_v37, %v6772_v38  ;;  %v6612_v18 = vld [vmem:[%s9368_s20 + $0x538] sm:$0xf0] }
 0x2c9   : > { %5589 = vmatpush.bf16.msrb.mxu1 %v6711_v40  ;;  %5602 = vmatpush.bf16.msrb.mxu2 %v6839_v41  ;;  %v6791_v47 = vor.u32 %v8211_v34, %v6788_v19  ;;  %v8239_v40 = vld [vmem:[%s9368_s20 + $0x76c] sm:$0xf]  ;;  %v6900_v41 = vld [vmem:[%s9368_s20 + $0x778] sm:$0xf0]  ;;  %v5756_v19 = vsel %vm10376_vm6, %v10295_v35, %v5752_v50  ;;  %v6887_v20 = vor.u32 %v8235_v9, %v6884_v10 }
 0x2ca   : > { %5615 = vmatpush.bf16.msrb.mxu3 %v6967_v49  ;;  %v8139_v49 = vld [vmem:[%s9368_s20 + $0x44c] sm:$0xf]  ;;  %v5767_v63 = vadd.f32 %v10329_v16, %v5766_v39  ;;  %v6903_v3 = vor.u32 %v8239_v40, %v6900_v41  ;;  %v6740_v22 = vld [vmem:[%s9368_s20 + $0x638] sm:$0xf0] }
 0x2cb   : > { %5571 = vmatmul.bf16.vlgmr.msra.gmra.mxu3 %v9482_v29  ;;  %5577 = vmatpush.bf16.msrb.mxu0 %v6567_v59  ;;  %v10326_v29 = vld [vmem:[%s9778_s5] sm:$0xf]  ;;  %v8171_v59 = vld [vmem:[%s9368_s20 + $0x54c] sm:$0xf]  ;;  %v6503_v12 = vor.u32 %v8139_v49, %v6500_v58  ;;  %v5327_v46 = vpop.f32.mrf.mxu0  ;;  %v6868_v25 = vld [vmem:[%s9368_s20 + $0x738] sm:$0xf0] }
 0x2cc   : > { %v2298_v15 = vperm.slane %v10326_v29, 2  ;;  %v8203_v4 = vld [vmem:[%s9368_s20 + $0x64c] sm:$0xf]  ;;  %v6468_v35 = vld [vmem:[%s9368_s20 + $0x418] sm:$0xf0]  ;;  %v6871_v37 = vor.u32 %v8231_v24, %v6868_v25 }
 0x2cd   : > { %5590 = vmatpush.bf16.msrb.mxu1 %v6695_v61  ;;  %5603 = vmatpush.bf16.msrb.mxu2 %v6823_v62  ;;  %v6628_v61 = vld [vmem:[%s9368_s20 + $0x558] sm:$0xf0]  ;;  %v5351_v62 = vpop.f32.mrf.mxu2  ;;  %v5340_v34 = vpop.f32.mrf.mxu1  ;;  %v8199_v21 = vld [vmem:[%s9368_s20 + $0x62c] sm:$0xf] }
 0x2ce   : > { %5616 = vmatpush.bf16.msrb.mxu3 %v6951_v5  ;;  %v5326_v31 = vadd.f32 %v5325_v48, %v2298_v15  ;;  %v6756_v5 = vld [vmem:[%s9368_s20 + $0x658] sm:$0xf0]  ;;  %v5364_v7 = vpop.f32.mrf.mxu3  ;;  %v6631_v56 = vor.u32 %v8171_v59, %v6628_v61  ;;  %v8131_v45 = vld [vmem:[%s9368_s20 + $0x40c] sm:$0xf]  ;;  %v6743_v54 = vor.u32 %v8199_v21, %v6740_v22 }
 0x2cf   : > { %5578 = vmatpush.bf16.msrb.mxu0 %v6551_v11  ;;  %v5771_v11 = vsel %vm5770_vm3, %v10329_v16, %v5767_v63  ;;  %v6759_v15 = vor.u32 %v8203_v4, %v6756_v5  ;;  %v6484_v16 = vld [vmem:[%s9368_s20 + $0x438] sm:$0xf0]  ;;  %v8163_v30 = vld [vmem:[%s9368_s20 + $0x50c] sm:$0xf]  ;;  %v6471_v49 = vor.u32 %v8131_v45, %v6468_v35 }
 0x2d0   : > { %v5339_v42 = vadd.f32 %v5338_v32, %v5326_v31  ;;  %v5776_v28 = vsel %vm5773_vm5, %v5775_v8, %v5771_v11  ;;  %v6596_v31 = vld [vmem:[%s9368_s20 + $0x518] sm:$0xf0]  ;;  %v8195_v32 = vld [vmem:[%s9368_s20 + $0x60c] sm:$0xf] }
 0x2d1   : > { %5591 = vmatpush.bf16.msrb.mxu1 %v6679_v27  ;;  %5604 = vmatpush.bf16.msrb.mxu2 %v6807_v13  ;;  %v8135_v27 = vld [vmem:[%s9368_s20 + $0x42c] sm:$0xf]  ;;  %v5812_v48 = vrot.slane %v5776_v28, 6  ;;  %v6724_v38 = vld [vmem:[%s9368_s20 + $0x618] sm:$0xf0] }
 0x2d2   : > { %5617 = vmatpush.bf16.msrb.mxu3 %v6935_v17  ;;  %v5352_v6 = vadd.f32 %v5351_v62, %v5339_v42  ;;  %v8167_v17 = vld [vmem:[%s9368_s20 + $0x52c] sm:$0xf]  ;;  %v6487_v51 = vor.u32 %v8135_v27, %v6484_v16  ;;  %v6852_v40 = vld [vmem:[%s9368_s20 + $0x718] sm:$0xf0]  ;;  %v6727_v58 = vor.u32 %v8195_v32, %v6724_v38 }
 0x2d3   : > { %5579 = vmatpush.bf16.msrb.mxu0 %v6535_v23  ;;  %v5760_v23 = vor.u32 1.1754944e-38, %v5759_v52  ;;  %v8227_v39 = vld [vmem:[%s9368_s20 + $0x70c] sm:$0xf]  ;;  %v7092_v43 = vld [vmem:[%s9368_s20 + $0x8f8] sm:$0xf0] }
 0x2d4   : > { %v10372_v13 = vadd.f32 %v5364_v7, %v5352_v6  ;;  %v8287_v42 = vld [vmem:[%s9368_s20 + $0x8ec] sm:$0xf]  ;;  %v7220_v50 = vld [vmem:[%s9368_s20 + $0x9f8] sm:$0xf0]  ;;  %v6855_v62 = vor.u32 %v8227_v39, %v6852_v40 }
 0x2d5   : > { %5592 = vmatpush.bf16.msrb.mxu1 %v6663_v26  ;;  %5605 = vmatpush.bf16.msrb.mxu2 %v6791_v47  ;;  %v5761_v26 = vsel %vm5758_vm8, %v5760_v23, %v5756_v19  ;;  %v6615_v47 = vor.u32 %v8167_v17, %v6612_v18  ;;  %v5353_v33 = vpop.f32.mrf.mxu2  ;;  %v8383_v59 = vld [vmem:[%s9368_s20 + $0xbec] sm:$0xf]  ;;  %v7476_v61 = vld [vmem:[%s9368_s20 + $0xbf8] sm:$0xf0]  ;;  %v7095_v63 = vor.u32 %v8287_v42, %v7092_v43 }
 0x2d6   : > { %5618 = vmatpush.bf16.msrb.mxu3 %v6919_v36  ;;  %v10396_v36 = vsel %vm5815_vm7, %v5761_v26, %v5812_v48  ;;  %v5366_v41 = vpop.f32.mrf.mxu3  ;;  %v8283_v5 = vld [vmem:[%s9368_s20 + $0x8cc] sm:$0xf]  ;;  %v7076_v6 = vld [vmem:[%s9368_s20 + $0x8d8] sm:$0xf0]  ;;  %v7479_v52 = vor.u32 %v8383_v59, %v7476_v61 }
 0x2d7   : > { %5580 = vmatpush.bf16.msrb.mxu0 %v6519_v44  ;;  %v8319_v44 = vld [vmem:[%s9368_s20 + $0x9ec] sm:$0xf]  ;;  %v7204_v8 = vld [vmem:[%s9368_s20 + $0x9d8] sm:$0xf0]  ;;  %v7079_v27 = vor.u32 %v8283_v5, %v7076_v6 }
 0x2d8   : > { %v8315_v7 = vld [vmem:[%s9368_s20 + $0x9cc] sm:$0xf]  ;;  %v7332_v10 = vld [vmem:[%s9368_s20 + $0xad8] sm:$0xf0] }
 0x2d9   : > { %5593 = vmatpush.bf16.msrb.mxu1 %v6647_v55  ;;  %5606 = vmatpush.bf16.msrb.mxu2 %v6775_v57  ;;  %v7348_v55 = vld [vmem:[%s9368_s20 + $0xaf8] sm:$0xf0]  ;;  %v6599_v57 = vor.u32 %v8163_v30, %v6596_v31  ;;  %v8347_v9 = vld [vmem:[%s9368_s20 + $0xacc] sm:$0xf]  ;;  %v7207_v46 = vor.u32 %v8315_v7, %v7204_v8 }
 0x2da   : > { %5619 = vmatpush.bf16.msrb.mxu3 %v6903_v3  ;;  %v7223_v3 = vor.u32 %v8319_v44, %v7220_v50  ;;  %v7351_v4 = vor.u32 %v8351_v53, %v7348_v55  ;;  %v8379_v11 = vld [vmem:[%s9368_s20 + $0xbcc] sm:$0xf]  ;;  %v7335_v14 = vor.u32 %v8347_v9, %v7332_v10  ;;  %v7188_v17 = vld [vmem:[%s9368_s20 + $0x9b8] sm:$0xf0] }
 0x2db   : > { %5581 = vmatpush.bf16.msrb.mxu0 %v6503_v12  ;;  %v7460_v12 = vld [vmem:[%s9368_s20 + $0xbd8] sm:$0xf0]  ;;  %v8279_v28 = vld [vmem:[%s9368_s20 + $0x8ac] sm:$0xf] }
 0x2dc   : > { %v7463_v16 = vor.u32 %v8379_v11, %v7460_v12  ;;  %v8343_v18 = vld [vmem:[%s9368_s20 + $0xaac] sm:$0xf]  ;;  %v7316_v34 = vld [vmem:[%s9368_s20 + $0xab8] sm:$0xf0] }
 0x2dd   : > { %5594 = vmatpush.bf16.msrb.mxu1 %v6631_v56  ;;  %5607 = vmatpush.bf16.msrb.mxu2 %v6759_v15  ;;  %v7060_v56 = vld [vmem:[%s9368_s20 + $0x8b8] sm:$0xf0]  ;;  %v8311_v15 = vld [vmem:[%s9368_s20 + $0x9ac] sm:$0xf]  ;;  %v7319_v22 = vor.u32 %v8343_v18, %v7316_v34 }
 0x2de   : > { %5620 = vmatpush.bf16.msrb.mxu3 %v6887_v20  ;;  %v8375_v19 = vld [vmem:[%s9368_s20 + $0xbac] sm:$0xf]  ;;  %v7444_v20 = vld [vmem:[%s9368_s20 + $0xbb8] sm:$0xf0]  ;;  %v7063_v21 = vor.u32 %v8279_v28, %v7060_v56 }
 0x2df   : > { %5582 = vmatpush.bf16.msrb.mxu0 %v6487_v51  ;;  %v8275_v23 = vld [vmem:[%s9368_s20 + $0x88c] sm:$0xf]  ;;  %v7044_v24 = vld [vmem:[%s9368_s20 + $0x898] sm:$0xf0] }
 0x2e0   : > { %v8307_v25 = vld [vmem:[%s9368_s20 + $0x98c] sm:$0xf]  ;;  %v7172_v48 = vld [vmem:[%s9368_s20 + $0x998] sm:$0xf0] }
 0x2e1   : > { %5595 = vmatpush.bf16.msrb.mxu1 %v6615_v47  ;;  %5608 = vmatpush.bf16.msrb.mxu2 %v6743_v54  ;;  %v7300_v51 = vld [vmem:[%s9368_s20 + $0xa98] sm:$0xf0]  ;;  %v8371_v45 = vld [vmem:[%s9368_s20 + $0xb8c] sm:$0xf]  ;;  %v7175_v47 = vor.u32 %v8307_v25, %v7172_v48 }
 0x2e2   : > { %5621 = vmatpush.bf16.msrb.mxu3 %v6871_v37  ;;  %v7428_v35 = vld [vmem:[%s9368_s20 + $0xb98] sm:$0xf0]  ;;  %v8271_v30 = vld [vmem:[%s9368_s20 + $0x86c] sm:$0xf] }
 0x2e3   : > { %5583 = vmatpush.bf16.msrb.mxu0 %v6471_v49  ;;  %v5377_v26 = vpop.f32.mrf.mxu0  ;;  %v7028_v31 = vld [vmem:[%s9368_s20 + $0x878] sm:$0xf0]  ;;  %v8303_v32 = vld [vmem:[%s9368_s20 + $0x96c] sm:$0xf]  ;;  %v7431_v38 = vor.u32 %v8371_v45, %v7428_v35 }
 0x2e4   : > { %v5378_v33 = vadd.f32 %v5377_v26, %v10372_v13  ;;  %v7156_v39 = vld [vmem:[%s9368_s20 + $0x978] sm:$0xf0]  ;;  %v8335_v40 = vld [vmem:[%s9368_s20 + $0xa6c] sm:$0xf]  ;;  %v7031_v49 = vor.u32 %v8271_v30, %v7028_v31 }
 0x2e5   : > { %5596 = vmatpush.bf16.msrb.mxu1 %v6599_v57  ;;  %5609 = vmatpush.bf16.msrb.mxu2 %v6727_v58  ;;  %v5390_v37 = vpop.f32.mrf.mxu1  ;;  %v7284_v41 = vld [vmem:[%s9368_s20 + $0xa78] sm:$0xf0]  ;;  %v8367_v42 = vld [vmem:[%s9368_s20 + $0xb6c] sm:$0xf]  ;;  %v7159_v13 = vor.u32 %v8303_v32, %v7156_v39 }
 0x2e6   : > { %5622 = vmatpush.bf16.msrb.mxu3 %v6855_v62  ;;  %5584 = vmatmul.bf16.vlgmr.msrb.gmra.mxu0 %v9516_v0  ;;  %v7447_v0 = vor.u32 %v8375_v19, %v7444_v20  ;;  %v7412_v43 = vld [vmem:[%s9368_s20 + $0xb78] sm:$0xf0]  ;;  %v5391_v44 = vadd.f32 %v5390_v37, %v5378_v33  ;;  %v7287_v50 = vor.u32 %v8335_v40, %v7284_v41  ;;  %v8267_v53 = vld [vmem:[%s9368_s20 + $0x84c] sm:$0xf] }
 0x2e7   : > { %5628 = vmatpush.bf16.msra.mxu0 %v7095_v63  ;;  %v7012_v55 = vld [vmem:[%s9368_s20 + $0x858] sm:$0xf0]  ;;  %v8299_v57 = vld [vmem:[%s9368_s20 + $0x94c] sm:$0xf]  ;;  %v7415_v59 = vor.u32 %v8367_v42, %v7412_v43 }
 0x2e8   : > { %5610 = vmatmul.bf16.vlgmr.msrb.gmra.mxu2 %v9511_v60  ;;  %5597 = vmatmul.bf16.vlgmr.msrb.gmra.mxu1 %v9520_v2  ;;  %v7191_v60 = vor.u32 %v8311_v15, %v7188_v17  ;;  %v7047_v2 = vor.u32 %v8275_v23, %v7044_v24  ;;  %v7140_v61 = vld [vmem:[%s9368_s20 + $0x958] sm:$0xf0]  ;;  %v8331_v62 = vld [vmem:[%s9368_s20 + $0xa4c] sm:$0xf]  ;;  %v7015_v7 = vor.u32 %v8267_v53, %v7012_v55 }
 0x2e9   : > { %5641 = vmatpush.bf16.msra.mxu1 %v7223_v3  ;;  %5654 = vmatpush.bf16.msra.mxu2 %v7351_v4  ;;  %v7268_v63 = vld [vmem:[%s9368_s20 + $0xa58] sm:$0xf0]  ;;  %v8363_v5 = vld [vmem:[%s9368_s20 + $0xb4c] sm:$0xf]  ;;  %v7143_v9 = vor.u32 %v8299_v57, %v7140_v61 }
 0x2ea   : > { %5667 = vmatpush.bf16.msra.mxu3 %v7479_v52  ;;  %v7396_v6 = vld [vmem:[%s9368_s20 + $0xb58] sm:$0xf0]  ;;  %v7271_v10 = vor.u32 %v8331_v62, %v7268_v63  ;;  %v8263_v11 = vld [vmem:[%s9368_s20 + $0x82c] sm:$0xf] }
 0x2eb   : > { %5623 = vmatmul.bf16.vlgmr.msrb.gmra.mxu3 %v9518_v1  ;;  %5629 = vmatpush.bf16.msra.mxu0 %v7079_v27  ;;  %v8339_v1 = vld [vmem:[%s9368_s20 + $0xa8c] sm:$0xf]  ;;  %v5403_v58 = vpop.f32.mrf.mxu2  ;;  %v5379_v8 = vpop.f32.mrf.mxu0  ;;  %v6996_v12 = vld [vmem:[%s9368_s20 + $0x838] sm:$0xf0] }
 0x2ec   : > { %v7303_v54 = vor.u32 %v8339_v1, %v7300_v51  ;;  %v5404_v3 = vadd.f32 %v5403_v58, %v5391_v44  ;;  %v8295_v27 = vld [vmem:[%s9368_s20 + $0x92c] sm:$0xf]  ;;  %v7124_v28 = vld [vmem:[%s9368_s20 + $0x938] sm:$0xf0]  ;;  %v6999_v18 = vor.u32 %v8263_v11, %v6996_v12 }
 0x2ed   : > { %5642 = vmatpush.bf16.msra.mxu1 %v7207_v46  ;;  %5655 = vmatpush.bf16.msra.mxu2 %v7335_v14  ;;  %v5392_v46 = vpop.f32.mrf.mxu1  ;;  %v7399_v14 = vor.u32 %v8363_v5, %v7396_v6  ;;  %v8327_v56 = vld [vmem:[%s9368_s20 + $0xa2c] sm:$0xf]  ;;  %v7252_v15 = vld [vmem:[%s9368_s20 + $0xa38] sm:$0xf0]  ;;  %v7127_v20 = vor.u32 %v8295_v27, %v7124_v28  ;;  %v8623_v27 = vld [vmem:[#allocation1 + $0x1b] sm:$0xff] }
 0x2ee   : > { %5668 = vmatpush.bf16.msra.mxu3 %v7463_v16  ;;  %v5416_v4 = vpop.f32.mrf.mxu3  ;;  %v8359_v16 = vld [vmem:[%s9368_s20 + $0xb2c] sm:$0xf]  ;;  %v7380_v17 = vld [vmem:[%s9368_s20 + $0xb38] sm:$0xf0] }
 0x2ef   : > { %5630 = vmatpush.bf16.msra.mxu0 %v7063_v21  ;;  %v10454_v52 = vadd.f32 %v5416_v4, %v5404_v3  ;;  %v8259_v34 = vld [vmem:[%s9368_s20 + $0x80c] sm:$0xf]  ;;  %v6980_v19 = vld [vmem:[%s9368_s20 + $0x818] sm:$0xf0]  ;;  %v7255_v21 = vor.u32 %v8327_v56, %v7252_v15  ;;  %v7383_v25 = vor.u32 %v8359_v16, %v7380_v17 }
 0x2f0   : > { %v8323_v23 = vld [vmem:[%s9368_s20 + $0xa0c] sm:$0xf]  ;;  %v7364_v1 = vld [vmem:[%s9368_s20 + $0xb18] sm:$0xf0]  ;;  %v6983_v26 = vor.u32 %v8259_v34, %v6980_v19 }
 0x2f1   : > { %5643 = vmatpush.bf16.msra.mxu1 %v7191_v60  ;;  %5656 = vmatpush.bf16.msra.mxu2 %v7319_v22  ;;  %v8291_v60 = vld [vmem:[%s9368_s20 + $0x90c] sm:$0xf]  ;;  %v7108_v22 = vld [vmem:[%s9368_s20 + $0x918] sm:$0xf0] }
 0x2f2   : > { %5669 = vmatpush.bf16.msra.mxu3 %v7447_v0  ;;  %v7236_v0 = vld [vmem:[%s9368_s20 + $0xa18] sm:$0xf0]  ;;  %v8355_v48 = vld [vmem:[%s9368_s20 + $0xb0c] sm:$0xf]  ;;  %v7111_v31 = vor.u32 %v8291_v60, %v7108_v22 }
 0x2f3   : > { %5631 = vmatpush.bf16.msra.mxu0 %v7047_v2  ;;  %v5405_v24 = vpop.f32.mrf.mxu2  ;;  %v8415_v45 = vld [vmem:[%s9368_s20 + $0xcec] sm:$0xf]  ;;  %v7604_v35 = vld [vmem:[%s9368_s20 + $0xcf8] sm:$0xf0]  ;;  %v7239_v32 = vor.u32 %v8323_v23, %v7236_v0 }
 0x2f4   : > { %v8447_v2 = vld [vmem:[%s9368_s20 + $0xdec] sm:$0xf]  ;;  %v7860_v30 = vld [vmem:[%s9368_s20 + $0xef8] sm:$0xf0]  ;;  %v7607_v39 = vor.u32 %v8415_v45, %v7604_v35 }
 0x2f5   : > { %5644 = vmatpush.bf16.msra.mxu1 %v7175_v47  ;;  %5657 = vmatpush.bf16.msra.mxu2 %v7303_v54  ;;  %v7732_v47 = vld [vmem:[%s9368_s20 + $0xdf8] sm:$0xf0]  ;;  %v8479_v54 = vld [vmem:[%s9368_s20 + $0xeec] sm:$0xf] }
 0x2f6   : > { %5670 = vmatpush.bf16.msra.mxu3 %v7431_v38  ;;  %v5418_v51 = vpop.f32.mrf.mxu3  ;;  %v8511_v33 = vld [vmem:[%s9368_s20 + $0xfec] sm:$0xf]  ;;  %v7988_v37 = vld [vmem:[%s9368_s20 + $0xff8] sm:$0xf0]  ;;  %v7367_v38 = vor.u32 %v8355_v48, %v7364_v1  ;;  %v7735_v40 = vor.u32 %v8447_v2, %v7732_v47  ;;  %v7863_v41 = vor.u32 %v8479_v54, %v7860_v30 }
 0x2f7   : > { %5632 = vmatpush.bf16.msra.mxu0 %v7031_v49  ;;  %v8411_v42 = vld [vmem:[%s9368_s20 + $0xccc] sm:$0xf]  ;;  %v7588_v43 = vld [vmem:[%s9368_s20 + $0xcd8] sm:$0xf0]  ;;  %v7991_v49 = vor.u32 %v8511_v33, %v7988_v37 }
 0x2f8   : > { %v8443_v44 = vld [vmem:[%s9368_s20 + $0xdcc] sm:$0xf]  ;;  %v7844_v53 = vld [vmem:[%s9368_s20 + $0xed8] sm:$0xf0]  ;;  %v7591_v58 = vor.u32 %v8411_v42, %v7588_v43 }
 0x2f9   : > { %5645 = vmatpush.bf16.msra.mxu1 %v7159_v13  ;;  %5658 = vmatpush.bf16.msra.mxu2 %v7287_v50  ;;  %v7716_v13 = vld [vmem:[%s9368_s20 + $0xdd8] sm:$0xf0]  ;;  %v8475_v50 = vld [vmem:[%s9368_s20 + $0xecc] sm:$0xf] }
 0x2fa   : > { %5671 = vmatpush.bf16.msra.mxu3 %v7415_v59  ;;  %v8507_v55 = vld [vmem:[%s9368_s20 + $0xfcc] sm:$0xf]  ;;  %v7972_v57 = vld [vmem:[%s9368_s20 + $0xfd8] sm:$0xf0]  ;;  %v7719_v59 = vor.u32 %v8443_v44, %v7716_v13  ;;  %v7847_v61 = vor.u32 %v8475_v50, %v7844_v53 }
 0x2fb   : > { %5633 = vmatpush.bf16.msra.mxu0 %v7015_v7  ;;  %v8407_v62 = vld [vmem:[%s9368_s20 + $0xcac] sm:$0xf]  ;;  %v7572_v63 = vld [vmem:[%s9368_s20 + $0xcb8] sm:$0xf0]  ;;  %v7975_v5 = vor.u32 %v8507_v55, %v7972_v57 }
 0x2fc   : > { %v8439_v3 = vld [vmem:[%s9368_s20 + $0xdac] sm:$0xf]  ;;  %v8620_v4 = vld [vmem:[#allocation1] sm:$0xff]  ;;  %v7575_v46 = vor.u32 %v8407_v62, %v7572_v63 }
 0x2fd   : > { %5646 = vmatpush.bf16.msra.mxu1 %v7143_v9  ;;  %5659 = vmatpush.bf16.msra.mxu2 %v7271_v10  ;;  %v7700_v6 = vld [vmem:[%s9368_s20 + $0xdb8] sm:$0xf0]  ;;  %v8471_v7 = vld [vmem:[%s9368_s20 + $0xeac] sm:$0xf]  ;;  %v8622_v10 = vld [vmem:[#allocation1 + $0x9] sm:$0xff] }
 0x2fe   : > { %5672 = vmatpush.bf16.msra.mxu3 %v7399_v14  ;;  %v7828_v8 = vld [vmem:[%s9368_s20 + $0xeb8] sm:$0xf0]  ;;  %v8621_v9 = vld [vmem:[#allocation1 + $0x12] sm:$0xff]  ;;  %v7703_v14 = vor.u32 %v8439_v3, %v7700_v6 }
 0x2ff   : > { %5634 = vmatpush.bf16.msra.mxu0 %v6999_v18  ;;  %v8503_v11 = vld [vmem:[%s9368_s20 + $0xfac] sm:$0xf]  ;;  %v7956_v12 = vld [vmem:[%s9368_s20 + $0xfb8] sm:$0xf0]  ;;  %v7831_v28 = vor.u32 %v8471_v7, %v7828_v8 }
 0x300   : > { %v8403_v56 = vld [vmem:[%s9368_s20 + $0xc8c] sm:$0xf]  ;;  %v7556_v15 = vld [vmem:[%s9368_s20 + $0xc98] sm:$0xf0]  ;;  %v7959_v17 = vor.u32 %v8503_v11, %v7956_v12 }
 0x301   : > { %5647 = vmatpush.bf16.msra.mxu1 %v7127_v20  ;;  %5660 = vmatpush.bf16.msra.mxu2 %v7255_v21  ;;  %v8435_v16 = vld [vmem:[%s9368_s20 + $0xd8c] sm:$0xf]  ;;  %v7684_v18 = vld [vmem:[%s9368_s20 + $0xd98] sm:$0xf0]  ;;  %v7559_v23 = vor.u32 %v8403_v56, %v7556_v15 }
 0x302   : > { %5673 = vmatpush.bf16.msra.mxu3 %v7383_v25  ;;  %v8467_v34 = vld [vmem:[%s9368_s20 + $0xe8c] sm:$0xf]  ;;  %v7812_v19 = vld [vmem:[%s9368_s20 + $0xe98] sm:$0xf0]  ;;  %v7687_v25 = vor.u32 %v8435_v16, %v7684_v18 }
 0x303   : > { %5635 = vmatpush.bf16.msra.mxu0 %v6983_v26  ;;  %v5429_v20 = vpop.f32.mrf.mxu0  ;;  %v8499_v21 = vld [vmem:[%s9368_s20 + $0xf8c] sm:$0xf]  ;;  %v7940_v60 = vld [vmem:[%s9368_s20 + $0xf98] sm:$0xf0]  ;;  %v7815_v0 = vor.u32 %v8467_v34, %v7812_v19 }
 0x304   : > { %v5430_v22 = vadd.f32 %v5429_v20, %v10454_v52  ;;  %v8399_v48 = vld [vmem:[%s9368_s20 + $0xc6c] sm:$0xf]  ;;  %v7540_v1 = vld [vmem:[%s9368_s20 + $0xc78] sm:$0xf0]  ;;  %v7943_v45 = vor.u32 %v8499_v21, %v7940_v60 }
 0x305   : > { %5648 = vmatpush.bf16.msra.mxu1 %v7111_v31  ;;  %5661 = vmatpush.bf16.msra.mxu2 %v7239_v32  ;;  %v5442_v24 = vpop.f32.mrf.mxu1  ;;  %v8431_v51 = vld [vmem:[%s9368_s20 + $0xd6c] sm:$0xf]  ;;  %v7668_v2 = vld [vmem:[%s9368_s20 + $0xd78] sm:$0xf0]  ;;  %v7543_v30 = vor.u32 %v8399_v48, %v7540_v1 }
 0x306   : > { %5674 = vmatpush.bf16.msra.mxu3 %v7367_v38  ;;  %5636 = vmatmul.bf16.vlgmr.msra.gmra.mxu0 %v8620_v4  ;;  %v5443_v35 = vadd.f32 %v5442_v24, %v5430_v22  ;;  %v8463_v26 = vld [vmem:[%s9368_s20 + $0xe6c] sm:$0xf]  ;;  %v7796_v52 = vld [vmem:[%s9368_s20 + $0xe78] sm:$0xf0]  ;;  %v7671_v31 = vor.u32 %v8431_v51, %v7668_v2 }
 0x307   : > { %5680 = vmatpush.bf16.msrb.mxu0 %v7607_v39  ;;  %v8495_v47 = vld [vmem:[%s9368_s20 + $0xf6c] sm:$0xf]  ;;  %v7924_v54 = vld [vmem:[%s9368_s20 + $0xf78] sm:$0xf0]  ;;  %v7799_v32 = vor.u32 %v8463_v26, %v7796_v52 }
 0x308   : > { %5662 = vmatmul.bf16.vlgmr.msra.gmra.mxu2 %v8621_v9  ;;  %5649 = vmatmul.bf16.vlgmr.msra.gmra.mxu1 %v8622_v10  ;;  %v8395_v33 = vld [vmem:[%s9368_s20 + $0xc4c] sm:$0xf]  ;;  %v7524_v37 = vld [vmem:[%s9368_s20 + $0xc58] sm:$0xf0]  ;;  %v7927_v39 = vor.u32 %v8495_v47, %v7924_v54 }
 0x309   : > { %5693 = vmatpush.bf16.msrb.mxu1 %v7735_v40  ;;  %5706 = vmatpush.bf16.msrb.mxu2 %v7863_v41  ;;  %v8427_v38 = vld [vmem:[%s9368_s20 + $0xd4c] sm:$0xf]  ;;  %v7652_v41 = vld [vmem:[%s9368_s20 + $0xd58] sm:$0xf0]  ;;  %v7527_v55 = vor.u32 %v8395_v33, %v7524_v37 }
 0x30a   : > { %5719 = vmatpush.bf16.msrb.mxu3 %v7991_v49  ;;  %v8459_v42 = vld [vmem:[%s9368_s20 + $0xe4c] sm:$0xf]  ;;  %v7780_v43 = vld [vmem:[%s9368_s20 + $0xe58] sm:$0xf0] }
 0x30b   : > { %5675 = vmatmul.bf16.vlgmr.msra.gmra.mxu3 %v8623_v27  ;;  %5681 = vmatpush.bf16.msrb.mxu0 %v7591_v58  ;;  %v5455_v40 = vpop.f32.mrf.mxu2  ;;  %v8491_v13 = vld [vmem:[%s9368_s20 + $0xf4c] sm:$0xf]  ;;  %v7908_v50 = vld [vmem:[%s9368_s20 + $0xf58] sm:$0xf0]  ;;  %v5431_v53 = vpop.f32.mrf.mxu0 }
 0x30c   : > { %v5456_v44 = vadd.f32 %v5455_v40, %v5443_v35  ;;  %v8391_v62 = vld [vmem:[%s9368_s20 + $0xc2c] sm:$0xf]  ;;  %v7508_v63 = vld [vmem:[%s9368_s20 + $0xc38] sm:$0xf0]  ;;  %v7911_v4 = vor.u32 %v8491_v13, %v7908_v50 }
 0x30d   : > { %5694 = vmatpush.bf16.msrb.mxu1 %v7719_v59  ;;  %5707 = vmatpush.bf16.msrb.mxu2 %v7847_v61  ;;  %v5444_v57 = vpop.f32.mrf.mxu1  ;;  %v7655_v59 = vor.u32 %v8427_v38, %v7652_v41  ;;  %v7783_v61 = vor.u32 %v8459_v42, %v7780_v43  ;;  %v8423_v3 = vld [vmem:[%s9368_s20 + $0xd2c] sm:$0xf]  ;;  %v7764_v7 = vld [vmem:[%s9368_s20 + $0xe38] sm:$0xf0]  ;;  %v7511_v10 = vor.u32 %v8391_v62, %v7508_v63 }
 0x30e   : > { %5720 = vmatpush.bf16.msrb.mxu3 %v7975_v5  ;;  %v5468_v49 = vpop.f32.mrf.mxu3  ;;  %v7636_v5 = vld [vmem:[%s9368_s20 + $0xd38] sm:$0xf0]  ;;  %v8455_v6 = vld [vmem:[%s9368_s20 + $0xe2c] sm:$0xf] }
 0x30f   : > { %5682 = vmatpush.bf16.msrb.mxu0 %v7575_v46  ;;  %v5469_v58 = vadd.f32 %v5468_v49, %v5456_v44  ;;  %v8487_v8 = vld [vmem:[%s9368_s20 + $0xf2c] sm:$0xf]  ;;  %v7892_v9 = vld [vmem:[%s9368_s20 + $0xf38] sm:$0xf0]  ;;  %v7639_v11 = vor.u32 %v8423_v3, %v7636_v5  ;;  %v7767_v12 = vor.u32 %v8455_v6, %v7764_v7 }
 0x310   : > { %v8387_v27 = vld [vmem:[%s9368_s20 + $0xc0c] sm:$0xf]  ;;  %v7492_v46 = vld [vmem:[%s9368_s20 + $0xc18] sm:$0xf0] }
 0x311   : > { %5695 = vmatpush.bf16.msrb.mxu1 %v7703_v14  ;;  %5708 = vmatpush.bf16.msrb.mxu2 %v7831_v28  ;;  %v8419_v14 = vld [vmem:[%s9368_s20 + $0xd0c] sm:$0xf]  ;;  %v7895_v28 = vor.u32 %v8487_v8, %v7892_v9  ;;  %v7620_v56 = vld [vmem:[%s9368_s20 + $0xd18] sm:$0xf0]  ;;  %v7495_v20 = vor.u32 %v8387_v27, %v7492_v46 }
 0x312   : > { %5721 = vmatpush.bf16.msrb.mxu3 %v7959_v17  ;;  %v8451_v15 = vld [vmem:[%s9368_s20 + $0xe0c] sm:$0xf]  ;;  %v7748_v16 = vld [vmem:[%s9368_s20 + $0xe18] sm:$0xf0]  ;;  %v7623_v21 = vor.u32 %v8419_v14, %v7620_v56 }
 0x313   : > { %5683 = vmatpush.bf16.msrb.mxu0 %v7559_v23  ;;  %v5457_v17 = vpop.f32.mrf.mxu2  ;;  %v8483_v18 = vld [vmem:[%s9368_s20 + $0xf0c] sm:$0xf]  ;;  %v7876_v34 = vld [vmem:[%s9368_s20 + $0xf18] sm:$0xf0]  ;;  %v7751_v60 = vor.u32 %v8451_v15, %v7748_v16  ;;  %s5824_s20 = scalar_lea.sflag [#allocation4], %s9365_s17 }
 0x314   : > { %v7879_v22 = vor.u32 %v8483_v18, %v7876_v34  ;;  %v8624_v23 = vld [vmem:[#allocation1 + $0x24] sm:$0xff]  ;;  %v8625_v24 = vld [vmem:[#allocation1 + $0x2d] sm:$0xff] }
 0x315   : > { %5696 = vmatpush.bf16.msrb.mxu1 %v7687_v25  ;;  %5709 = vmatpush.bf16.msrb.mxu2 %v7815_v0  ;;  %v8626_v25 = vld [vmem:[#allocation1 + $0x36] sm:$0xff]  ;;  %v8627_v0 = vld [vmem:[#allocation1 + $0x3f] sm:$0xff] }
 0x316   : > { %5722 = vmatpush.bf16.msrb.mxu3 %v7943_v45  ;;  %v5470_v19 = vpop.f32.mrf.mxu3 }
 0x317   : > { %5684 = vmatpush.bf16.msrb.mxu0 %v7543_v30 }
 0x319   : > { %5697 = vmatpush.bf16.msrb.mxu1 %v7671_v31  ;;  %5710 = vmatpush.bf16.msrb.mxu2 %v7799_v32  ;;  %v2299_v32 = vperm.slane %v10326_v29, 3 }
 0x31a   : > { %5723 = vmatpush.bf16.msrb.mxu3 %v7927_v39 }
 0x31b   : > { %5685 = vmatpush.bf16.msrb.mxu0 %v7527_v55 }
 0x31d   : > { %5698 = vmatpush.bf16.msrb.mxu1 %v7655_v59  ;;  %5711 = vmatpush.bf16.msrb.mxu2 %v7783_v61 }
 0x31e   : > { %5724 = vmatpush.bf16.msrb.mxu3 %v7911_v4 }
 0x31f   : > { %5686 = vmatpush.bf16.msrb.mxu0 %v7511_v10 }
 0x321   : > { %5699 = vmatpush.bf16.msrb.mxu1 %v7639_v11  ;;  %5712 = vmatpush.bf16.msrb.mxu2 %v7767_v12 }
 0x322   : > { %5725 = vmatpush.bf16.msrb.mxu3 %v7895_v28 }
 0x323   : > { %5687 = vmatpush.bf16.msrb.mxu0 %v7495_v20  ;;  %v5481_v48 = vpop.f32.mrf.mxu0 }
 0x324   : > { %v5482_v1 = vadd.f32 %v5481_v48, %v5469_v58 }
 0x325   : > { %5700 = vmatpush.bf16.msrb.mxu1 %v7623_v21  ;;  %5713 = vmatpush.bf16.msrb.mxu2 %v7751_v60  ;;  %v5494_v51 = vpop.f32.mrf.mxu1 }
 0x326   : > { %5726 = vmatpush.bf16.msrb.mxu3 %v7879_v22  ;;  %5688 = vmatmul.bf16.vlgmr.msrb.gmra.mxu0 %v8624_v23  ;;  %v5495_v45 = vadd.f32 %v5494_v51, %v5482_v1 }
 0x328   : > { %5701 = vmatmul.bf16.vlgmr.msrb.gmra.mxu1 %v8625_v24  ;;  %5714 = vmatmul.bf16.vlgmr.msrb.gmra.mxu2 %v8626_v25 }
 0x329   : > { %5727 = vmatmul.bf16.vlgmr.msrb.gmra.mxu3 %v8627_v0 }
 0x32b   : > { %v5507_v35 = vpop.f32.mrf.mxu2  ;;  %v5483_v52 = vpop.f32.mrf.mxu0 }
 0x32c   : > { %v5508_v2 = vadd.f32 %v5507_v35, %v5495_v45 }
 0x32d   : > { %v5496_v47 = vpop.f32.mrf.mxu1 }
 0x32e   : > { %v5520_v26 = vpop.f32.mrf.mxu3 }
 0x32f   : > { %v5521_v54 = vadd.f32 %v5520_v26, %v5508_v2 }
 0x331   : > { %v7994_v14 = vmul.f32 -1.442695, %v5521_v54 }
 0x333   : > { %v5509_v30 = vpop.f32.mrf.mxu2  ;;  %8594 = vpow2.f32 %v7994_v14 }
 0x336   : > { %v5522_v31 = vpop.f32.mrf.mxu3 }
 0x339   : > { %v8595_v18 = vpop.eup %8594 }
 0x33a   : > { %v5746_v19 = vadd.f32 1.0, %v8595_v18 }
 0x33c   : > { %8596 = vrcp.f32 %v5746_v19  ;;  %v5789_v31 = vand.u32 2147483648, %v5746_v19  ;;  %vm5783_vm10 = vweird.f32 %v5746_v19 }
 0x342   : > { %v8597_v48 = vpop.eup %8596 }
 0x343   : > { %v5533_v33 = vpop.f32.mrf.mxu0  ;;  %v5779_v45 = vmul.f32 %v8597_v48, %v5746_v19  ;;  %vm5784_vm9 = vweird.f32 %v8597_v48 }
 0x344   : > { %v5534_v37 = vadd.f32 %v5533_v33, %v2299_v32  ;;  %v5787_v33 = vand.u32 2147483647, %v5746_v19  ;;  %vm5785_vm11 = vmor %vm5783_vm10, %vm5784_vm9 }
 0x345   : > { %v5546_v38 = vpop.f32.mrf.mxu1  ;;  %v5780_v26 = vsub.f32 1.0, %v5779_v45 }
 0x346   : > { %v5547_v39 = vadd.f32 %v5546_v38, %v5534_v37  ;;  %vm5788_vm14 = vcmp.eq.f32.partialorder %v5787_v33, 8.507059e+37 }
 0x347   : > { %v5781_v52 = vmul.f32 %v8597_v48, %v5780_v26 }
 0x349   : > { %v5782_v30 = vadd.f32 %v8597_v48, %v5781_v52 }
 0x34b   : > { %v5559_v40 = vpop.f32.mrf.mxu2  ;;  %v5535_v44 = vpop.f32.mrf.mxu0 }
 0x34c   : > { %v5560_v41 = vadd.f32 %v5559_v40, %v5547_v39  ;;  %v5786_v39 = vsel %vm5785_vm11, %v8597_v48, %v5782_v30 }
 0x34d   : > { %v5548_v49 = vpop.f32.mrf.mxu1 }
 0x34e   : > { %v5572_v42 = vpop.f32.mrf.mxu3 }
 0x34f   : > { %v5573_v43 = vadd.f32 %v5572_v42, %v5560_v41  ;;  %v5790_v41 = vor.u32 1.1754944e-38, %v5789_v31 }
 0x353   : > { %v5561_v13 = vpop.f32.mrf.mxu2 }
 0x356   : > { %v5574_v50 = vpop.f32.mrf.mxu3 }
 0x363   : > { %v5585_v53 = vpop.f32.mrf.mxu0 }
 0x364   : > { %v5586_v4 = vadd.f32 %v5585_v53, %v5573_v43  ;;  %v5791_v43 = vsel %vm5788_vm14, %v5790_v41, %v5786_v39 }
 0x365   : > { %v5598_v55 = vpop.f32.mrf.mxu1  ;;  %v5813_v50 = vrot.slane %v5791_v43, 4 }
 0x366   : > { %v5599_v8 = vadd.f32 %v5598_v55, %v5586_v4 }
 0x36b   : > { %v5611_v57 = vpop.f32.mrf.mxu2  ;;  %v5587_v59 = vpop.f32.mrf.mxu0 }
 0x36c   : > { %v5612_v10 = vadd.f32 %v5611_v57, %v5599_v8 }
 0x36d   : > { %v5600_v61 = vpop.f32.mrf.mxu1 }
 0x36e   : > { %v5624_v58 = vpop.f32.mrf.mxu3 }
 0x36f   : > { %v5625_v27 = vadd.f32 %v5624_v58, %v5612_v10 }
 0x373   : > { %v5613_v62 = vpop.f32.mrf.mxu2 }
 0x376   : > { %v5626_v29 = vpop.f32.mrf.mxu3 }
 0x383   : > { %v5637_v63 = vpop.f32.mrf.mxu0 }
 0x384   : > { %v5638_v46 = vadd.f32 %v5637_v63, %v5625_v27 }
 0x385   : > { %v5650_v3 = vpop.f32.mrf.mxu1 }
 0x386   : > { %v5651_v28 = vadd.f32 %v5650_v3, %v5638_v46 }
 0x38b   : > { %v5663_v5 = vpop.f32.mrf.mxu2  ;;  %v5639_v7 = vpop.f32.mrf.mxu0 }
 0x38c   : > { %v5664_v56 = vadd.f32 %v5663_v5, %v5651_v28 }
 0x38d   : > { %v5652_v9 = vpop.f32.mrf.mxu1 }
 0x38e   : > { %v5676_v6 = vpop.f32.mrf.mxu3 }
 0x38f   : > { %v5677_v15 = vadd.f32 %v5676_v6, %v5664_v56 }
 0x393   : > { %v5665_v11 = vpop.f32.mrf.mxu2 }
 0x396   : > { %v5678_v12 = vpop.f32.mrf.mxu3 }
 0x3a3   : > { %v5689_v16 = vpop.f32.mrf.mxu0 }
 0x3a4   : > { %v5690_v34 = vadd.f32 %v5689_v16, %v5677_v15 }
 0x3a5   : > { %v5702_v17 = vpop.f32.mrf.mxu1 }
 0x3a6   : > { %v5703_v20 = vadd.f32 %v5702_v17, %v5690_v34 }
 0x3ab   : > { %v5715_v21 = vpop.f32.mrf.mxu2  ;;  %v5691_v23 = vpop.f32.mrf.mxu0 }
 0x3ac   : > { %v5716_v60 = vadd.f32 %v5715_v21, %v5703_v20  ;;  %v5728_v22 = vpop.f32.mrf.mxu3 }
 0x3ad   : > { %v5704_v24 = vpop.f32.mrf.mxu1 }
 0x3ae   : > { %v5729_v25 = vadd.f32 %v5728_v22, %v5716_v60 }
 0x3b0   : > { %v7995_v0 = vmul.f32 -1.442695, %v5729_v25 }
 0x3b2   : > { %8598 = vpow2.f32 %v7995_v0 }
 0x3b3   : > { %v5717_v1 = vpop.f32.mrf.mxu2 }
 0x3b4   : > { %v5730_v51 = vpop.f32.mrf.mxu3 }
 0x3b8   : > { %v8599_v35 = vpop.eup %8598 }
 0x3b9   : > { %v5747_v2 = vadd.f32 1.0, %v8599_v35 }
 0x3bb   : > { %8600 = vrcp.f32 %v5747_v2  ;;  %v5804_v37 = vand.u32 2147483648, %v5747_v2  ;;  %v5802_v40 = vand.u32 2147483647, %v5747_v2  ;;  %vm5798_vm13 = vweird.f32 %v5747_v2 }
 0x3bd   : > { %v5805_v44 = vor.u32 1.1754944e-38, %v5804_v37  ;;  %vm5803_vm0 = vcmp.eq.f32.partialorder %v5802_v40, 8.507059e+37 }
 0x3c1   : > { %v8601_v47 = vpop.eup %8600 }
 0x3c2   : > { %v5794_v54 = vmul.f32 %v8601_v47, %v5747_v2  ;;  %vm5799_vm12 = vweird.f32 %v8601_v47 }
 0x3c3   : > { %vm5800_vm15 = vmor %vm5798_vm13, %vm5799_vm12 }
 0x3c4   : > { %v5795_v32 = vsub.f32 1.0, %v5794_v54 }
 0x3c6   : > { %v5796_v38 = vmul.f32 %v8601_v47, %v5795_v32 }
 0x3c8   : > { %v5797_v42 = vadd.f32 %v8601_v47, %v5796_v38 }
 0x3ca   : > { %v5801_v49 = vsel %vm5800_vm15, %v8601_v47, %v5797_v42 }
 0x3cb   : > { %v5806_v13 = vsel %vm5803_vm0, %v5805_v44, %v5801_v49 }
 0x3cc   : > { %v5814_v53 = vrot.slane %v5806_v13, 2 }
 0x3ce   : > { %v5818_v55 = vsel %vm5817_vm1, %v5813_v50, %v5814_v53 }
 0x3cf   : > { %v5820_v57 = vsel %vm5819_vm2, %v10396_v36, %v5818_v55 }
 0x3d0   : > { %5822 = vst [vmem:[%s1772_s16] sm:$0xff] %v5820_v57 }
 0x3d1   : > { %8655 = shalt.err (!%p8652_p11)
}
 0x3d2   : > { %8515 = dma.vmem_to_hbm [thread:$0]  (%p8783_p6), %s5838_s11, 128, %s5840_s19, %s5824_s20  }
 0x3d3 PF: > { %s5851_s17 = sand.u32 1, %s8694_s12   ;;  %p8518_p12 = pnand %p5934_p9, %p8787_p8 }
 0x3d4   : > { %s5852_s4 = scalar_lea.sflag [#allocation4], %s5851_s17 }
 0x3d5   : > { %p8519_p13 = pneg %p8518_p12 }
 0x3d7   : > { %8689 = dma.done.wait (%p8519_p13), %s5852_s4, 128  }
 0x3d8   : > { %8691 = vsyncadd (%p8519_p13), %s5852_s4, 4294967168  ;;  %p13_p0 = scmp.ge.s32.totalorder %s8769_s18, 4   ;;  %s10587_s12 = smov %s8698_s13 }
 0x3d9   : > { %s10588_s13 = smov %s8702_s14  ;;  %s10589_s14 = smov %s8781_s21 }
 0x3da   : > { %s10590_s15 = smov %s8769_s18  ;;  %15 = sbr.rel (!%p13_p0) target bundleno = 3 (0x3), region = 125 }
 0x3df   :  { %5858 = vsyncpa [#allocation4], 1 }
 0x3e0   :  { %5860 = vsyncpa [#allocation4 + $0x1], 1 }

</bundles_post_ra>
